<compile_context>
chip_gen: v5e
topology: v5e:2x2
jax: 0.10.0
libtpu: 0.0.40
codegen_flags: <defaults>
</compile_context>

<pallas_src>
import functools

import jax
import jax.numpy as jnp
from jax import lax
from jax.experimental import pallas as pl
from jax.experimental.pallas import tpu as pltpu

# ---------------- configuration (small, consistent with the module) -------------
VOCAB = 50          # vocabulary_size
REL_VOCAB = 8       # relation_vocab_size
EMBED = 32          # embedding_dim
INPUT_SIZE = 8      # self.input_size (sentence length == LSTM "batch")
SET_N = 2           # support-set size; must be 2 so the bi-LSTM hidden shapes match
K_STEPS = 20        # attention steps (module default K=20)
G_HID = EMBED // 2  # g_output_size


# ---------------- fused forward kernel -------------------------------------------
def _matching_net_kernel(x_in_ref, x_step_ref, g_wihx_ref, g_whh_ref, g_b_ref,
                         f_wih_ref, f_whh_ref, f_b_ref, out_w_ref, out_b_ref,
                         labels_ref, out_ref, *, k_steps):
    f32 = jnp.float32
    x_in = x_in_ref[...]                        # (S, E)
    s_len, e_dim = x_in.shape
    n_set = labels_ref.shape[0]
    gh = g_whh_ref.shape[0] // 2                # G hidden size (= E // 2)

    # ---------------- G: bidirectional LSTM (seq axis = N, "batch" = S) ---------
    # Hoisted input projection for ALL timesteps and BOTH directions in one matmul.
    # x_step rows [k*S:(k+1)*S] hold [x[t_fwd=k] | x[t_bwd=N-1-k]]; the packed weight
    # interleaves gate columns as [i_f i_b | f_f f_b | g_f g_b | o_f o_b] (128 lanes).
    xproj_g = (jnp.dot(x_step_ref[...], g_wihx_ref[...],
                       preferred_element_type=f32) + g_b_ref[...])    # (N*S, 8*gh)

    h_cat = jnp.zeros((s_len, 2 * gh), f32)     # lanes [0:gh]=fwd state, [gh:2gh]=bwd
    c_cat = jnp.zeros((s_len, 2 * gh), f32)
    h_steps = []
    for k in range(n_set):
        gates = xproj_g[k * s_len:(k + 1) * s_len, :] + jnp.dot(
            h_cat, g_whh_ref[...], preferred_element_type=f32)        # (S, 8*gh)
        i_g = jax.nn.sigmoid(gates[:, 0 * gh:2 * gh])
        f_g = jax.nn.sigmoid(gates[:, 2 * gh:4 * gh])
        g_g = jnp.tanh(gates[:, 4 * gh:6 * gh])
        o_g = jax.nn.sigmoid(gates[:, 6 * gh:8 * gh])
        c_cat = f_g * c_cat + i_g * g_g
        h_cat = o_g * jnp.tanh(c_cat)
        h_steps.append(h_cat)                   # [h_fwd(t=k) | h_bwd(t=N-1-k)]

    # g_output[t] = [h_fwd(t) | h_bwd(t)]  (fwd half of step t, bwd half of step N-1-t)
    col = lax.broadcasted_iota(jnp.int32, (s_len, 2 * gh), 1)
    fwd_mask = (col < gh).astype(f32)
    bwd_mask = 1.0 - fwd_mask
    g_list = [h_steps[t] * fwd_mask + h_steps[n_set - 1 - t] * bwd_mask
              for t in range(n_set)]            # each (S, E)

    # ---------------- F: K attention steps (1-layer LSTM, hidden = E) -----------
    xproj_f = (jnp.dot(x_in, f_wih_ref[...], preferred_element_type=f32)
               + f_b_ref[...])                  # hoisted: constant across K loop
    f_h = jnp.zeros((s_len, e_dim), f32)
    f_c = jnp.zeros((s_len, e_dim), f32)
    r_list = [jnp.zeros((s_len, e_dim), f32) for _ in range(n_set)]
    for _ in range(k_steps):
        gates = xproj_f + jnp.dot(f_h, f_whh_ref[...], preferred_element_type=f32)
        i_g = jax.nn.sigmoid(gates[:, 0 * e_dim:1 * e_dim])
        fo_g = jax.nn.sigmoid(gates[:, 1 * e_dim:2 * e_dim])
        g_g = jnp.tanh(gates[:, 2 * e_dim:3 * e_dim])
        o_g = jax.nn.sigmoid(gates[:, 3 * e_dim:4 * e_dim])
        c_new = fo_g * f_c + i_g * g_g
        h_new = o_g * jnp.tanh(c_new)

        fh = h_new + x_in                       # f_h.add(embedded_input): (S, E)
        # scores_n = g_n @ fh^T ; softmax over n (legacy implicit-dim softmax -> dim 0)
        s_list = [jnp.einsum("se,te->st", g_list[n], fh,
                             preferred_element_type=f32) for n in range(n_set)]
        m = s_list[0]
        for n in range(1, n_set):
            m = jnp.maximum(m, s_list[n])
        e_list = [jnp.exp(sc - m) for sc in s_list]
        d = e_list[0]
        for n in range(1, n_set):
            d = d + e_list[n]
        a_list = [e / d for e in e_list]
        # r_n = a_n @ g_n   (torch.bmm(a, g_output))
        r_list = [jnp.dot(a_list[n], g_list[n], preferred_element_type=f32)
                  for n in range(n_set)]
        # TODO(synk): mirrors legacy PyTorch (0.3) behavior where only the layer-0
        # slice of the (N,S,E) blended hidden feeds the next 1-layer LSTM step.
        f_h = r_list[0]
        f_c = c_new

    # -------- cosine kernel + output Linear + label blending + softmax ----------
    def _cos(x, y):                             # F.cosine_similarity(x, y) (dim=1)
        w12 = jnp.sum(x * y, axis=0, keepdims=True)
        w1 = jnp.sqrt(jnp.sum(x * x, axis=0, keepdims=True))
        w2 = jnp.sqrt(jnp.sum(y * y, axis=0, keepdims=True))
        return w12 / jnp.maximum(w1 * w2, 1e-8)

    cos_list = [_cos(r_list[n], g_list[n]) for n in range(n_set)]   # each (1, E)
    denom = jnp.sum(jnp.exp(cos_list[0]), axis=1, keepdims=True)    # (1, 1)
    for n in range(1, n_set):
        denom = denom + jnp.sum(jnp.exp(cos_list[n]), axis=1, keepdims=True)

    # Assemble kernel = cos / denom into a (N, E) block without in-kernel concat.
    row = lax.broadcasted_iota(jnp.int32, (n_set, e_dim), 0)
    kern = jnp.zeros((n_set, e_dim), f32)
    for n in range(n_set):
        kern = kern + (row == n).astype(f32) * (cos_list[n] / denom)

    k2 = (jnp.dot(kern, out_w_ref[...], preferred_element_type=f32)
          + out_b_ref[...])                     # self.out(kernel): (N, R)
    # torch.mm(kernel.t(), set_labels) -> (R, R)
    blended = jnp.einsum("nr,nq->rq", k2, labels_ref[...],
                         preferred_element_type=f32)
    # F.softmax(output.sum(0))
    sm = jnp.sum(blended, axis=0, keepdims=True)                    # (1, R)
    mx = jnp.max(sm, axis=1, keepdims=True)
    ex = jnp.exp(sm - mx)
    out_ref[...] = ex / jnp.sum(ex, axis=1, keepdims=True)


# ---------------- weight packing for the fused G matmuls (plain JAX) -------------
def _pack_g_weights(wih_f_t, whh_f_t, b_f, wih_b_t, whh_b_t, b_b):
    """Pack fwd/bwd G-LSTM weights into 128-lane matmuls with interleaved gate cols.

    Column layout (width 8*gh = 128): [i_f i_b | f_f f_b | g_f g_b | o_f o_b].
    w_ihx rows [0:E] act on x[t_fwd], rows [E:2E] on x[t_bwd] (fed as [x_f | x_b]).
    w_hh  rows [0:gh] act on the fwd hidden half, rows [gh:2gh] on the bwd half.
    """
    e_dim = wih_f_t.shape[0]
    gh = whh_f_t.shape[0]
    w_ihx = jnp.zeros((2 * e_dim, 8 * gh), jnp.float32)
    w_hh = jnp.zeros((2 * gh, 8 * gh), jnp.float32)
    b = jnp.zeros((1, 8 * gh), jnp.float32)
    for q in range(4):                          # PyTorch gate order: i, f, g, o
        src = slice(q * gh, (q + 1) * gh)
        dst_f = slice((2 * q) * gh, (2 * q + 1) * gh)
        dst_b = slice((2 * q + 1) * gh, (2 * q + 2) * gh)
        w_ihx = w_ihx.at[0:e_dim, dst_f].set(wih_f_t[:, src])
        w_ihx = w_ihx.at[e_dim:2 * e_dim, dst_b].set(wih_b_t[:, src])
        w_hh = w_hh.at[0:gh, dst_f].set(whh_f_t[:, src])
        w_hh = w_hh.at[gh:2 * gh, dst_b].set(whh_b_t[:, src])
        b = b.at[:, dst_f].set(b_f[:, src])
        b = b.at[:, dst_b].set(b_b[:, src])
    return w_ihx, w_hh, b


# ---------------- full forward pass ----------------------------------------------
def matching_net_forward(params, input_idx, set_inputs, set_labels, k_steps=K_STEPS):
    emb = params["embedding"]
    embedded_input = emb[input_idx]             # (S, E)   -- gather stays in JAX
    embedded_example = emb[set_inputs]          # (N, S, E)
    n, s, e = embedded_example.shape

    # Paired per-step input for both directions: step k sees [x[k] | x[N-1-k]].
    x_step = jnp.concatenate(
        [jnp.concatenate([embedded_example[k], embedded_example[n - 1 - k]], axis=-1)
         for k in range(n)], axis=0)            # (N*S, 2E)

    g_wihx, g_whh, g_b = _pack_g_weights(
        params["g_wih_f_t"], params["g_whh_f_t"], params["g_b_f"],
        params["g_wih_b_t"], params["g_whh_b_t"], params["g_b_b"])

    kernel = functools.partial(_matching_net_kernel, k_steps=k_steps)
    vmem = functools.partial(pl.BlockSpec, memory_space=pltpu.MemorySpace.VMEM)
    out = pl.pallas_call(
        kernel,
        out_shape=jax.ShapeDtypeStruct((1, params["out_w_t"].shape[1]), jnp.float32),
        in_specs=[vmem() for _ in range(11)],
        out_specs=vmem(),
    )(embedded_input, x_step, g_wihx, g_whh, g_b,
      params["f_wih_t"], params["f_whh_t"], params["f_b"],
      params["out_w_t"], params["out_b"], set_labels)
    return out[0]                               # (REL_VOCAB,)


# ---------------- main ------------------------------------------------------------
if __name__ == "__main__":
    key = jax.random.PRNGKey(0)
    keys = jax.random.split(key, 16)

    def u(k, shape):
        return jax.random.uniform(k, shape, jnp.float32, -0.1, 0.1)

    params = {
        "embedding": u(keys[0], (VOCAB, EMBED)),
        # bidirectional LSTM "G" (hidden = EMBED // 2), weights stored transposed,
        # biases combined (b_ih + b_hh) as a single (1, 4H) row.
        "g_wih_f_t": u(keys[1], (EMBED, 4 * G_HID)),
        "g_whh_f_t": u(keys[2], (G_HID, 4 * G_HID)),
        "g_b_f":     u(keys[3], (1, 4 * G_HID)),
        "g_wih_b_t": u(keys[4], (EMBED, 4 * G_HID)),
        "g_whh_b_t": u(keys[5], (G_HID, 4 * G_HID)),
        "g_b_b":     u(keys[6], (1, 4 * G_HID)),
        # unidirectional LSTM "F" (hidden = EMBED)
        "f_wih_t":   u(keys[7], (EMBED, 4 * EMBED)),
        "f_whh_t":   u(keys[8], (EMBED, 4 * EMBED)),
        "f_b":       u(keys[9], (1, 4 * EMBED)),
        # output Linear(EMBED -> REL_VOCAB), stored transposed
        "out_w_t":   u(keys[10], (EMBED, REL_VOCAB)),
        "out_b":     u(keys[11], (1, REL_VOCAB)),
    }

    input_idx = jax.random.randint(keys[12], (INPUT_SIZE,), 0, VOCAB)
    set_inputs = jax.random.randint(keys[13], (SET_N, INPUT_SIZE), 0, VOCAB)
    set_label_ids = jax.random.randint(keys[14], (SET_N,), 0, REL_VOCAB)
    set_labels = jax.nn.one_hot(set_label_ids, REL_VOCAB, dtype=jnp.float32)

    fwd = jax.jit(matching_net_forward)
    out = fwd(params, input_idx, set_inputs, set_labels)
    out = jax.block_until_ready(out)

    assert out.shape == (REL_VOCAB,), out.shape
    assert bool(jnp.isfinite(out).all())
    print("KERNEL_OK")
</pallas_src>

<mosaic_0001>
module attributes {stable_mosaic.version = 11 : i64} {
  func.func @_matching_net_kernel(%arg0: memref<8x32xf32, #tpu.memory_space<vmem>>, %arg1: memref<16x64xf32, #tpu.memory_space<vmem>>, %arg2: memref<64x128xf32, #tpu.memory_space<vmem>>, %arg3: memref<32x128xf32, #tpu.memory_space<vmem>>, %arg4: memref<1x128xf32, #tpu.memory_space<vmem>>, %arg5: memref<32x128xf32, #tpu.memory_space<vmem>>, %arg6: memref<32x128xf32, #tpu.memory_space<vmem>>, %arg7: memref<1x128xf32, #tpu.memory_space<vmem>>, %arg8: memref<32x8xf32, #tpu.memory_space<vmem>>, %arg9: memref<1x8xf32, #tpu.memory_space<vmem>>, %arg10: memref<2x8xf32, #tpu.memory_space<vmem>>, %arg11: memref<1x8xf32, #tpu.memory_space<vmem>>) attributes {dimension_semantics = [], scalar_prefetch = 0 : i64, scratch_operands = 0 : i64, tpu.core_type = #tpu.core_type<tc>} {
    %c0 = arith.constant 0 : index
    %c0_0 = arith.constant 0 : index
    %0 = vector.load %arg0[%c0, %c0_0] : memref<8x32xf32, #tpu.memory_space<vmem>>, vector<8x32xf32>
    %c0_1 = arith.constant 0 : index
    %c0_2 = arith.constant 0 : index
    %1 = vector.load %arg1[%c0_1, %c0_2] : memref<16x64xf32, #tpu.memory_space<vmem>>, vector<16x64xf32>
    %c0_3 = arith.constant 0 : index
    %c0_4 = arith.constant 0 : index
    %2 = vector.load %arg2[%c0_3, %c0_4] : memref<64x128xf32, #tpu.memory_space<vmem>>, vector<64x128xf32>
    %cst = arith.constant dense<0.000000e+00> : vector<16x128xf32>
    %3 = tpu.matmul %1, %2, %cst {dimension_numbers = #tpu.dot_dimension_numbers<[1], [0], [0], [1], [0, 0, 1, 1], [], []>} : vector<16x64xf32>, vector<64x128xf32>, vector<16x128xf32> -> vector<16x128xf32>
    %c0_5 = arith.constant 0 : index
    %c0_6 = arith.constant 0 : index
    %4 = vector.load %arg4[%c0_5, %c0_6] : memref<1x128xf32, #tpu.memory_space<vmem>>, vector<1x128xf32>
    %5 = vector.broadcast %4 : vector<1x128xf32> to vector<16x128xf32>
    %6 = arith.addf %3, %5 : vector<16x128xf32>
    %cst_7 = arith.constant 0.000000e+00 : f32
    %7 = vector.broadcast %cst_7 : f32 to vector<8x32xf32>
    %cst_8 = arith.constant 0.000000e+00 : f32
    %8 = vector.broadcast %cst_8 : f32 to vector<8x32xf32>
    %9 = vector.extract_strided_slice %6 {offsets = [0, 0], sizes = [8, 128], strides = [1, 1]} : vector<16x128xf32> to vector<8x128xf32>
    %c0_9 = arith.constant 0 : index
    %c0_10 = arith.constant 0 : index
    %10 = vector.load %arg3[%c0_9, %c0_10] : memref<32x128xf32, #tpu.memory_space<vmem>>, vector<32x128xf32>
    %cst_11 = arith.constant dense<0.000000e+00> : vector<8x128xf32>
    %11 = tpu.matmul %7, %10, %cst_11 {dimension_numbers = #tpu.dot_dimension_numbers<[1], [0], [0], [1], [0, 0, 1, 1], [], []>} : vector<8x32xf32>, vector<32x128xf32>, vector<8x128xf32> -> vector<8x128xf32>
    %12 = arith.addf %9, %11 : vector<8x128xf32>
    %13 = vector.extract_strided_slice %12 {offsets = [0, 0], sizes = [8, 32], strides = [1, 1]} : vector<8x128xf32> to vector<8x32xf32>
    %14 = arith.negf %13 : vector<8x32xf32>
    %15 = math.exp %14 : vector<8x32xf32>
    %cst_12 = arith.constant 1.000000e+00 : f32
    %16 = vector.broadcast %cst_12 : f32 to vector<8x32xf32>
    %17 = arith.addf %16, %15 : vector<8x32xf32>
    %18 = arith.divf %16, %17 : vector<8x32xf32>
    %19 = vector.extract_strided_slice %12 {offsets = [0, 32], sizes = [8, 32], strides = [1, 1]} : vector<8x128xf32> to vector<8x32xf32>
    %20 = arith.negf %19 : vector<8x32xf32>
    %21 = math.exp %20 : vector<8x32xf32>
    %cst_13 = arith.constant 1.000000e+00 : f32
    %22 = vector.broadcast %cst_13 : f32 to vector<8x32xf32>
    %23 = arith.addf %22, %21 : vector<8x32xf32>
    %24 = arith.divf %22, %23 : vector<8x32xf32>
    %25 = vector.extract_strided_slice %12 {offsets = [0, 64], sizes = [8, 32], strides = [1, 1]} : vector<8x128xf32> to vector<8x32xf32>
    %26 = math.tanh %25 : vector<8x32xf32>
    %27 = vector.extract_strided_slice %12 {offsets = [0, 96], sizes = [8, 32], strides = [1, 1]} : vector<8x128xf32> to vector<8x32xf32>
    %28 = arith.negf %27 : vector<8x32xf32>
    %29 = math.exp %28 : vector<8x32xf32>
    %cst_14 = arith.constant 1.000000e+00 : f32
    %30 = vector.broadcast %cst_14 : f32 to vector<8x32xf32>
    %31 = arith.addf %30, %29 : vector<8x32xf32>
    %32 = arith.divf %30, %31 : vector<8x32xf32>
    %33 = arith.mulf %24, %8 : vector<8x32xf32>
    %34 = arith.mulf %18, %26 : vector<8x32xf32>
    %35 = arith.addf %33, %34 : vector<8x32xf32>
    %36 = math.tanh %35 : vector<8x32xf32>
    %37 = arith.mulf %32, %36 : vector<8x32xf32>
    %38 = vector.extract_strided_slice %6 {offsets = [8, 0], sizes = [8, 128], strides = [1, 1]} : vector<16x128xf32> to vector<8x128xf32>
    %c0_15 = arith.constant 0 : index
    %c0_16 = arith.constant 0 : index
    %39 = vector.load %arg3[%c0_15, %c0_16] : memref<32x128xf32, #tpu.memory_space<vmem>>, vector<32x128xf32>
    %cst_17 = arith.constant dense<0.000000e+00> : vector<8x128xf32>
    %40 = tpu.matmul %37, %39, %cst_17 {dimension_numbers = #tpu.dot_dimension_numbers<[1], [0], [0], [1], [0, 0, 1, 1], [], []>} : vector<8x32xf32>, vector<32x128xf32>, vector<8x128xf32> -> vector<8x128xf32>
    %41 = arith.addf %38, %40 : vector<8x128xf32>
    %42 = vector.extract_strided_slice %41 {offsets = [0, 0], sizes = [8, 32], strides = [1, 1]} : vector<8x128xf32> to vector<8x32xf32>
    %43 = arith.negf %42 : vector<8x32xf32>
    %44 = math.exp %43 : vector<8x32xf32>
    %cst_18 = arith.constant 1.000000e+00 : f32
    %45 = vector.broadcast %cst_18 : f32 to vector<8x32xf32>
    %46 = arith.addf %45, %44 : vector<8x32xf32>
    %47 = arith.divf %45, %46 : vector<8x32xf32>
    %48 = vector.extract_strided_slice %41 {offsets = [0, 32], sizes = [8, 32], strides = [1, 1]} : vector<8x128xf32> to vector<8x32xf32>
    %49 = arith.negf %48 : vector<8x32xf32>
    %50 = math.exp %49 : vector<8x32xf32>
    %cst_19 = arith.constant 1.000000e+00 : f32
    %51 = vector.broadcast %cst_19 : f32 to vector<8x32xf32>
    %52 = arith.addf %51, %50 : vector<8x32xf32>
    %53 = arith.divf %51, %52 : vector<8x32xf32>
    %54 = vector.extract_strided_slice %41 {offsets = [0, 64], sizes = [8, 32], strides = [1, 1]} : vector<8x128xf32> to vector<8x32xf32>
    %55 = math.tanh %54 : vector<8x32xf32>
    %56 = vector.extract_strided_slice %41 {offsets = [0, 96], sizes = [8, 32], strides = [1, 1]} : vector<8x128xf32> to vector<8x32xf32>
    %57 = arith.negf %56 : vector<8x32xf32>
    %58 = math.exp %57 : vector<8x32xf32>
    %cst_20 = arith.constant 1.000000e+00 : f32
    %59 = vector.broadcast %cst_20 : f32 to vector<8x32xf32>
    %60 = arith.addf %59, %58 : vector<8x32xf32>
    %61 = arith.divf %59, %60 : vector<8x32xf32>
    %62 = arith.mulf %53, %35 : vector<8x32xf32>
    %63 = arith.mulf %47, %55 : vector<8x32xf32>
    %64 = arith.addf %62, %63 : vector<8x32xf32>
    %65 = math.tanh %64 : vector<8x32xf32>
    %66 = arith.mulf %61, %65 : vector<8x32xf32>
    %67 = tpu.iota {dimensions = array<i32: 1>} : vector<8x32xi32>
    %c16_i32 = arith.constant 16 : i32
    %68 = vector.broadcast %c16_i32 : i32 to vector<8x32xi32>
    %69 = arith.cmpi slt, %67, %68 : vector<8x32xi32>
    %70 = arith.extui %69 : vector<8x32xi1> to vector<8x32xi32>
    %71 = arith.sitofp %70 : vector<8x32xi32> to vector<8x32xf32>
    %cst_21 = arith.constant 1.000000e+00 : f32
    %72 = vector.broadcast %cst_21 : f32 to vector<8x32xf32>
    %73 = arith.subf %72, %71 : vector<8x32xf32>
    %74 = arith.mulf %37, %71 : vector<8x32xf32>
    %75 = arith.mulf %66, %73 : vector<8x32xf32>
    %76 = arith.addf %74, %75 : vector<8x32xf32>
    %77 = arith.mulf %66, %71 : vector<8x32xf32>
    %78 = arith.mulf %37, %73 : vector<8x32xf32>
    %79 = arith.addf %77, %78 : vector<8x32xf32>
    %c0_22 = arith.constant 0 : index
    %c0_23 = arith.constant 0 : index
    %80 = vector.load %arg5[%c0_22, %c0_23] : memref<32x128xf32, #tpu.memory_space<vmem>>, vector<32x128xf32>
    %cst_24 = arith.constant dense<0.000000e+00> : vector<8x128xf32>
    %81 = tpu.matmul %0, %80, %cst_24 {dimension_numbers = #tpu.dot_dimension_numbers<[1], [0], [0], [1], [0, 0, 1, 1], [], []>} : vector<8x32xf32>, vector<32x128xf32>, vector<8x128xf32> -> vector<8x128xf32>
    %c0_25 = arith.constant 0 : index
    %c0_26 = arith.constant 0 : index
    %82 = vector.load %arg7[%c0_25, %c0_26] : memref<1x128xf32, #tpu.memory_space<vmem>>, vector<1x128xf32>
    %83 = vector.broadcast %82 : vector<1x128xf32> to vector<8x128xf32>
    %84 = arith.addf %81, %83 : vector<8x128xf32>
    %cst_27 = arith.constant 0.000000e+00 : f32
    %85 = vector.broadcast %cst_27 : f32 to vector<8x32xf32>
    %cst_28 = arith.constant 0.000000e+00 : f32
    %86 = vector.broadcast %cst_28 : f32 to vector<8x32xf32>
    %c0_29 = arith.constant 0 : index
    %c0_30 = arith.constant 0 : index
    %87 = vector.load %arg6[%c0_29, %c0_30] : memref<32x128xf32, #tpu.memory_space<vmem>>, vector<32x128xf32>
    %cst_31 = arith.constant dense<0.000000e+00> : vector<8x128xf32>
    %88 = tpu.matmul %85, %87, %cst_31 {dimension_numbers = #tpu.dot_dimension_numbers<[1], [0], [0], [1], [0, 0, 1, 1], [], []>} : vector<8x32xf32>, vector<32x128xf32>, vector<8x128xf32> -> vector<8x128xf32>
    %89 = arith.addf %84, %88 : vector<8x128xf32>
    %90 = vector.extract_strided_slice %89 {offsets = [0, 0], sizes = [8, 32], strides = [1, 1]} : vector<8x128xf32> to vector<8x32xf32>
    %91 = arith.negf %90 : vector<8x32xf32>
    %92 = math.exp %91 : vector<8x32xf32>
    %cst_32 = arith.constant 1.000000e+00 : f32
    %93 = vector.broadcast %cst_32 : f32 to vector<8x32xf32>
    %94 = arith.addf %93, %92 : vector<8x32xf32>
    %95 = arith.divf %93, %94 : vector<8x32xf32>
    %96 = vector.extract_strided_slice %89 {offsets = [0, 32], sizes = [8, 32], strides = [1, 1]} : vector<8x128xf32> to vector<8x32xf32>
    %97 = arith.negf %96 : vector<8x32xf32>
    %98 = math.exp %97 : vector<8x32xf32>
    %cst_33 = arith.constant 1.000000e+00 : f32
    %99 = vector.broadcast %cst_33 : f32 to vector<8x32xf32>
    %100 = arith.addf %99, %98 : vector<8x32xf32>
    %101 = arith.divf %99, %100 : vector<8x32xf32>
    %102 = vector.extract_strided_slice %89 {offsets = [0, 64], sizes = [8, 32], strides = [1, 1]} : vector<8x128xf32> to vector<8x32xf32>
    %103 = math.tanh %102 : vector<8x32xf32>
    %104 = vector.extract_strided_slice %89 {offsets = [0, 96], sizes = [8, 32], strides = [1, 1]} : vector<8x128xf32> to vector<8x32xf32>
    %105 = arith.negf %104 : vector<8x32xf32>
    %106 = math.exp %105 : vector<8x32xf32>
    %cst_34 = arith.constant 1.000000e+00 : f32
    %107 = vector.broadcast %cst_34 : f32 to vector<8x32xf32>
    %108 = arith.addf %107, %106 : vector<8x32xf32>
    %109 = arith.divf %107, %108 : vector<8x32xf32>
    %110 = arith.mulf %101, %86 : vector<8x32xf32>
    %111 = arith.mulf %95, %103 : vector<8x32xf32>
    %112 = arith.addf %110, %111 : vector<8x32xf32>
    %113 = math.tanh %112 : vector<8x32xf32>
    %114 = arith.mulf %109, %113 : vector<8x32xf32>
    %115 = arith.addf %114, %0 : vector<8x32xf32>
    "tpu.trace_start"() <{level = 10 : i32, message = "se,te->st"}> : () -> ()
    %cst_35 = arith.constant dense<0.000000e+00> : vector<8x8xf32>
    %116 = tpu.matmul %76, %115, %cst_35 {dimension_numbers = #tpu.dot_dimension_numbers<[1], [1], [0], [0], [0, 0, 1, 0], [], []>} : vector<8x32xf32>, vector<8x32xf32>, vector<8x8xf32> -> vector<8x8xf32>
    %cst_36 = arith.constant dense<0.000000e+00> : vector<8x8xf32>
    %117 = tpu.matmul %79, %115, %cst_36 {dimension_numbers = #tpu.dot_dimension_numbers<[1], [1], [0], [0], [0, 0, 1, 0], [], []>} : vector<8x32xf32>, vector<8x32xf32>, vector<8x8xf32> -> vector<8x8xf32>
    "tpu.trace_stop"() : () -> ()
    %118 = arith.maximumf %116, %117 : vector<8x8xf32>
    %119 = arith.subf %116, %118 : vector<8x8xf32>
    %120 = math.exp %119 : vector<8x8xf32>
    %121 = arith.subf %117, %118 : vector<8x8xf32>
    %122 = math.exp %121 : vector<8x8xf32>
    %123 = arith.addf %120, %122 : vector<8x8xf32>
    %124 = arith.divf %120, %123 : vector<8x8xf32>
    %cst_37 = arith.constant dense<0.000000e+00> : vector<8x32xf32>
    %125 = tpu.matmul %124, %76, %cst_37 {dimension_numbers = #tpu.dot_dimension_numbers<[1], [0], [0], [1], [0, 0, 1, 1], [], []>} : vector<8x8xf32>, vector<8x32xf32>, vector<8x32xf32> -> vector<8x32xf32>
    %c0_38 = arith.constant 0 : index
    %c0_39 = arith.constant 0 : index
    %126 = vector.load %arg6[%c0_38, %c0_39] : memref<32x128xf32, #tpu.memory_space<vmem>>, vector<32x128xf32>
    %cst_40 = arith.constant dense<0.000000e+00> : vector<8x128xf32>
    %127 = tpu.matmul %125, %126, %cst_40 {dimension_numbers = #tpu.dot_dimension_numbers<[1], [0], [0], [1], [0, 0, 1, 1], [], []>} : vector<8x32xf32>, vector<32x128xf32>, vector<8x128xf32> -> vector<8x128xf32>
    %128 = arith.addf %84, %127 : vector<8x128xf32>
    %129 = vector.extract_strided_slice %128 {offsets = [0, 0], sizes = [8, 32], strides = [1, 1]} : vector<8x128xf32> to vector<8x32xf32>
    %130 = arith.negf %129 : vector<8x32xf32>
    %131 = math.exp %130 : vector<8x32xf32>
    %cst_41 = arith.constant 1.000000e+00 : f32
    %132 = vector.broadcast %cst_41 : f32 to vector<8x32xf32>
    %133 = arith.addf %132, %131 : vector<8x32xf32>
    %134 = arith.divf %132, %133 : vector<8x32xf32>
    %135 = vector.extract_strided_slice %128 {offsets = [0, 32], sizes = [8, 32], strides = [1, 1]} : vector<8x128xf32> to vector<8x32xf32>
    %136 = arith.negf %135 : vector<8x32xf32>
    %137 = math.exp %136 : vector<8x32xf32>
    %cst_42 = arith.constant 1.000000e+00 : f32
    %138 = vector.broadcast %cst_42 : f32 to vector<8x32xf32>
    %139 = arith.addf %138, %137 : vector<8x32xf32>
    %140 = arith.divf %138, %139 : vector<8x32xf32>
    %141 = vector.extract_strided_slice %128 {offsets = [0, 64], sizes = [8, 32], strides = [1, 1]} : vector<8x128xf32> to vector<8x32xf32>
    %142 = math.tanh %141 : vector<8x32xf32>
    %143 = vector.extract_strided_slice %128 {offsets = [0, 96], sizes = [8, 32], strides = [1, 1]} : vector<8x128xf32> to vector<8x32xf32>
    %144 = arith.negf %143 : vector<8x32xf32>
    %145 = math.exp %144 : vector<8x32xf32>
    %cst_43 = arith.constant 1.000000e+00 : f32
    %146 = vector.broadcast %cst_43 : f32 to vector<8x32xf32>
    %147 = arith.addf %146, %145 : vector<8x32xf32>
    %148 = arith.divf %146, %147 : vector<8x32xf32>
    %149 = arith.mulf %140, %112 : vector<8x32xf32>
    %150 = arith.mulf %134, %142 : vector<8x32xf32>
    %151 = arith.addf %149, %150 : vector<8x32xf32>
    %152 = math.tanh %151 : vector<8x32xf32>
    %153 = arith.mulf %148, %152 : vector<8x32xf32>
    %154 = arith.addf %153, %0 : vector<8x32xf32>
    "tpu.trace_start"() <{level = 10 : i32, message = "se,te->st"}> : () -> ()
    %cst_44 = arith.constant dense<0.000000e+00> : vector<8x8xf32>
    %155 = tpu.matmul %76, %154, %cst_44 {dimension_numbers = #tpu.dot_dimension_numbers<[1], [1], [0], [0], [0, 0, 1, 0], [], []>} : vector<8x32xf32>, vector<8x32xf32>, vector<8x8xf32> -> vector<8x8xf32>
    %cst_45 = arith.constant dense<0.000000e+00> : vector<8x8xf32>
    %156 = tpu.matmul %79, %154, %cst_45 {dimension_numbers = #tpu.dot_dimension_numbers<[1], [1], [0], [0], [0, 0, 1, 0], [], []>} : vector<8x32xf32>, vector<8x32xf32>, vector<8x8xf32> -> vector<8x8xf32>
    "tpu.trace_stop"() : () -> ()
    %157 = arith.maximumf %155, %156 : vector<8x8xf32>
    %158 = arith.subf %155, %157 : vector<8x8xf32>
    %159 = math.exp %158 : vector<8x8xf32>
    %160 = arith.subf %156, %157 : vector<8x8xf32>
    %161 = math.exp %160 : vector<8x8xf32>
    %162 = arith.addf %159, %161 : vector<8x8xf32>
    %163 = arith.divf %159, %162 : vector<8x8xf32>
    %cst_46 = arith.constant dense<0.000000e+00> : vector<8x32xf32>
    %164 = tpu.matmul %163, %76, %cst_46 {dimension_numbers = #tpu.dot_dimension_numbers<[1], [0], [0], [1], [0, 0, 1, 1], [], []>} : vector<8x8xf32>, vector<8x32xf32>, vector<8x32xf32> -> vector<8x32xf32>
    %c0_47 = arith.constant 0 : index
    %c0_48 = arith.constant 0 : index
    %165 = vector.load %arg6[%c0_47, %c0_48] : memref<32x128xf32, #tpu.memory_space<vmem>>, vector<32x128xf32>
    %cst_49 = arith.constant dense<0.000000e+00> : vector<8x128xf32>
    %166 = tpu.matmul %164, %165, %cst_49 {dimension_numbers = #tpu.dot_dimension_numbers<[1], [0], [0], [1], [0, 0, 1, 1], [], []>} : vector<8x32xf32>, vector<32x128xf32>, vector<8x128xf32> -> vector<8x128xf32>
    %167 = arith.addf %84, %166 : vector<8x128xf32>
    %168 = vector.extract_strided_slice %167 {offsets = [0, 0], sizes = [8, 32], strides = [1, 1]} : vector<8x128xf32> to vector<8x32xf32>
    %169 = arith.negf %168 : vector<8x32xf32>
    %170 = math.exp %169 : vector<8x32xf32>
    %cst_50 = arith.constant 1.000000e+00 : f32
    %171 = vector.broadcast %cst_50 : f32 to vector<8x32xf32>
    %172 = arith.addf %171, %170 : vector<8x32xf32>
    %173 = arith.divf %171, %172 : vector<8x32xf32>
    %174 = vector.extract_strided_slice %167 {offsets = [0, 32], sizes = [8, 32], strides = [1, 1]} : vector<8x128xf32> to vector<8x32xf32>
    %175 = arith.negf %174 : vector<8x32xf32>
    %176 = math.exp %175 : vector<8x32xf32>
    %cst_51 = arith.constant 1.000000e+00 : f32
    %177 = vector.broadcast %cst_51 : f32 to vector<8x32xf32>
    %178 = arith.addf %177, %176 : vector<8x32xf32>
    %179 = arith.divf %177, %178 : vector<8x32xf32>
    %180 = vector.extract_strided_slice %167 {offsets = [0, 64], sizes = [8, 32], strides = [1, 1]} : vector<8x128xf32> to vector<8x32xf32>
    %181 = math.tanh %180 : vector<8x32xf32>
    %182 = vector.extract_strided_slice %167 {offsets = [0, 96], sizes = [8, 32], strides = [1, 1]} : vector<8x128xf32> to vector<8x32xf32>
    %183 = arith.negf %182 : vector<8x32xf32>
    %184 = math.exp %183 : vector<8x32xf32>
    %cst_52 = arith.constant 1.000000e+00 : f32
    %185 = vector.broadcast %cst_52 : f32 to vector<8x32xf32>
    %186 = arith.addf %185, %184 : vector<8x32xf32>
    %187 = arith.divf %185, %186 : vector<8x32xf32>
    %188 = arith.mulf %179, %151 : vector<8x32xf32>
    %189 = arith.mulf %173, %181 : vector<8x32xf32>
    %190 = arith.addf %188, %189 : vector<8x32xf32>
    %191 = math.tanh %190 : vector<8x32xf32>
    %192 = arith.mulf %187, %191 : vector<8x32xf32>
    %193 = arith.addf %192, %0 : vector<8x32xf32>
    "tpu.trace_start"() <{level = 10 : i32, message = "se,te->st"}> : () -> ()
    %cst_53 = arith.constant dense<0.000000e+00> : vector<8x8xf32>
    %194 = tpu.matmul %76, %193, %cst_53 {dimension_numbers = #tpu.dot_dimension_numbers<[1], [1], [0], [0], [0, 0, 1, 0], [], []>} : vector<8x32xf32>, vector<8x32xf32>, vector<8x8xf32> -> vector<8x8xf32>
    %cst_54 = arith.constant dense<0.000000e+00> : vector<8x8xf32>
    %195 = tpu.matmul %79, %193, %cst_54 {dimension_numbers = #tpu.dot_dimension_numbers<[1], [1], [0], [0], [0, 0, 1, 0], [], []>} : vector<8x32xf32>, vector<8x32xf32>, vector<8x8xf32> -> vector<8x8xf32>
    "tpu.trace_stop"() : () -> ()
    %196 = arith.maximumf %194, %195 : vector<8x8xf32>
    %197 = arith.subf %194, %196 : vector<8x8xf32>
    %198 = math.exp %197 : vector<8x8xf32>
    %199 = arith.subf %195, %196 : vector<8x8xf32>
    %200 = math.exp %199 : vector<8x8xf32>
    %201 = arith.addf %198, %200 : vector<8x8xf32>
    %202 = arith.divf %198, %201 : vector<8x8xf32>
    %cst_55 = arith.constant dense<0.000000e+00> : vector<8x32xf32>
    %203 = tpu.matmul %202, %76, %cst_55 {dimension_numbers = #tpu.dot_dimension_numbers<[1], [0], [0], [1], [0, 0, 1, 1], [], []>} : vector<8x8xf32>, vector<8x32xf32>, vector<8x32xf32> -> vector<8x32xf32>
    %c0_56 = arith.constant 0 : index
    %c0_57 = arith.constant 0 : index
    %204 = vector.load %arg6[%c0_56, %c0_57] : memref<32x128xf32, #tpu.memory_space<vmem>>, vector<32x128xf32>
    %cst_58 = arith.constant dense<0.000000e+00> : vector<8x128xf32>
    %205 = tpu.matmul %203, %204, %cst_58 {dimension_numbers = #tpu.dot_dimension_numbers<[1], [0], [0], [1], [0, 0, 1, 1], [], []>} : vector<8x32xf32>, vector<32x128xf32>, vector<8x128xf32> -> vector<8x128xf32>
    %206 = arith.addf %84, %205 : vector<8x128xf32>
    %207 = vector.extract_strided_slice %206 {offsets = [0, 0], sizes = [8, 32], strides = [1, 1]} : vector<8x128xf32> to vector<8x32xf32>
    %208 = arith.negf %207 : vector<8x32xf32>
    %209 = math.exp %208 : vector<8x32xf32>
    %cst_59 = arith.constant 1.000000e+00 : f32
    %210 = vector.broadcast %cst_59 : f32 to vector<8x32xf32>
    %211 = arith.addf %210, %209 : vector<8x32xf32>
    %212 = arith.divf %210, %211 : vector<8x32xf32>
    %213 = vector.extract_strided_slice %206 {offsets = [0, 32], sizes = [8, 32], strides = [1, 1]} : vector<8x128xf32> to vector<8x32xf32>
    %214 = arith.negf %213 : vector<8x32xf32>
    %215 = math.exp %214 : vector<8x32xf32>
    %cst_60 = arith.constant 1.000000e+00 : f32
    %216 = vector.broadcast %cst_60 : f32 to vector<8x32xf32>
    %217 = arith.addf %216, %215 : vector<8x32xf32>
    %218 = arith.divf %216, %217 : vector<8x32xf32>
    %219 = vector.extract_strided_slice %206 {offsets = [0, 64], sizes = [8, 32], strides = [1, 1]} : vector<8x128xf32> to vector<8x32xf32>
    %220 = math.tanh %219 : vector<8x32xf32>
    %221 = vector.extract_strided_slice %206 {offsets = [0, 96], sizes = [8, 32], strides = [1, 1]} : vector<8x128xf32> to vector<8x32xf32>
    %222 = arith.negf %221 : vector<8x32xf32>
    %223 = math.exp %222 : vector<8x32xf32>
    %cst_61 = arith.constant 1.000000e+00 : f32
    %224 = vector.broadcast %cst_61 : f32 to vector<8x32xf32>
    %225 = arith.addf %224, %223 : vector<8x32xf32>
    %226 = arith.divf %224, %225 : vector<8x32xf32>
    %227 = arith.mulf %218, %190 : vector<8x32xf32>
    %228 = arith.mulf %212, %220 : vector<8x32xf32>
    %229 = arith.addf %227, %228 : vector<8x32xf32>
    %230 = math.tanh %229 : vector<8x32xf32>
    %231 = arith.mulf %226, %230 : vector<8x32xf32>
    %232 = arith.addf %231, %0 : vector<8x32xf32>
    "tpu.trace_start"() <{level = 10 : i32, message = "se,te->st"}> : () -> ()
    %cst_62 = arith.constant dense<0.000000e+00> : vector<8x8xf32>
    %233 = tpu.matmul %76, %232, %cst_62 {dimension_numbers = #tpu.dot_dimension_numbers<[1], [1], [0], [0], [0, 0, 1, 0], [], []>} : vector<8x32xf32>, vector<8x32xf32>, vector<8x8xf32> -> vector<8x8xf32>
    %cst_63 = arith.constant dense<0.000000e+00> : vector<8x8xf32>
    %234 = tpu.matmul %79, %232, %cst_63 {dimension_numbers = #tpu.dot_dimension_numbers<[1], [1], [0], [0], [0, 0, 1, 0], [], []>} : vector<8x32xf32>, vector<8x32xf32>, vector<8x8xf32> -> vector<8x8xf32>
    "tpu.trace_stop"() : () -> ()
    %235 = arith.maximumf %233, %234 : vector<8x8xf32>
    %236 = arith.subf %233, %235 : vector<8x8xf32>
    %237 = math.exp %236 : vector<8x8xf32>
    %238 = arith.subf %234, %235 : vector<8x8xf32>
    %239 = math.exp %238 : vector<8x8xf32>
    %240 = arith.addf %237, %239 : vector<8x8xf32>
    %241 = arith.divf %237, %240 : vector<8x8xf32>
    %cst_64 = arith.constant dense<0.000000e+00> : vector<8x32xf32>
    %242 = tpu.matmul %241, %76, %cst_64 {dimension_numbers = #tpu.dot_dimension_numbers<[1], [0], [0], [1], [0, 0, 1, 1], [], []>} : vector<8x8xf32>, vector<8x32xf32>, vector<8x32xf32> -> vector<8x32xf32>
    %c0_65 = arith.constant 0 : index
    %c0_66 = arith.constant 0 : index
    %243 = vector.load %arg6[%c0_65, %c0_66] : memref<32x128xf32, #tpu.memory_space<vmem>>, vector<32x128xf32>
    %cst_67 = arith.constant dense<0.000000e+00> : vector<8x128xf32>
    %244 = tpu.matmul %242, %243, %cst_67 {dimension_numbers = #tpu.dot_dimension_numbers<[1], [0], [0], [1], [0, 0, 1, 1], [], []>} : vector<8x32xf32>, vector<32x128xf32>, vector<8x128xf32> -> vector<8x128xf32>
    %245 = arith.addf %84, %244 : vector<8x128xf32>
    %246 = vector.extract_strided_slice %245 {offsets = [0, 0], sizes = [8, 32], strides = [1, 1]} : vector<8x128xf32> to vector<8x32xf32>
    %247 = arith.negf %246 : vector<8x32xf32>
    %248 = math.exp %247 : vector<8x32xf32>
    %cst_68 = arith.constant 1.000000e+00 : f32
    %249 = vector.broadcast %cst_68 : f32 to vector<8x32xf32>
    %250 = arith.addf %249, %248 : vector<8x32xf32>
    %251 = arith.divf %249, %250 : vector<8x32xf32>
    %252 = vector.extract_strided_slice %245 {offsets = [0, 32], sizes = [8, 32], strides = [1, 1]} : vector<8x128xf32> to vector<8x32xf32>
    %253 = arith.negf %252 : vector<8x32xf32>
    %254 = math.exp %253 : vector<8x32xf32>
    %cst_69 = arith.constant 1.000000e+00 : f32
    %255 = vector.broadcast %cst_69 : f32 to vector<8x32xf32>
    %256 = arith.addf %255, %254 : vector<8x32xf32>
    %257 = arith.divf %255, %256 : vector<8x32xf32>
    %258 = vector.extract_strided_slice %245 {offsets = [0, 64], sizes = [8, 32], strides = [1, 1]} : vector<8x128xf32> to vector<8x32xf32>
    %259 = math.tanh %258 : vector<8x32xf32>
    %260 = vector.extract_strided_slice %245 {offsets = [0, 96], sizes = [8, 32], strides = [1, 1]} : vector<8x128xf32> to vector<8x32xf32>
    %261 = arith.negf %260 : vector<8x32xf32>
    %262 = math.exp %261 : vector<8x32xf32>
    %cst_70 = arith.constant 1.000000e+00 : f32
    %263 = vector.broadcast %cst_70 : f32 to vector<8x32xf32>
    %264 = arith.addf %263, %262 : vector<8x32xf32>
    %265 = arith.divf %263, %264 : vector<8x32xf32>
    %266 = arith.mulf %257, %229 : vector<8x32xf32>
    %267 = arith.mulf %251, %259 : vector<8x32xf32>
    %268 = arith.addf %266, %267 : vector<8x32xf32>
    %269 = math.tanh %268 : vector<8x32xf32>
    %270 = arith.mulf %265, %269 : vector<8x32xf32>
    %271 = arith.addf %270, %0 : vector<8x32xf32>
    "tpu.trace_start"() <{level = 10 : i32, message = "se,te->st"}> : () -> ()
    %cst_71 = arith.constant dense<0.000000e+00> : vector<8x8xf32>
    %272 = tpu.matmul %76, %271, %cst_71 {dimension_numbers = #tpu.dot_dimension_numbers<[1], [1], [0], [0], [0, 0, 1, 0], [], []>} : vector<8x32xf32>, vector<8x32xf32>, vector<8x8xf32> -> vector<8x8xf32>
    %cst_72 = arith.constant dense<0.000000e+00> : vector<8x8xf32>
    %273 = tpu.matmul %79, %271, %cst_72 {dimension_numbers = #tpu.dot_dimension_numbers<[1], [1], [0], [0], [0, 0, 1, 0], [], []>} : vector<8x32xf32>, vector<8x32xf32>, vector<8x8xf32> -> vector<8x8xf32>
    "tpu.trace_stop"() : () -> ()
    %274 = arith.maximumf %272, %273 : vector<8x8xf32>
    %275 = arith.subf %272, %274 : vector<8x8xf32>
    %276 = math.exp %275 : vector<8x8xf32>
    %277 = arith.subf %273, %274 : vector<8x8xf32>
    %278 = math.exp %277 : vector<8x8xf32>
    %279 = arith.addf %276, %278 : vector<8x8xf32>
    %280 = arith.divf %276, %279 : vector<8x8xf32>
    %cst_73 = arith.constant dense<0.000000e+00> : vector<8x32xf32>
    %281 = tpu.matmul %280, %76, %cst_73 {dimension_numbers = #tpu.dot_dimension_numbers<[1], [0], [0], [1], [0, 0, 1, 1], [], []>} : vector<8x8xf32>, vector<8x32xf32>, vector<8x32xf32> -> vector<8x32xf32>
    %c0_74 = arith.constant 0 : index
    %c0_75 = arith.constant 0 : index
    %282 = vector.load %arg6[%c0_74, %c0_75] : memref<32x128xf32, #tpu.memory_space<vmem>>, vector<32x128xf32>
    %cst_76 = arith.constant dense<0.000000e+00> : vector<8x128xf32>
    %283 = tpu.matmul %281, %282, %cst_76 {dimension_numbers = #tpu.dot_dimension_numbers<[1], [0], [0], [1], [0, 0, 1, 1], [], []>} : vector<8x32xf32>, vector<32x128xf32>, vector<8x128xf32> -> vector<8x128xf32>
    %284 = arith.addf %84, %283 : vector<8x128xf32>
    %285 = vector.extract_strided_slice %284 {offsets = [0, 0], sizes = [8, 32], strides = [1, 1]} : vector<8x128xf32> to vector<8x32xf32>
    %286 = arith.negf %285 : vector<8x32xf32>
    %287 = math.exp %286 : vector<8x32xf32>
    %cst_77 = arith.constant 1.000000e+00 : f32
    %288 = vector.broadcast %cst_77 : f32 to vector<8x32xf32>
    %289 = arith.addf %288, %287 : vector<8x32xf32>
    %290 = arith.divf %288, %289 : vector<8x32xf32>
    %291 = vector.extract_strided_slice %284 {offsets = [0, 32], sizes = [8, 32], strides = [1, 1]} : vector<8x128xf32> to vector<8x32xf32>
    %292 = arith.negf %291 : vector<8x32xf32>
    %293 = math.exp %292 : vector<8x32xf32>
    %cst_78 = arith.constant 1.000000e+00 : f32
    %294 = vector.broadcast %cst_78 : f32 to vector<8x32xf32>
    %295 = arith.addf %294, %293 : vector<8x32xf32>
    %296 = arith.divf %294, %295 : vector<8x32xf32>
    %297 = vector.extract_strided_slice %284 {offsets = [0, 64], sizes = [8, 32], strides = [1, 1]} : vector<8x128xf32> to vector<8x32xf32>
    %298 = math.tanh %297 : vector<8x32xf32>
    %299 = vector.extract_strided_slice %284 {offsets = [0, 96], sizes = [8, 32], strides = [1, 1]} : vector<8x128xf32> to vector<8x32xf32>
    %300 = arith.negf %299 : vector<8x32xf32>
    %301 = math.exp %300 : vector<8x32xf32>
    %cst_79 = arith.constant 1.000000e+00 : f32
    %302 = vector.broadcast %cst_79 : f32 to vector<8x32xf32>
    %303 = arith.addf %302, %301 : vector<8x32xf32>
    %304 = arith.divf %302, %303 : vector<8x32xf32>
    %305 = arith.mulf %296, %268 : vector<8x32xf32>
    %306 = arith.mulf %290, %298 : vector<8x32xf32>
    %307 = arith.addf %305, %306 : vector<8x32xf32>
    %308 = math.tanh %307 : vector<8x32xf32>
    %309 = arith.mulf %304, %308 : vector<8x32xf32>
    %310 = arith.addf %309, %0 : vector<8x32xf32>
    "tpu.trace_start"() <{level = 10 : i32, message = "se,te->st"}> : () -> ()
    %cst_80 = arith.constant dense<0.000000e+00> : vector<8x8xf32>
    %311 = tpu.matmul %76, %310, %cst_80 {dimension_numbers = #tpu.dot_dimension_numbers<[1], [1], [0], [0], [0, 0, 1, 0], [], []>} : vector<8x32xf32>, vector<8x32xf32>, vector<8x8xf32> -> vector<8x8xf32>
    %cst_81 = arith.constant dense<0.000000e+00> : vector<8x8xf32>
    %312 = tpu.matmul %79, %310, %cst_81 {dimension_numbers = #tpu.dot_dimension_numbers<[1], [1], [0], [0], [0, 0, 1, 0], [], []>} : vector<8x32xf32>, vector<8x32xf32>, vector<8x8xf32> -> vector<8x8xf32>
    "tpu.trace_stop"() : () -> ()
    %313 = arith.maximumf %311, %312 : vector<8x8xf32>
    %314 = arith.subf %311, %313 : vector<8x8xf32>
    %315 = math.exp %314 : vector<8x8xf32>
    %316 = arith.subf %312, %313 : vector<8x8xf32>
    %317 = math.exp %316 : vector<8x8xf32>
    %318 = arith.addf %315, %317 : vector<8x8xf32>
    %319 = arith.divf %315, %318 : vector<8x8xf32>
    %cst_82 = arith.constant dense<0.000000e+00> : vector<8x32xf32>
    %320 = tpu.matmul %319, %76, %cst_82 {dimension_numbers = #tpu.dot_dimension_numbers<[1], [0], [0], [1], [0, 0, 1, 1], [], []>} : vector<8x8xf32>, vector<8x32xf32>, vector<8x32xf32> -> vector<8x32xf32>
    %c0_83 = arith.constant 0 : index
    %c0_84 = arith.constant 0 : index
    %321 = vector.load %arg6[%c0_83, %c0_84] : memref<32x128xf32, #tpu.memory_space<vmem>>, vector<32x128xf32>
    %cst_85 = arith.constant dense<0.000000e+00> : vector<8x128xf32>
    %322 = tpu.matmul %320, %321, %cst_85 {dimension_numbers = #tpu.dot_dimension_numbers<[1], [0], [0], [1], [0, 0, 1, 1], [], []>} : vector<8x32xf32>, vector<32x128xf32>, vector<8x128xf32> -> vector<8x128xf32>
    %323 = arith.addf %84, %322 : vector<8x128xf32>
    %324 = vector.extract_strided_slice %323 {offsets = [0, 0], sizes = [8, 32], strides = [1, 1]} : vector<8x128xf32> to vector<8x32xf32>
    %325 = arith.negf %324 : vector<8x32xf32>
    %326 = math.exp %325 : vector<8x32xf32>
    %cst_86 = arith.constant 1.000000e+00 : f32
    %327 = vector.broadcast %cst_86 : f32 to vector<8x32xf32>
    %328 = arith.addf %327, %326 : vector<8x32xf32>
    %329 = arith.divf %327, %328 : vector<8x32xf32>
    %330 = vector.extract_strided_slice %323 {offsets = [0, 32], sizes = [8, 32], strides = [1, 1]} : vector<8x128xf32> to vector<8x32xf32>
    %331 = arith.negf %330 : vector<8x32xf32>
    %332 = math.exp %331 : vector<8x32xf32>
    %cst_87 = arith.constant 1.000000e+00 : f32
    %333 = vector.broadcast %cst_87 : f32 to vector<8x32xf32>
    %334 = arith.addf %333, %332 : vector<8x32xf32>
    %335 = arith.divf %333, %334 : vector<8x32xf32>
    %336 = vector.extract_strided_slice %323 {offsets = [0, 64], sizes = [8, 32], strides = [1, 1]} : vector<8x128xf32> to vector<8x32xf32>
    %337 = math.tanh %336 : vector<8x32xf32>
    %338 = vector.extract_strided_slice %323 {offsets = [0, 96], sizes = [8, 32], strides = [1, 1]} : vector<8x128xf32> to vector<8x32xf32>
    %339 = arith.negf %338 : vector<8x32xf32>
    %340 = math.exp %339 : vector<8x32xf32>
    %cst_88 = arith.constant 1.000000e+00 : f32
    %341 = vector.broadcast %cst_88 : f32 to vector<8x32xf32>
    %342 = arith.addf %341, %340 : vector<8x32xf32>
    %343 = arith.divf %341, %342 : vector<8x32xf32>
    %344 = arith.mulf %335, %307 : vector<8x32xf32>
    %345 = arith.mulf %329, %337 : vector<8x32xf32>
    %346 = arith.addf %344, %345 : vector<8x32xf32>
    %347 = math.tanh %346 : vector<8x32xf32>
    %348 = arith.mulf %343, %347 : vector<8x32xf32>
    %349 = arith.addf %348, %0 : vector<8x32xf32>
    "tpu.trace_start"() <{level = 10 : i32, message = "se,te->st"}> : () -> ()
    %cst_89 = arith.constant dense<0.000000e+00> : vector<8x8xf32>
    %350 = tpu.matmul %76, %349, %cst_89 {dimension_numbers = #tpu.dot_dimension_numbers<[1], [1], [0], [0], [0, 0, 1, 0], [], []>} : vector<8x32xf32>, vector<8x32xf32>, vector<8x8xf32> -> vector<8x8xf32>
    %cst_90 = arith.constant dense<0.000000e+00> : vector<8x8xf32>
    %351 = tpu.matmul %79, %349, %cst_90 {dimension_numbers = #tpu.dot_dimension_numbers<[1], [1], [0], [0], [0, 0, 1, 0], [], []>} : vector<8x32xf32>, vector<8x32xf32>, vector<8x8xf32> -> vector<8x8xf32>
    "tpu.trace_stop"() : () -> ()
    %352 = arith.maximumf %350, %351 : vector<8x8xf32>
    %353 = arith.subf %350, %352 : vector<8x8xf32>
    %354 = math.exp %353 : vector<8x8xf32>
    %355 = arith.subf %351, %352 : vector<8x8xf32>
    %356 = math.exp %355 : vector<8x8xf32>
    %357 = arith.addf %354, %356 : vector<8x8xf32>
    %358 = arith.divf %354, %357 : vector<8x8xf32>
    %cst_91 = arith.constant dense<0.000000e+00> : vector<8x32xf32>
    %359 = tpu.matmul %358, %76, %cst_91 {dimension_numbers = #tpu.dot_dimension_numbers<[1], [0], [0], [1], [0, 0, 1, 1], [], []>} : vector<8x8xf32>, vector<8x32xf32>, vector<8x32xf32> -> vector<8x32xf32>
    %c0_92 = arith.constant 0 : index
    %c0_93 = arith.constant 0 : index
    %360 = vector.load %arg6[%c0_92, %c0_93] : memref<32x128xf32, #tpu.memory_space<vmem>>, vector<32x128xf32>
    %cst_94 = arith.constant dense<0.000000e+00> : vector<8x128xf32>
    %361 = tpu.matmul %359, %360, %cst_94 {dimension_numbers = #tpu.dot_dimension_numbers<[1], [0], [0], [1], [0, 0, 1, 1], [], []>} : vector<8x32xf32>, vector<32x128xf32>, vector<8x128xf32> -> vector<8x128xf32>
    %362 = arith.addf %84, %361 : vector<8x128xf32>
    %363 = vector.extract_strided_slice %362 {offsets = [0, 0], sizes = [8, 32], strides = [1, 1]} : vector<8x128xf32> to vector<8x32xf32>
    %364 = arith.negf %363 : vector<8x32xf32>
    %365 = math.exp %364 : vector<8x32xf32>
    %cst_95 = arith.constant 1.000000e+00 : f32
    %366 = vector.broadcast %cst_95 : f32 to vector<8x32xf32>
    %367 = arith.addf %366, %365 : vector<8x32xf32>
    %368 = arith.divf %366, %367 : vector<8x32xf32>
    %369 = vector.extract_strided_slice %362 {offsets = [0, 32], sizes = [8, 32], strides = [1, 1]} : vector<8x128xf32> to vector<8x32xf32>
    %370 = arith.negf %369 : vector<8x32xf32>
    %371 = math.exp %370 : vector<8x32xf32>
    %cst_96 = arith.constant 1.000000e+00 : f32
    %372 = vector.broadcast %cst_96 : f32 to vector<8x32xf32>
    %373 = arith.addf %372, %371 : vector<8x32xf32>
    %374 = arith.divf %372, %373 : vector<8x32xf32>
    %375 = vector.extract_strided_slice %362 {offsets = [0, 64], sizes = [8, 32], strides = [1, 1]} : vector<8x128xf32> to vector<8x32xf32>
    %376 = math.tanh %375 : vector<8x32xf32>
    %377 = vector.extract_strided_slice %362 {offsets = [0, 96], sizes = [8, 32], strides = [1, 1]} : vector<8x128xf32> to vector<8x32xf32>
    %378 = arith.negf %377 : vector<8x32xf32>
    %379 = math.exp %378 : vector<8x32xf32>
    %cst_97 = arith.constant 1.000000e+00 : f32
    %380 = vector.broadcast %cst_97 : f32 to vector<8x32xf32>
    %381 = arith.addf %380, %379 : vector<8x32xf32>
    %382 = arith.divf %380, %381 : vector<8x32xf32>
    %383 = arith.mulf %374, %346 : vector<8x32xf32>
    %384 = arith.mulf %368, %376 : vector<8x32xf32>
    %385 = arith.addf %383, %384 : vector<8x32xf32>
    %386 = math.tanh %385 : vector<8x32xf32>
    %387 = arith.mulf %382, %386 : vector<8x32xf32>
    %388 = arith.addf %387, %0 : vector<8x32xf32>
    "tpu.trace_start"() <{level = 10 : i32, message = "se,te->st"}> : () -> ()
    %cst_98 = arith.constant dense<0.000000e+00> : vector<8x8xf32>
    %389 = tpu.matmul %76, %388, %cst_98 {dimension_numbers = #tpu.dot_dimension_numbers<[1], [1], [0], [0], [0, 0, 1, 0], [], []>} : vector<8x32xf32>, vector<8x32xf32>, vector<8x8xf32> -> vector<8x8xf32>
    %cst_99 = arith.constant dense<0.000000e+00> : vector<8x8xf32>
    %390 = tpu.matmul %79, %388, %cst_99 {dimension_numbers = #tpu.dot_dimension_numbers<[1], [1], [0], [0], [0, 0, 1, 0], [], []>} : vector<8x32xf32>, vector<8x32xf32>, vector<8x8xf32> -> vector<8x8xf32>
    "tpu.trace_stop"() : () -> ()
    %391 = arith.maximumf %389, %390 : vector<8x8xf32>
    %392 = arith.subf %389, %391 : vector<8x8xf32>
    %393 = math.exp %392 : vector<8x8xf32>
    %394 = arith.subf %390, %391 : vector<8x8xf32>
    %395 = math.exp %394 : vector<8x8xf32>
    %396 = arith.addf %393, %395 : vector<8x8xf32>
    %397 = arith.divf %393, %396 : vector<8x8xf32>
    %cst_100 = arith.constant dense<0.000000e+00> : vector<8x32xf32>
    %398 = tpu.matmul %397, %76, %cst_100 {dimension_numbers = #tpu.dot_dimension_numbers<[1], [0], [0], [1], [0, 0, 1, 1], [], []>} : vector<8x8xf32>, vector<8x32xf32>, vector<8x32xf32> -> vector<8x32xf32>
    %c0_101 = arith.constant 0 : index
    %c0_102 = arith.constant 0 : index
    %399 = vector.load %arg6[%c0_101, %c0_102] : memref<32x128xf32, #tpu.memory_space<vmem>>, vector<32x128xf32>
    %cst_103 = arith.constant dense<0.000000e+00> : vector<8x128xf32>
    %400 = tpu.matmul %398, %399, %cst_103 {dimension_numbers = #tpu.dot_dimension_numbers<[1], [0], [0], [1], [0, 0, 1, 1], [], []>} : vector<8x32xf32>, vector<32x128xf32>, vector<8x128xf32> -> vector<8x128xf32>
    %401 = arith.addf %84, %400 : vector<8x128xf32>
    %402 = vector.extract_strided_slice %401 {offsets = [0, 0], sizes = [8, 32], strides = [1, 1]} : vector<8x128xf32> to vector<8x32xf32>
    %403 = arith.negf %402 : vector<8x32xf32>
    %404 = math.exp %403 : vector<8x32xf32>
    %cst_104 = arith.constant 1.000000e+00 : f32
    %405 = vector.broadcast %cst_104 : f32 to vector<8x32xf32>
    %406 = arith.addf %405, %404 : vector<8x32xf32>
    %407 = arith.divf %405, %406 : vector<8x32xf32>
    %408 = vector.extract_strided_slice %401 {offsets = [0, 32], sizes = [8, 32], strides = [1, 1]} : vector<8x128xf32> to vector<8x32xf32>
    %409 = arith.negf %408 : vector<8x32xf32>
    %410 = math.exp %409 : vector<8x32xf32>
    %cst_105 = arith.constant 1.000000e+00 : f32
    %411 = vector.broadcast %cst_105 : f32 to vector<8x32xf32>
    %412 = arith.addf %411, %410 : vector<8x32xf32>
    %413 = arith.divf %411, %412 : vector<8x32xf32>
    %414 = vector.extract_strided_slice %401 {offsets = [0, 64], sizes = [8, 32], strides = [1, 1]} : vector<8x128xf32> to vector<8x32xf32>
    %415 = math.tanh %414 : vector<8x32xf32>
    %416 = vector.extract_strided_slice %401 {offsets = [0, 96], sizes = [8, 32], strides = [1, 1]} : vector<8x128xf32> to vector<8x32xf32>
    %417 = arith.negf %416 : vector<8x32xf32>
    %418 = math.exp %417 : vector<8x32xf32>
    %cst_106 = arith.constant 1.000000e+00 : f32
    %419 = vector.broadcast %cst_106 : f32 to vector<8x32xf32>
    %420 = arith.addf %419, %418 : vector<8x32xf32>
    %421 = arith.divf %419, %420 : vector<8x32xf32>
    %422 = arith.mulf %413, %385 : vector<8x32xf32>
    %423 = arith.mulf %407, %415 : vector<8x32xf32>
    %424 = arith.addf %422, %423 : vector<8x32xf32>
    %425 = math.tanh %424 : vector<8x32xf32>
    %426 = arith.mulf %421, %425 : vector<8x32xf32>
    %427 = arith.addf %426, %0 : vector<8x32xf32>
    "tpu.trace_start"() <{level = 10 : i32, message = "se,te->st"}> : () -> ()
    %cst_107 = arith.constant dense<0.000000e+00> : vector<8x8xf32>
    %428 = tpu.matmul %76, %427, %cst_107 {dimension_numbers = #tpu.dot_dimension_numbers<[1], [1], [0], [0], [0, 0, 1, 0], [], []>} : vector<8x32xf32>, vector<8x32xf32>, vector<8x8xf32> -> vector<8x8xf32>
    %cst_108 = arith.constant dense<0.000000e+00> : vector<8x8xf32>
    %429 = tpu.matmul %79, %427, %cst_108 {dimension_numbers = #tpu.dot_dimension_numbers<[1], [1], [0], [0], [0, 0, 1, 0], [], []>} : vector<8x32xf32>, vector<8x32xf32>, vector<8x8xf32> -> vector<8x8xf32>
    "tpu.trace_stop"() : () -> ()
    %430 = arith.maximumf %428, %429 : vector<8x8xf32>
    %431 = arith.subf %428, %430 : vector<8x8xf32>
    %432 = math.exp %431 : vector<8x8xf32>
    %433 = arith.subf %429, %430 : vector<8x8xf32>
    %434 = math.exp %433 : vector<8x8xf32>
    %435 = arith.addf %432, %434 : vector<8x8xf32>
    %436 = arith.divf %432, %435 : vector<8x8xf32>
    %cst_109 = arith.constant dense<0.000000e+00> : vector<8x32xf32>
    %437 = tpu.matmul %436, %76, %cst_109 {dimension_numbers = #tpu.dot_dimension_numbers<[1], [0], [0], [1], [0, 0, 1, 1], [], []>} : vector<8x8xf32>, vector<8x32xf32>, vector<8x32xf32> -> vector<8x32xf32>
    %c0_110 = arith.constant 0 : index
    %c0_111 = arith.constant 0 : index
    %438 = vector.load %arg6[%c0_110, %c0_111] : memref<32x128xf32, #tpu.memory_space<vmem>>, vector<32x128xf32>
    %cst_112 = arith.constant dense<0.000000e+00> : vector<8x128xf32>
    %439 = tpu.matmul %437, %438, %cst_112 {dimension_numbers = #tpu.dot_dimension_numbers<[1], [0], [0], [1], [0, 0, 1, 1], [], []>} : vector<8x32xf32>, vector<32x128xf32>, vector<8x128xf32> -> vector<8x128xf32>
    %440 = arith.addf %84, %439 : vector<8x128xf32>
    %441 = vector.extract_strided_slice %440 {offsets = [0, 0], sizes = [8, 32], strides = [1, 1]} : vector<8x128xf32> to vector<8x32xf32>
    %442 = arith.negf %441 : vector<8x32xf32>
    %443 = math.exp %442 : vector<8x32xf32>
    %cst_113 = arith.constant 1.000000e+00 : f32
    %444 = vector.broadcast %cst_113 : f32 to vector<8x32xf32>
    %445 = arith.addf %444, %443 : vector<8x32xf32>
    %446 = arith.divf %444, %445 : vector<8x32xf32>
    %447 = vector.extract_strided_slice %440 {offsets = [0, 32], sizes = [8, 32], strides = [1, 1]} : vector<8x128xf32> to vector<8x32xf32>
    %448 = arith.negf %447 : vector<8x32xf32>
    %449 = math.exp %448 : vector<8x32xf32>
    %cst_114 = arith.constant 1.000000e+00 : f32
    %450 = vector.broadcast %cst_114 : f32 to vector<8x32xf32>
    %451 = arith.addf %450, %449 : vector<8x32xf32>
    %452 = arith.divf %450, %451 : vector<8x32xf32>
    %453 = vector.extract_strided_slice %440 {offsets = [0, 64], sizes = [8, 32], strides = [1, 1]} : vector<8x128xf32> to vector<8x32xf32>
    %454 = math.tanh %453 : vector<8x32xf32>
    %455 = vector.extract_strided_slice %440 {offsets = [0, 96], sizes = [8, 32], strides = [1, 1]} : vector<8x128xf32> to vector<8x32xf32>
    %456 = arith.negf %455 : vector<8x32xf32>
    %457 = math.exp %456 : vector<8x32xf32>
    %cst_115 = arith.constant 1.000000e+00 : f32
    %458 = vector.broadcast %cst_115 : f32 to vector<8x32xf32>
    %459 = arith.addf %458, %457 : vector<8x32xf32>
    %460 = arith.divf %458, %459 : vector<8x32xf32>
    %461 = arith.mulf %452, %424 : vector<8x32xf32>
    %462 = arith.mulf %446, %454 : vector<8x32xf32>
    %463 = arith.addf %461, %462 : vector<8x32xf32>
    %464 = math.tanh %463 : vector<8x32xf32>
    %465 = arith.mulf %460, %464 : vector<8x32xf32>
    %466 = arith.addf %465, %0 : vector<8x32xf32>
    "tpu.trace_start"() <{level = 10 : i32, message = "se,te->st"}> : () -> ()
    %cst_116 = arith.constant dense<0.000000e+00> : vector<8x8xf32>
    %467 = tpu.matmul %76, %466, %cst_116 {dimension_numbers = #tpu.dot_dimension_numbers<[1], [1], [0], [0], [0, 0, 1, 0], [], []>} : vector<8x32xf32>, vector<8x32xf32>, vector<8x8xf32> -> vector<8x8xf32>
    %cst_117 = arith.constant dense<0.000000e+00> : vector<8x8xf32>
    %468 = tpu.matmul %79, %466, %cst_117 {dimension_numbers = #tpu.dot_dimension_numbers<[1], [1], [0], [0], [0, 0, 1, 0], [], []>} : vector<8x32xf32>, vector<8x32xf32>, vector<8x8xf32> -> vector<8x8xf32>
    "tpu.trace_stop"() : () -> ()
    %469 = arith.maximumf %467, %468 : vector<8x8xf32>
    %470 = arith.subf %467, %469 : vector<8x8xf32>
    %471 = math.exp %470 : vector<8x8xf32>
    %472 = arith.subf %468, %469 : vector<8x8xf32>
    %473 = math.exp %472 : vector<8x8xf32>
    %474 = arith.addf %471, %473 : vector<8x8xf32>
    %475 = arith.divf %471, %474 : vector<8x8xf32>
    %cst_118 = arith.constant dense<0.000000e+00> : vector<8x32xf32>
    %476 = tpu.matmul %475, %76, %cst_118 {dimension_numbers = #tpu.dot_dimension_numbers<[1], [0], [0], [1], [0, 0, 1, 1], [], []>} : vector<8x8xf32>, vector<8x32xf32>, vector<8x32xf32> -> vector<8x32xf32>
    %c0_119 = arith.constant 0 : index
    %c0_120 = arith.constant 0 : index
    %477 = vector.load %arg6[%c0_119, %c0_120] : memref<32x128xf32, #tpu.memory_space<vmem>>, vector<32x128xf32>
    %cst_121 = arith.constant dense<0.000000e+00> : vector<8x128xf32>
    %478 = tpu.matmul %476, %477, %cst_121 {dimension_numbers = #tpu.dot_dimension_numbers<[1], [0], [0], [1], [0, 0, 1, 1], [], []>} : vector<8x32xf32>, vector<32x128xf32>, vector<8x128xf32> -> vector<8x128xf32>
    %479 = arith.addf %84, %478 : vector<8x128xf32>
    %480 = vector.extract_strided_slice %479 {offsets = [0, 0], sizes = [8, 32], strides = [1, 1]} : vector<8x128xf32> to vector<8x32xf32>
    %481 = arith.negf %480 : vector<8x32xf32>
    %482 = math.exp %481 : vector<8x32xf32>
    %cst_122 = arith.constant 1.000000e+00 : f32
    %483 = vector.broadcast %cst_122 : f32 to vector<8x32xf32>
    %484 = arith.addf %483, %482 : vector<8x32xf32>
    %485 = arith.divf %483, %484 : vector<8x32xf32>
    %486 = vector.extract_strided_slice %479 {offsets = [0, 32], sizes = [8, 32], strides = [1, 1]} : vector<8x128xf32> to vector<8x32xf32>
    %487 = arith.negf %486 : vector<8x32xf32>
    %488 = math.exp %487 : vector<8x32xf32>
    %cst_123 = arith.constant 1.000000e+00 : f32
    %489 = vector.broadcast %cst_123 : f32 to vector<8x32xf32>
    %490 = arith.addf %489, %488 : vector<8x32xf32>
    %491 = arith.divf %489, %490 : vector<8x32xf32>
    %492 = vector.extract_strided_slice %479 {offsets = [0, 64], sizes = [8, 32], strides = [1, 1]} : vector<8x128xf32> to vector<8x32xf32>
    %493 = math.tanh %492 : vector<8x32xf32>
    %494 = vector.extract_strided_slice %479 {offsets = [0, 96], sizes = [8, 32], strides = [1, 1]} : vector<8x128xf32> to vector<8x32xf32>
    %495 = arith.negf %494 : vector<8x32xf32>
    %496 = math.exp %495 : vector<8x32xf32>
    %cst_124 = arith.constant 1.000000e+00 : f32
    %497 = vector.broadcast %cst_124 : f32 to vector<8x32xf32>
    %498 = arith.addf %497, %496 : vector<8x32xf32>
    %499 = arith.divf %497, %498 : vector<8x32xf32>
    %500 = arith.mulf %491, %463 : vector<8x32xf32>
    %501 = arith.mulf %485, %493 : vector<8x32xf32>
    %502 = arith.addf %500, %501 : vector<8x32xf32>
    %503 = math.tanh %502 : vector<8x32xf32>
    %504 = arith.mulf %499, %503 : vector<8x32xf32>
    %505 = arith.addf %504, %0 : vector<8x32xf32>
    "tpu.trace_start"() <{level = 10 : i32, message = "se,te->st"}> : () -> ()
    %cst_125 = arith.constant dense<0.000000e+00> : vector<8x8xf32>
    %506 = tpu.matmul %76, %505, %cst_125 {dimension_numbers = #tpu.dot_dimension_numbers<[1], [1], [0], [0], [0, 0, 1, 0], [], []>} : vector<8x32xf32>, vector<8x32xf32>, vector<8x8xf32> -> vector<8x8xf32>
    %cst_126 = arith.constant dense<0.000000e+00> : vector<8x8xf32>
    %507 = tpu.matmul %79, %505, %cst_126 {dimension_numbers = #tpu.dot_dimension_numbers<[1], [1], [0], [0], [0, 0, 1, 0], [], []>} : vector<8x32xf32>, vector<8x32xf32>, vector<8x8xf32> -> vector<8x8xf32>
    "tpu.trace_stop"() : () -> ()
    %508 = arith.maximumf %506, %507 : vector<8x8xf32>
    %509 = arith.subf %506, %508 : vector<8x8xf32>
    %510 = math.exp %509 : vector<8x8xf32>
    %511 = arith.subf %507, %508 : vector<8x8xf32>
    %512 = math.exp %511 : vector<8x8xf32>
    %513 = arith.addf %510, %512 : vector<8x8xf32>
    %514 = arith.divf %510, %513 : vector<8x8xf32>
    %cst_127 = arith.constant dense<0.000000e+00> : vector<8x32xf32>
    %515 = tpu.matmul %514, %76, %cst_127 {dimension_numbers = #tpu.dot_dimension_numbers<[1], [0], [0], [1], [0, 0, 1, 1], [], []>} : vector<8x8xf32>, vector<8x32xf32>, vector<8x32xf32> -> vector<8x32xf32>
    %c0_128 = arith.constant 0 : index
    %c0_129 = arith.constant 0 : index
    %516 = vector.load %arg6[%c0_128, %c0_129] : memref<32x128xf32, #tpu.memory_space<vmem>>, vector<32x128xf32>
    %cst_130 = arith.constant dense<0.000000e+00> : vector<8x128xf32>
    %517 = tpu.matmul %515, %516, %cst_130 {dimension_numbers = #tpu.dot_dimension_numbers<[1], [0], [0], [1], [0, 0, 1, 1], [], []>} : vector<8x32xf32>, vector<32x128xf32>, vector<8x128xf32> -> vector<8x128xf32>
    %518 = arith.addf %84, %517 : vector<8x128xf32>
    %519 = vector.extract_strided_slice %518 {offsets = [0, 0], sizes = [8, 32], strides = [1, 1]} : vector<8x128xf32> to vector<8x32xf32>
    %520 = arith.negf %519 : vector<8x32xf32>
    %521 = math.exp %520 : vector<8x32xf32>
    %cst_131 = arith.constant 1.000000e+00 : f32
    %522 = vector.broadcast %cst_131 : f32 to vector<8x32xf32>
    %523 = arith.addf %522, %521 : vector<8x32xf32>
    %524 = arith.divf %522, %523 : vector<8x32xf32>
    %525 = vector.extract_strided_slice %518 {offsets = [0, 32], sizes = [8, 32], strides = [1, 1]} : vector<8x128xf32> to vector<8x32xf32>
    %526 = arith.negf %525 : vector<8x32xf32>
    %527 = math.exp %526 : vector<8x32xf32>
    %cst_132 = arith.constant 1.000000e+00 : f32
    %528 = vector.broadcast %cst_132 : f32 to vector<8x32xf32>
    %529 = arith.addf %528, %527 : vector<8x32xf32>
    %530 = arith.divf %528, %529 : vector<8x32xf32>
    %531 = vector.extract_strided_slice %518 {offsets = [0, 64], sizes = [8, 32], strides = [1, 1]} : vector<8x128xf32> to vector<8x32xf32>
    %532 = math.tanh %531 : vector<8x32xf32>
    %533 = vector.extract_strided_slice %518 {offsets = [0, 96], sizes = [8, 32], strides = [1, 1]} : vector<8x128xf32> to vector<8x32xf32>
    %534 = arith.negf %533 : vector<8x32xf32>
    %535 = math.exp %534 : vector<8x32xf32>
    %cst_133 = arith.constant 1.000000e+00 : f32
    %536 = vector.broadcast %cst_133 : f32 to vector<8x32xf32>
    %537 = arith.addf %536, %535 : vector<8x32xf32>
    %538 = arith.divf %536, %537 : vector<8x32xf32>
    %539 = arith.mulf %530, %502 : vector<8x32xf32>
    %540 = arith.mulf %524, %532 : vector<8x32xf32>
    %541 = arith.addf %539, %540 : vector<8x32xf32>
    %542 = math.tanh %541 : vector<8x32xf32>
    %543 = arith.mulf %538, %542 : vector<8x32xf32>
    %544 = arith.addf %543, %0 : vector<8x32xf32>
    "tpu.trace_start"() <{level = 10 : i32, message = "se,te->st"}> : () -> ()
    %cst_134 = arith.constant dense<0.000000e+00> : vector<8x8xf32>
    %545 = tpu.matmul %76, %544, %cst_134 {dimension_numbers = #tpu.dot_dimension_numbers<[1], [1], [0], [0], [0, 0, 1, 0], [], []>} : vector<8x32xf32>, vector<8x32xf32>, vector<8x8xf32> -> vector<8x8xf32>
    %cst_135 = arith.constant dense<0.000000e+00> : vector<8x8xf32>
    %546 = tpu.matmul %79, %544, %cst_135 {dimension_numbers = #tpu.dot_dimension_numbers<[1], [1], [0], [0], [0, 0, 1, 0], [], []>} : vector<8x32xf32>, vector<8x32xf32>, vector<8x8xf32> -> vector<8x8xf32>
    "tpu.trace_stop"() : () -> ()
    %547 = arith.maximumf %545, %546 : vector<8x8xf32>
    %548 = arith.subf %545, %547 : vector<8x8xf32>
    %549 = math.exp %548 : vector<8x8xf32>
    %550 = arith.subf %546, %547 : vector<8x8xf32>
    %551 = math.exp %550 : vector<8x8xf32>
    %552 = arith.addf %549, %551 : vector<8x8xf32>
    %553 = arith.divf %549, %552 : vector<8x8xf32>
    %cst_136 = arith.constant dense<0.000000e+00> : vector<8x32xf32>
    %554 = tpu.matmul %553, %76, %cst_136 {dimension_numbers = #tpu.dot_dimension_numbers<[1], [0], [0], [1], [0, 0, 1, 1], [], []>} : vector<8x8xf32>, vector<8x32xf32>, vector<8x32xf32> -> vector<8x32xf32>
    %c0_137 = arith.constant 0 : index
    %c0_138 = arith.constant 0 : index
    %555 = vector.load %arg6[%c0_137, %c0_138] : memref<32x128xf32, #tpu.memory_space<vmem>>, vector<32x128xf32>
    %cst_139 = arith.constant dense<0.000000e+00> : vector<8x128xf32>
    %556 = tpu.matmul %554, %555, %cst_139 {dimension_numbers = #tpu.dot_dimension_numbers<[1], [0], [0], [1], [0, 0, 1, 1], [], []>} : vector<8x32xf32>, vector<32x128xf32>, vector<8x128xf32> -> vector<8x128xf32>
    %557 = arith.addf %84, %556 : vector<8x128xf32>
    %558 = vector.extract_strided_slice %557 {offsets = [0, 0], sizes = [8, 32], strides = [1, 1]} : vector<8x128xf32> to vector<8x32xf32>
    %559 = arith.negf %558 : vector<8x32xf32>
    %560 = math.exp %559 : vector<8x32xf32>
    %cst_140 = arith.constant 1.000000e+00 : f32
    %561 = vector.broadcast %cst_140 : f32 to vector<8x32xf32>
    %562 = arith.addf %561, %560 : vector<8x32xf32>
    %563 = arith.divf %561, %562 : vector<8x32xf32>
    %564 = vector.extract_strided_slice %557 {offsets = [0, 32], sizes = [8, 32], strides = [1, 1]} : vector<8x128xf32> to vector<8x32xf32>
    %565 = arith.negf %564 : vector<8x32xf32>
    %566 = math.exp %565 : vector<8x32xf32>
    %cst_141 = arith.constant 1.000000e+00 : f32
    %567 = vector.broadcast %cst_141 : f32 to vector<8x32xf32>
    %568 = arith.addf %567, %566 : vector<8x32xf32>
    %569 = arith.divf %567, %568 : vector<8x32xf32>
    %570 = vector.extract_strided_slice %557 {offsets = [0, 64], sizes = [8, 32], strides = [1, 1]} : vector<8x128xf32> to vector<8x32xf32>
    %571 = math.tanh %570 : vector<8x32xf32>
    %572 = vector.extract_strided_slice %557 {offsets = [0, 96], sizes = [8, 32], strides = [1, 1]} : vector<8x128xf32> to vector<8x32xf32>
    %573 = arith.negf %572 : vector<8x32xf32>
    %574 = math.exp %573 : vector<8x32xf32>
    %cst_142 = arith.constant 1.000000e+00 : f32
    %575 = vector.broadcast %cst_142 : f32 to vector<8x32xf32>
    %576 = arith.addf %575, %574 : vector<8x32xf32>
    %577 = arith.divf %575, %576 : vector<8x32xf32>
    %578 = arith.mulf %569, %541 : vector<8x32xf32>
    %579 = arith.mulf %563, %571 : vector<8x32xf32>
    %580 = arith.addf %578, %579 : vector<8x32xf32>
    %581 = math.tanh %580 : vector<8x32xf32>
    %582 = arith.mulf %577, %581 : vector<8x32xf32>
    %583 = arith.addf %582, %0 : vector<8x32xf32>
    "tpu.trace_start"() <{level = 10 : i32, message = "se,te->st"}> : () -> ()
    %cst_143 = arith.constant dense<0.000000e+00> : vector<8x8xf32>
    %584 = tpu.matmul %76, %583, %cst_143 {dimension_numbers = #tpu.dot_dimension_numbers<[1], [1], [0], [0], [0, 0, 1, 0], [], []>} : vector<8x32xf32>, vector<8x32xf32>, vector<8x8xf32> -> vector<8x8xf32>
    %cst_144 = arith.constant dense<0.000000e+00> : vector<8x8xf32>
    %585 = tpu.matmul %79, %583, %cst_144 {dimension_numbers = #tpu.dot_dimension_numbers<[1], [1], [0], [0], [0, 0, 1, 0], [], []>} : vector<8x32xf32>, vector<8x32xf32>, vector<8x8xf32> -> vector<8x8xf32>
    "tpu.trace_stop"() : () -> ()
    %586 = arith.maximumf %584, %585 : vector<8x8xf32>
    %587 = arith.subf %584, %586 : vector<8x8xf32>
    %588 = math.exp %587 : vector<8x8xf32>
    %589 = arith.subf %585, %586 : vector<8x8xf32>
    %590 = math.exp %589 : vector<8x8xf32>
    %591 = arith.addf %588, %590 : vector<8x8xf32>
    %592 = arith.divf %588, %591 : vector<8x8xf32>
    %cst_145 = arith.constant dense<0.000000e+00> : vector<8x32xf32>
    %593 = tpu.matmul %592, %76, %cst_145 {dimension_numbers = #tpu.dot_dimension_numbers<[1], [0], [0], [1], [0, 0, 1, 1], [], []>} : vector<8x8xf32>, vector<8x32xf32>, vector<8x32xf32> -> vector<8x32xf32>
    %c0_146 = arith.constant 0 : index
    %c0_147 = arith.constant 0 : index
    %594 = vector.load %arg6[%c0_146, %c0_147] : memref<32x128xf32, #tpu.memory_space<vmem>>, vector<32x128xf32>
    %cst_148 = arith.constant dense<0.000000e+00> : vector<8x128xf32>
    %595 = tpu.matmul %593, %594, %cst_148 {dimension_numbers = #tpu.dot_dimension_numbers<[1], [0], [0], [1], [0, 0, 1, 1], [], []>} : vector<8x32xf32>, vector<32x128xf32>, vector<8x128xf32> -> vector<8x128xf32>
    %596 = arith.addf %84, %595 : vector<8x128xf32>
    %597 = vector.extract_strided_slice %596 {offsets = [0, 0], sizes = [8, 32], strides = [1, 1]} : vector<8x128xf32> to vector<8x32xf32>
    %598 = arith.negf %597 : vector<8x32xf32>
    %599 = math.exp %598 : vector<8x32xf32>
    %cst_149 = arith.constant 1.000000e+00 : f32
    %600 = vector.broadcast %cst_149 : f32 to vector<8x32xf32>
    %601 = arith.addf %600, %599 : vector<8x32xf32>
    %602 = arith.divf %600, %601 : vector<8x32xf32>
    %603 = vector.extract_strided_slice %596 {offsets = [0, 32], sizes = [8, 32], strides = [1, 1]} : vector<8x128xf32> to vector<8x32xf32>
    %604 = arith.negf %603 : vector<8x32xf32>
    %605 = math.exp %604 : vector<8x32xf32>
    %cst_150 = arith.constant 1.000000e+00 : f32
    %606 = vector.broadcast %cst_150 : f32 to vector<8x32xf32>
    %607 = arith.addf %606, %605 : vector<8x32xf32>
    %608 = arith.divf %606, %607 : vector<8x32xf32>
    %609 = vector.extract_strided_slice %596 {offsets = [0, 64], sizes = [8, 32], strides = [1, 1]} : vector<8x128xf32> to vector<8x32xf32>
    %610 = math.tanh %609 : vector<8x32xf32>
    %611 = vector.extract_strided_slice %596 {offsets = [0, 96], sizes = [8, 32], strides = [1, 1]} : vector<8x128xf32> to vector<8x32xf32>
    %612 = arith.negf %611 : vector<8x32xf32>
    %613 = math.exp %612 : vector<8x32xf32>
    %cst_151 = arith.constant 1.000000e+00 : f32
    %614 = vector.broadcast %cst_151 : f32 to vector<8x32xf32>
    %615 = arith.addf %614, %613 : vector<8x32xf32>
    %616 = arith.divf %614, %615 : vector<8x32xf32>
    %617 = arith.mulf %608, %580 : vector<8x32xf32>
    %618 = arith.mulf %602, %610 : vector<8x32xf32>
    %619 = arith.addf %617, %618 : vector<8x32xf32>
    %620 = math.tanh %619 : vector<8x32xf32>
    %621 = arith.mulf %616, %620 : vector<8x32xf32>
    %622 = arith.addf %621, %0 : vector<8x32xf32>
    "tpu.trace_start"() <{level = 10 : i32, message = "se,te->st"}> : () -> ()
    %cst_152 = arith.constant dense<0.000000e+00> : vector<8x8xf32>
    %623 = tpu.matmul %76, %622, %cst_152 {dimension_numbers = #tpu.dot_dimension_numbers<[1], [1], [0], [0], [0, 0, 1, 0], [], []>} : vector<8x32xf32>, vector<8x32xf32>, vector<8x8xf32> -> vector<8x8xf32>
    %cst_153 = arith.constant dense<0.000000e+00> : vector<8x8xf32>
    %624 = tpu.matmul %79, %622, %cst_153 {dimension_numbers = #tpu.dot_dimension_numbers<[1], [1], [0], [0], [0, 0, 1, 0], [], []>} : vector<8x32xf32>, vector<8x32xf32>, vector<8x8xf32> -> vector<8x8xf32>
    "tpu.trace_stop"() : () -> ()
    %625 = arith.maximumf %623, %624 : vector<8x8xf32>
    %626 = arith.subf %623, %625 : vector<8x8xf32>
    %627 = math.exp %626 : vector<8x8xf32>
    %628 = arith.subf %624, %625 : vector<8x8xf32>
    %629 = math.exp %628 : vector<8x8xf32>
    %630 = arith.addf %627, %629 : vector<8x8xf32>
    %631 = arith.divf %627, %630 : vector<8x8xf32>
    %cst_154 = arith.constant dense<0.000000e+00> : vector<8x32xf32>
    %632 = tpu.matmul %631, %76, %cst_154 {dimension_numbers = #tpu.dot_dimension_numbers<[1], [0], [0], [1], [0, 0, 1, 1], [], []>} : vector<8x8xf32>, vector<8x32xf32>, vector<8x32xf32> -> vector<8x32xf32>
    %c0_155 = arith.constant 0 : index
    %c0_156 = arith.constant 0 : index
    %633 = vector.load %arg6[%c0_155, %c0_156] : memref<32x128xf32, #tpu.memory_space<vmem>>, vector<32x128xf32>
    %cst_157 = arith.constant dense<0.000000e+00> : vector<8x128xf32>
    %634 = tpu.matmul %632, %633, %cst_157 {dimension_numbers = #tpu.dot_dimension_numbers<[1], [0], [0], [1], [0, 0, 1, 1], [], []>} : vector<8x32xf32>, vector<32x128xf32>, vector<8x128xf32> -> vector<8x128xf32>
    %635 = arith.addf %84, %634 : vector<8x128xf32>
    %636 = vector.extract_strided_slice %635 {offsets = [0, 0], sizes = [8, 32], strides = [1, 1]} : vector<8x128xf32> to vector<8x32xf32>
    %637 = arith.negf %636 : vector<8x32xf32>
    %638 = math.exp %637 : vector<8x32xf32>
    %cst_158 = arith.constant 1.000000e+00 : f32
    %639 = vector.broadcast %cst_158 : f32 to vector<8x32xf32>
    %640 = arith.addf %639, %638 : vector<8x32xf32>
    %641 = arith.divf %639, %640 : vector<8x32xf32>
    %642 = vector.extract_strided_slice %635 {offsets = [0, 32], sizes = [8, 32], strides = [1, 1]} : vector<8x128xf32> to vector<8x32xf32>
    %643 = arith.negf %642 : vector<8x32xf32>
    %644 = math.exp %643 : vector<8x32xf32>
    %cst_159 = arith.constant 1.000000e+00 : f32
    %645 = vector.broadcast %cst_159 : f32 to vector<8x32xf32>
    %646 = arith.addf %645, %644 : vector<8x32xf32>
    %647 = arith.divf %645, %646 : vector<8x32xf32>
    %648 = vector.extract_strided_slice %635 {offsets = [0, 64], sizes = [8, 32], strides = [1, 1]} : vector<8x128xf32> to vector<8x32xf32>
    %649 = math.tanh %648 : vector<8x32xf32>
    %650 = vector.extract_strided_slice %635 {offsets = [0, 96], sizes = [8, 32], strides = [1, 1]} : vector<8x128xf32> to vector<8x32xf32>
    %651 = arith.negf %650 : vector<8x32xf32>
    %652 = math.exp %651 : vector<8x32xf32>
    %cst_160 = arith.constant 1.000000e+00 : f32
    %653 = vector.broadcast %cst_160 : f32 to vector<8x32xf32>
    %654 = arith.addf %653, %652 : vector<8x32xf32>
    %655 = arith.divf %653, %654 : vector<8x32xf32>
    %656 = arith.mulf %647, %619 : vector<8x32xf32>
    %657 = arith.mulf %641, %649 : vector<8x32xf32>
    %658 = arith.addf %656, %657 : vector<8x32xf32>
    %659 = math.tanh %658 : vector<8x32xf32>
    %660 = arith.mulf %655, %659 : vector<8x32xf32>
    %661 = arith.addf %660, %0 : vector<8x32xf32>
    "tpu.trace_start"() <{level = 10 : i32, message = "se,te->st"}> : () -> ()
    %cst_161 = arith.constant dense<0.000000e+00> : vector<8x8xf32>
    %662 = tpu.matmul %76, %661, %cst_161 {dimension_numbers = #tpu.dot_dimension_numbers<[1], [1], [0], [0], [0, 0, 1, 0], [], []>} : vector<8x32xf32>, vector<8x32xf32>, vector<8x8xf32> -> vector<8x8xf32>
    %cst_162 = arith.constant dense<0.000000e+00> : vector<8x8xf32>
    %663 = tpu.matmul %79, %661, %cst_162 {dimension_numbers = #tpu.dot_dimension_numbers<[1], [1], [0], [0], [0, 0, 1, 0], [], []>} : vector<8x32xf32>, vector<8x32xf32>, vector<8x8xf32> -> vector<8x8xf32>
    "tpu.trace_stop"() : () -> ()
    %664 = arith.maximumf %662, %663 : vector<8x8xf32>
    %665 = arith.subf %662, %664 : vector<8x8xf32>
    %666 = math.exp %665 : vector<8x8xf32>
    %667 = arith.subf %663, %664 : vector<8x8xf32>
    %668 = math.exp %667 : vector<8x8xf32>
    %669 = arith.addf %666, %668 : vector<8x8xf32>
    %670 = arith.divf %666, %669 : vector<8x8xf32>
    %cst_163 = arith.constant dense<0.000000e+00> : vector<8x32xf32>
    %671 = tpu.matmul %670, %76, %cst_163 {dimension_numbers = #tpu.dot_dimension_numbers<[1], [0], [0], [1], [0, 0, 1, 1], [], []>} : vector<8x8xf32>, vector<8x32xf32>, vector<8x32xf32> -> vector<8x32xf32>
    %c0_164 = arith.constant 0 : index
    %c0_165 = arith.constant 0 : index
    %672 = vector.load %arg6[%c0_164, %c0_165] : memref<32x128xf32, #tpu.memory_space<vmem>>, vector<32x128xf32>
    %cst_166 = arith.constant dense<0.000000e+00> : vector<8x128xf32>
    %673 = tpu.matmul %671, %672, %cst_166 {dimension_numbers = #tpu.dot_dimension_numbers<[1], [0], [0], [1], [0, 0, 1, 1], [], []>} : vector<8x32xf32>, vector<32x128xf32>, vector<8x128xf32> -> vector<8x128xf32>
    %674 = arith.addf %84, %673 : vector<8x128xf32>
    %675 = vector.extract_strided_slice %674 {offsets = [0, 0], sizes = [8, 32], strides = [1, 1]} : vector<8x128xf32> to vector<8x32xf32>
    %676 = arith.negf %675 : vector<8x32xf32>
    %677 = math.exp %676 : vector<8x32xf32>
    %cst_167 = arith.constant 1.000000e+00 : f32
    %678 = vector.broadcast %cst_167 : f32 to vector<8x32xf32>
    %679 = arith.addf %678, %677 : vector<8x32xf32>
    %680 = arith.divf %678, %679 : vector<8x32xf32>
    %681 = vector.extract_strided_slice %674 {offsets = [0, 32], sizes = [8, 32], strides = [1, 1]} : vector<8x128xf32> to vector<8x32xf32>
    %682 = arith.negf %681 : vector<8x32xf32>
    %683 = math.exp %682 : vector<8x32xf32>
    %cst_168 = arith.constant 1.000000e+00 : f32
    %684 = vector.broadcast %cst_168 : f32 to vector<8x32xf32>
    %685 = arith.addf %684, %683 : vector<8x32xf32>
    %686 = arith.divf %684, %685 : vector<8x32xf32>
    %687 = vector.extract_strided_slice %674 {offsets = [0, 64], sizes = [8, 32], strides = [1, 1]} : vector<8x128xf32> to vector<8x32xf32>
    %688 = math.tanh %687 : vector<8x32xf32>
    %689 = vector.extract_strided_slice %674 {offsets = [0, 96], sizes = [8, 32], strides = [1, 1]} : vector<8x128xf32> to vector<8x32xf32>
    %690 = arith.negf %689 : vector<8x32xf32>
    %691 = math.exp %690 : vector<8x32xf32>
    %cst_169 = arith.constant 1.000000e+00 : f32
    %692 = vector.broadcast %cst_169 : f32 to vector<8x32xf32>
    %693 = arith.addf %692, %691 : vector<8x32xf32>
    %694 = arith.divf %692, %693 : vector<8x32xf32>
    %695 = arith.mulf %686, %658 : vector<8x32xf32>
    %696 = arith.mulf %680, %688 : vector<8x32xf32>
    %697 = arith.addf %695, %696 : vector<8x32xf32>
    %698 = math.tanh %697 : vector<8x32xf32>
    %699 = arith.mulf %694, %698 : vector<8x32xf32>
    %700 = arith.addf %699, %0 : vector<8x32xf32>
    "tpu.trace_start"() <{level = 10 : i32, message = "se,te->st"}> : () -> ()
    %cst_170 = arith.constant dense<0.000000e+00> : vector<8x8xf32>
    %701 = tpu.matmul %76, %700, %cst_170 {dimension_numbers = #tpu.dot_dimension_numbers<[1], [1], [0], [0], [0, 0, 1, 0], [], []>} : vector<8x32xf32>, vector<8x32xf32>, vector<8x8xf32> -> vector<8x8xf32>
    %cst_171 = arith.constant dense<0.000000e+00> : vector<8x8xf32>
    %702 = tpu.matmul %79, %700, %cst_171 {dimension_numbers = #tpu.dot_dimension_numbers<[1], [1], [0], [0], [0, 0, 1, 0], [], []>} : vector<8x32xf32>, vector<8x32xf32>, vector<8x8xf32> -> vector<8x8xf32>
    "tpu.trace_stop"() : () -> ()
    %703 = arith.maximumf %701, %702 : vector<8x8xf32>
    %704 = arith.subf %701, %703 : vector<8x8xf32>
    %705 = math.exp %704 : vector<8x8xf32>
    %706 = arith.subf %702, %703 : vector<8x8xf32>
    %707 = math.exp %706 : vector<8x8xf32>
    %708 = arith.addf %705, %707 : vector<8x8xf32>
    %709 = arith.divf %705, %708 : vector<8x8xf32>
    %cst_172 = arith.constant dense<0.000000e+00> : vector<8x32xf32>
    %710 = tpu.matmul %709, %76, %cst_172 {dimension_numbers = #tpu.dot_dimension_numbers<[1], [0], [0], [1], [0, 0, 1, 1], [], []>} : vector<8x8xf32>, vector<8x32xf32>, vector<8x32xf32> -> vector<8x32xf32>
    %c0_173 = arith.constant 0 : index
    %c0_174 = arith.constant 0 : index
    %711 = vector.load %arg6[%c0_173, %c0_174] : memref<32x128xf32, #tpu.memory_space<vmem>>, vector<32x128xf32>
    %cst_175 = arith.constant dense<0.000000e+00> : vector<8x128xf32>
    %712 = tpu.matmul %710, %711, %cst_175 {dimension_numbers = #tpu.dot_dimension_numbers<[1], [0], [0], [1], [0, 0, 1, 1], [], []>} : vector<8x32xf32>, vector<32x128xf32>, vector<8x128xf32> -> vector<8x128xf32>
    %713 = arith.addf %84, %712 : vector<8x128xf32>
    %714 = vector.extract_strided_slice %713 {offsets = [0, 0], sizes = [8, 32], strides = [1, 1]} : vector<8x128xf32> to vector<8x32xf32>
    %715 = arith.negf %714 : vector<8x32xf32>
    %716 = math.exp %715 : vector<8x32xf32>
    %cst_176 = arith.constant 1.000000e+00 : f32
    %717 = vector.broadcast %cst_176 : f32 to vector<8x32xf32>
    %718 = arith.addf %717, %716 : vector<8x32xf32>
    %719 = arith.divf %717, %718 : vector<8x32xf32>
    %720 = vector.extract_strided_slice %713 {offsets = [0, 32], sizes = [8, 32], strides = [1, 1]} : vector<8x128xf32> to vector<8x32xf32>
    %721 = arith.negf %720 : vector<8x32xf32>
    %722 = math.exp %721 : vector<8x32xf32>
    %cst_177 = arith.constant 1.000000e+00 : f32
    %723 = vector.broadcast %cst_177 : f32 to vector<8x32xf32>
    %724 = arith.addf %723, %722 : vector<8x32xf32>
    %725 = arith.divf %723, %724 : vector<8x32xf32>
    %726 = vector.extract_strided_slice %713 {offsets = [0, 64], sizes = [8, 32], strides = [1, 1]} : vector<8x128xf32> to vector<8x32xf32>
    %727 = math.tanh %726 : vector<8x32xf32>
    %728 = vector.extract_strided_slice %713 {offsets = [0, 96], sizes = [8, 32], strides = [1, 1]} : vector<8x128xf32> to vector<8x32xf32>
    %729 = arith.negf %728 : vector<8x32xf32>
    %730 = math.exp %729 : vector<8x32xf32>
    %cst_178 = arith.constant 1.000000e+00 : f32
    %731 = vector.broadcast %cst_178 : f32 to vector<8x32xf32>
    %732 = arith.addf %731, %730 : vector<8x32xf32>
    %733 = arith.divf %731, %732 : vector<8x32xf32>
    %734 = arith.mulf %725, %697 : vector<8x32xf32>
    %735 = arith.mulf %719, %727 : vector<8x32xf32>
    %736 = arith.addf %734, %735 : vector<8x32xf32>
    %737 = math.tanh %736 : vector<8x32xf32>
    %738 = arith.mulf %733, %737 : vector<8x32xf32>
    %739 = arith.addf %738, %0 : vector<8x32xf32>
    "tpu.trace_start"() <{level = 10 : i32, message = "se,te->st"}> : () -> ()
    %cst_179 = arith.constant dense<0.000000e+00> : vector<8x8xf32>
    %740 = tpu.matmul %76, %739, %cst_179 {dimension_numbers = #tpu.dot_dimension_numbers<[1], [1], [0], [0], [0, 0, 1, 0], [], []>} : vector<8x32xf32>, vector<8x32xf32>, vector<8x8xf32> -> vector<8x8xf32>
    %cst_180 = arith.constant dense<0.000000e+00> : vector<8x8xf32>
    %741 = tpu.matmul %79, %739, %cst_180 {dimension_numbers = #tpu.dot_dimension_numbers<[1], [1], [0], [0], [0, 0, 1, 0], [], []>} : vector<8x32xf32>, vector<8x32xf32>, vector<8x8xf32> -> vector<8x8xf32>
    "tpu.trace_stop"() : () -> ()
    %742 = arith.maximumf %740, %741 : vector<8x8xf32>
    %743 = arith.subf %740, %742 : vector<8x8xf32>
    %744 = math.exp %743 : vector<8x8xf32>
    %745 = arith.subf %741, %742 : vector<8x8xf32>
    %746 = math.exp %745 : vector<8x8xf32>
    %747 = arith.addf %744, %746 : vector<8x8xf32>
    %748 = arith.divf %744, %747 : vector<8x8xf32>
    %cst_181 = arith.constant dense<0.000000e+00> : vector<8x32xf32>
    %749 = tpu.matmul %748, %76, %cst_181 {dimension_numbers = #tpu.dot_dimension_numbers<[1], [0], [0], [1], [0, 0, 1, 1], [], []>} : vector<8x8xf32>, vector<8x32xf32>, vector<8x32xf32> -> vector<8x32xf32>
    %c0_182 = arith.constant 0 : index
    %c0_183 = arith.constant 0 : index
    %750 = vector.load %arg6[%c0_182, %c0_183] : memref<32x128xf32, #tpu.memory_space<vmem>>, vector<32x128xf32>
    %cst_184 = arith.constant dense<0.000000e+00> : vector<8x128xf32>
    %751 = tpu.matmul %749, %750, %cst_184 {dimension_numbers = #tpu.dot_dimension_numbers<[1], [0], [0], [1], [0, 0, 1, 1], [], []>} : vector<8x32xf32>, vector<32x128xf32>, vector<8x128xf32> -> vector<8x128xf32>
    %752 = arith.addf %84, %751 : vector<8x128xf32>
    %753 = vector.extract_strided_slice %752 {offsets = [0, 0], sizes = [8, 32], strides = [1, 1]} : vector<8x128xf32> to vector<8x32xf32>
    %754 = arith.negf %753 : vector<8x32xf32>
    %755 = math.exp %754 : vector<8x32xf32>
    %cst_185 = arith.constant 1.000000e+00 : f32
    %756 = vector.broadcast %cst_185 : f32 to vector<8x32xf32>
    %757 = arith.addf %756, %755 : vector<8x32xf32>
    %758 = arith.divf %756, %757 : vector<8x32xf32>
    %759 = vector.extract_strided_slice %752 {offsets = [0, 32], sizes = [8, 32], strides = [1, 1]} : vector<8x128xf32> to vector<8x32xf32>
    %760 = arith.negf %759 : vector<8x32xf32>
    %761 = math.exp %760 : vector<8x32xf32>
    %cst_186 = arith.constant 1.000000e+00 : f32
    %762 = vector.broadcast %cst_186 : f32 to vector<8x32xf32>
    %763 = arith.addf %762, %761 : vector<8x32xf32>
    %764 = arith.divf %762, %763 : vector<8x32xf32>
    %765 = vector.extract_strided_slice %752 {offsets = [0, 64], sizes = [8, 32], strides = [1, 1]} : vector<8x128xf32> to vector<8x32xf32>
    %766 = math.tanh %765 : vector<8x32xf32>
    %767 = vector.extract_strided_slice %752 {offsets = [0, 96], sizes = [8, 32], strides = [1, 1]} : vector<8x128xf32> to vector<8x32xf32>
    %768 = arith.negf %767 : vector<8x32xf32>
    %769 = math.exp %768 : vector<8x32xf32>
    %cst_187 = arith.constant 1.000000e+00 : f32
    %770 = vector.broadcast %cst_187 : f32 to vector<8x32xf32>
    %771 = arith.addf %770, %769 : vector<8x32xf32>
    %772 = arith.divf %770, %771 : vector<8x32xf32>
    %773 = arith.mulf %764, %736 : vector<8x32xf32>
    %774 = arith.mulf %758, %766 : vector<8x32xf32>
    %775 = arith.addf %773, %774 : vector<8x32xf32>
    %776 = math.tanh %775 : vector<8x32xf32>
    %777 = arith.mulf %772, %776 : vector<8x32xf32>
    %778 = arith.addf %777, %0 : vector<8x32xf32>
    "tpu.trace_start"() <{level = 10 : i32, message = "se,te->st"}> : () -> ()
    %cst_188 = arith.constant dense<0.000000e+00> : vector<8x8xf32>
    %779 = tpu.matmul %76, %778, %cst_188 {dimension_numbers = #tpu.dot_dimension_numbers<[1], [1], [0], [0], [0, 0, 1, 0], [], []>} : vector<8x32xf32>, vector<8x32xf32>, vector<8x8xf32> -> vector<8x8xf32>
    %cst_189 = arith.constant dense<0.000000e+00> : vector<8x8xf32>
    %780 = tpu.matmul %79, %778, %cst_189 {dimension_numbers = #tpu.dot_dimension_numbers<[1], [1], [0], [0], [0, 0, 1, 0], [], []>} : vector<8x32xf32>, vector<8x32xf32>, vector<8x8xf32> -> vector<8x8xf32>
    "tpu.trace_stop"() : () -> ()
    %781 = arith.maximumf %779, %780 : vector<8x8xf32>
    %782 = arith.subf %779, %781 : vector<8x8xf32>
    %783 = math.exp %782 : vector<8x8xf32>
    %784 = arith.subf %780, %781 : vector<8x8xf32>
    %785 = math.exp %784 : vector<8x8xf32>
    %786 = arith.addf %783, %785 : vector<8x8xf32>
    %787 = arith.divf %783, %786 : vector<8x8xf32>
    %cst_190 = arith.constant dense<0.000000e+00> : vector<8x32xf32>
    %788 = tpu.matmul %787, %76, %cst_190 {dimension_numbers = #tpu.dot_dimension_numbers<[1], [0], [0], [1], [0, 0, 1, 1], [], []>} : vector<8x8xf32>, vector<8x32xf32>, vector<8x32xf32> -> vector<8x32xf32>
    %c0_191 = arith.constant 0 : index
    %c0_192 = arith.constant 0 : index
    %789 = vector.load %arg6[%c0_191, %c0_192] : memref<32x128xf32, #tpu.memory_space<vmem>>, vector<32x128xf32>
    %cst_193 = arith.constant dense<0.000000e+00> : vector<8x128xf32>
    %790 = tpu.matmul %788, %789, %cst_193 {dimension_numbers = #tpu.dot_dimension_numbers<[1], [0], [0], [1], [0, 0, 1, 1], [], []>} : vector<8x32xf32>, vector<32x128xf32>, vector<8x128xf32> -> vector<8x128xf32>
    %791 = arith.addf %84, %790 : vector<8x128xf32>
    %792 = vector.extract_strided_slice %791 {offsets = [0, 0], sizes = [8, 32], strides = [1, 1]} : vector<8x128xf32> to vector<8x32xf32>
    %793 = arith.negf %792 : vector<8x32xf32>
    %794 = math.exp %793 : vector<8x32xf32>
    %cst_194 = arith.constant 1.000000e+00 : f32
    %795 = vector.broadcast %cst_194 : f32 to vector<8x32xf32>
    %796 = arith.addf %795, %794 : vector<8x32xf32>
    %797 = arith.divf %795, %796 : vector<8x32xf32>
    %798 = vector.extract_strided_slice %791 {offsets = [0, 32], sizes = [8, 32], strides = [1, 1]} : vector<8x128xf32> to vector<8x32xf32>
    %799 = arith.negf %798 : vector<8x32xf32>
    %800 = math.exp %799 : vector<8x32xf32>
    %cst_195 = arith.constant 1.000000e+00 : f32
    %801 = vector.broadcast %cst_195 : f32 to vector<8x32xf32>
    %802 = arith.addf %801, %800 : vector<8x32xf32>
    %803 = arith.divf %801, %802 : vector<8x32xf32>
    %804 = vector.extract_strided_slice %791 {offsets = [0, 64], sizes = [8, 32], strides = [1, 1]} : vector<8x128xf32> to vector<8x32xf32>
    %805 = math.tanh %804 : vector<8x32xf32>
    %806 = vector.extract_strided_slice %791 {offsets = [0, 96], sizes = [8, 32], strides = [1, 1]} : vector<8x128xf32> to vector<8x32xf32>
    %807 = arith.negf %806 : vector<8x32xf32>
    %808 = math.exp %807 : vector<8x32xf32>
    %cst_196 = arith.constant 1.000000e+00 : f32
    %809 = vector.broadcast %cst_196 : f32 to vector<8x32xf32>
    %810 = arith.addf %809, %808 : vector<8x32xf32>
    %811 = arith.divf %809, %810 : vector<8x32xf32>
    %812 = arith.mulf %803, %775 : vector<8x32xf32>
    %813 = arith.mulf %797, %805 : vector<8x32xf32>
    %814 = arith.addf %812, %813 : vector<8x32xf32>
    %815 = math.tanh %814 : vector<8x32xf32>
    %816 = arith.mulf %811, %815 : vector<8x32xf32>
    %817 = arith.addf %816, %0 : vector<8x32xf32>
    "tpu.trace_start"() <{level = 10 : i32, message = "se,te->st"}> : () -> ()
    %cst_197 = arith.constant dense<0.000000e+00> : vector<8x8xf32>
    %818 = tpu.matmul %76, %817, %cst_197 {dimension_numbers = #tpu.dot_dimension_numbers<[1], [1], [0], [0], [0, 0, 1, 0], [], []>} : vector<8x32xf32>, vector<8x32xf32>, vector<8x8xf32> -> vector<8x8xf32>
    %cst_198 = arith.constant dense<0.000000e+00> : vector<8x8xf32>
    %819 = tpu.matmul %79, %817, %cst_198 {dimension_numbers = #tpu.dot_dimension_numbers<[1], [1], [0], [0], [0, 0, 1, 0], [], []>} : vector<8x32xf32>, vector<8x32xf32>, vector<8x8xf32> -> vector<8x8xf32>
    "tpu.trace_stop"() : () -> ()
    %820 = arith.maximumf %818, %819 : vector<8x8xf32>
    %821 = arith.subf %818, %820 : vector<8x8xf32>
    %822 = math.exp %821 : vector<8x8xf32>
    %823 = arith.subf %819, %820 : vector<8x8xf32>
    %824 = math.exp %823 : vector<8x8xf32>
    %825 = arith.addf %822, %824 : vector<8x8xf32>
    %826 = arith.divf %822, %825 : vector<8x8xf32>
    %cst_199 = arith.constant dense<0.000000e+00> : vector<8x32xf32>
    %827 = tpu.matmul %826, %76, %cst_199 {dimension_numbers = #tpu.dot_dimension_numbers<[1], [0], [0], [1], [0, 0, 1, 1], [], []>} : vector<8x8xf32>, vector<8x32xf32>, vector<8x32xf32> -> vector<8x32xf32>
    %c0_200 = arith.constant 0 : index
    %c0_201 = arith.constant 0 : index
    %828 = vector.load %arg6[%c0_200, %c0_201] : memref<32x128xf32, #tpu.memory_space<vmem>>, vector<32x128xf32>
    %cst_202 = arith.constant dense<0.000000e+00> : vector<8x128xf32>
    %829 = tpu.matmul %827, %828, %cst_202 {dimension_numbers = #tpu.dot_dimension_numbers<[1], [0], [0], [1], [0, 0, 1, 1], [], []>} : vector<8x32xf32>, vector<32x128xf32>, vector<8x128xf32> -> vector<8x128xf32>
    %830 = arith.addf %84, %829 : vector<8x128xf32>
    %831 = vector.extract_strided_slice %830 {offsets = [0, 0], sizes = [8, 32], strides = [1, 1]} : vector<8x128xf32> to vector<8x32xf32>
    %832 = arith.negf %831 : vector<8x32xf32>
    %833 = math.exp %832 : vector<8x32xf32>
    %cst_203 = arith.constant 1.000000e+00 : f32
    %834 = vector.broadcast %cst_203 : f32 to vector<8x32xf32>
    %835 = arith.addf %834, %833 : vector<8x32xf32>
    %836 = arith.divf %834, %835 : vector<8x32xf32>
    %837 = vector.extract_strided_slice %830 {offsets = [0, 32], sizes = [8, 32], strides = [1, 1]} : vector<8x128xf32> to vector<8x32xf32>
    %838 = arith.negf %837 : vector<8x32xf32>
    %839 = math.exp %838 : vector<8x32xf32>
    %cst_204 = arith.constant 1.000000e+00 : f32
    %840 = vector.broadcast %cst_204 : f32 to vector<8x32xf32>
    %841 = arith.addf %840, %839 : vector<8x32xf32>
    %842 = arith.divf %840, %841 : vector<8x32xf32>
    %843 = vector.extract_strided_slice %830 {offsets = [0, 64], sizes = [8, 32], strides = [1, 1]} : vector<8x128xf32> to vector<8x32xf32>
    %844 = math.tanh %843 : vector<8x32xf32>
    %845 = vector.extract_strided_slice %830 {offsets = [0, 96], sizes = [8, 32], strides = [1, 1]} : vector<8x128xf32> to vector<8x32xf32>
    %846 = arith.negf %845 : vector<8x32xf32>
    %847 = math.exp %846 : vector<8x32xf32>
    %cst_205 = arith.constant 1.000000e+00 : f32
    %848 = vector.broadcast %cst_205 : f32 to vector<8x32xf32>
    %849 = arith.addf %848, %847 : vector<8x32xf32>
    %850 = arith.divf %848, %849 : vector<8x32xf32>
    %851 = arith.mulf %842, %814 : vector<8x32xf32>
    %852 = arith.mulf %836, %844 : vector<8x32xf32>
    %853 = arith.addf %851, %852 : vector<8x32xf32>
    %854 = math.tanh %853 : vector<8x32xf32>
    %855 = arith.mulf %850, %854 : vector<8x32xf32>
    %856 = arith.addf %855, %0 : vector<8x32xf32>
    "tpu.trace_start"() <{level = 10 : i32, message = "se,te->st"}> : () -> ()
    %cst_206 = arith.constant dense<0.000000e+00> : vector<8x8xf32>
    %857 = tpu.matmul %76, %856, %cst_206 {dimension_numbers = #tpu.dot_dimension_numbers<[1], [1], [0], [0], [0, 0, 1, 0], [], []>} : vector<8x32xf32>, vector<8x32xf32>, vector<8x8xf32> -> vector<8x8xf32>
    %cst_207 = arith.constant dense<0.000000e+00> : vector<8x8xf32>
    %858 = tpu.matmul %79, %856, %cst_207 {dimension_numbers = #tpu.dot_dimension_numbers<[1], [1], [0], [0], [0, 0, 1, 0], [], []>} : vector<8x32xf32>, vector<8x32xf32>, vector<8x8xf32> -> vector<8x8xf32>
    "tpu.trace_stop"() : () -> ()
    %859 = arith.maximumf %857, %858 : vector<8x8xf32>
    %860 = arith.subf %857, %859 : vector<8x8xf32>
    %861 = math.exp %860 : vector<8x8xf32>
    %862 = arith.subf %858, %859 : vector<8x8xf32>
    %863 = math.exp %862 : vector<8x8xf32>
    %864 = arith.addf %861, %863 : vector<8x8xf32>
    %865 = arith.divf %861, %864 : vector<8x8xf32>
    %866 = arith.divf %863, %864 : vector<8x8xf32>
    %cst_208 = arith.constant dense<0.000000e+00> : vector<8x32xf32>
    %867 = tpu.matmul %865, %76, %cst_208 {dimension_numbers = #tpu.dot_dimension_numbers<[1], [0], [0], [1], [0, 0, 1, 1], [], []>} : vector<8x8xf32>, vector<8x32xf32>, vector<8x32xf32> -> vector<8x32xf32>
    %cst_209 = arith.constant dense<0.000000e+00> : vector<8x32xf32>
    %868 = tpu.matmul %866, %79, %cst_209 {dimension_numbers = #tpu.dot_dimension_numbers<[1], [0], [0], [1], [0, 0, 1, 1], [], []>} : vector<8x8xf32>, vector<8x32xf32>, vector<8x32xf32> -> vector<8x32xf32>
    %869 = arith.mulf %867, %76 : vector<8x32xf32>
    %cst_210 = arith.constant dense<0.000000e+00> : vector<32xf32>
    %870 = vector.multi_reduction <add>, %869, %cst_210 [0] : vector<8x32xf32> to vector<32xf32>
    %871 = vector.shape_cast %870 : vector<32xf32> to vector<1x32xf32>
    %872 = arith.mulf %867, %867 : vector<8x32xf32>
    %cst_211 = arith.constant dense<0.000000e+00> : vector<32xf32>
    %873 = vector.multi_reduction <add>, %872, %cst_211 [0] : vector<8x32xf32> to vector<32xf32>
    %874 = vector.shape_cast %873 : vector<32xf32> to vector<1x32xf32>
    %875 = math.sqrt %874 : vector<1x32xf32>
    %876 = arith.mulf %76, %76 : vector<8x32xf32>
    %cst_212 = arith.constant dense<0.000000e+00> : vector<32xf32>
    %877 = vector.multi_reduction <add>, %876, %cst_212 [0] : vector<8x32xf32> to vector<32xf32>
    %878 = vector.shape_cast %877 : vector<32xf32> to vector<1x32xf32>
    %879 = math.sqrt %878 : vector<1x32xf32>
    %880 = arith.mulf %875, %879 : vector<1x32xf32>
    %cst_213 = arith.constant 9.99999993E-9 : f32
    %881 = vector.broadcast %cst_213 : f32 to vector<1x32xf32>
    %882 = arith.maximumf %880, %881 : vector<1x32xf32>
    %883 = arith.divf %871, %882 : vector<1x32xf32>
    %884 = arith.mulf %868, %79 : vector<8x32xf32>
    %cst_214 = arith.constant dense<0.000000e+00> : vector<32xf32>
    %885 = vector.multi_reduction <add>, %884, %cst_214 [0] : vector<8x32xf32> to vector<32xf32>
    %886 = vector.shape_cast %885 : vector<32xf32> to vector<1x32xf32>
    %887 = arith.mulf %868, %868 : vector<8x32xf32>
    %cst_215 = arith.constant dense<0.000000e+00> : vector<32xf32>
    %888 = vector.multi_reduction <add>, %887, %cst_215 [0] : vector<8x32xf32> to vector<32xf32>
    %889 = vector.shape_cast %888 : vector<32xf32> to vector<1x32xf32>
    %890 = math.sqrt %889 : vector<1x32xf32>
    %891 = arith.mulf %79, %79 : vector<8x32xf32>
    %cst_216 = arith.constant dense<0.000000e+00> : vector<32xf32>
    %892 = vector.multi_reduction <add>, %891, %cst_216 [0] : vector<8x32xf32> to vector<32xf32>
    %893 = vector.shape_cast %892 : vector<32xf32> to vector<1x32xf32>
    %894 = math.sqrt %893 : vector<1x32xf32>
    %895 = arith.mulf %890, %894 : vector<1x32xf32>
    %cst_217 = arith.constant 9.99999993E-9 : f32
    %896 = vector.broadcast %cst_217 : f32 to vector<1x32xf32>
    %897 = arith.maximumf %895, %896 : vector<1x32xf32>
    %898 = arith.divf %886, %897 : vector<1x32xf32>
    %899 = math.exp %883 : vector<1x32xf32>
    %cst_218 = arith.constant dense<0.000000e+00> : vector<1xf32>
    %900 = vector.multi_reduction <add>, %899, %cst_218 [1] : vector<1x32xf32> to vector<1xf32>
    %901 = vector.shape_cast %900 : vector<1xf32> to vector<1x1xf32>
    %902 = math.exp %898 : vector<1x32xf32>
    %cst_219 = arith.constant dense<0.000000e+00> : vector<1xf32>
    %903 = vector.multi_reduction <add>, %902, %cst_219 [1] : vector<1x32xf32> to vector<1xf32>
    %904 = vector.shape_cast %903 : vector<1xf32> to vector<1x1xf32>
    %905 = arith.addf %901, %904 : vector<1x1xf32>
    %906 = tpu.iota {dimensions = array<i32: 0>} : vector<2x32xi32>
    %cst_220 = arith.constant 0.000000e+00 : f32
    %907 = vector.broadcast %cst_220 : f32 to vector<2x32xf32>
    %c0_i32 = arith.constant 0 : i32
    %908 = vector.broadcast %c0_i32 : i32 to vector<2x32xi32>
    %909 = arith.cmpi eq, %906, %908 : vector<2x32xi32>
    %910 = arith.extui %909 : vector<2x32xi1> to vector<2x32xi32>
    %911 = arith.sitofp %910 : vector<2x32xi32> to vector<2x32xf32>
    %912 = vector.broadcast %905 : vector<1x1xf32> to vector<1x32xf32>
    %913 = arith.divf %883, %912 : vector<1x32xf32>
    %914 = vector.broadcast %913 : vector<1x32xf32> to vector<2x32xf32>
    %915 = arith.mulf %911, %914 : vector<2x32xf32>
    %916 = arith.addf %907, %915 : vector<2x32xf32>
    %c1_i32 = arith.constant 1 : i32
    %917 = vector.broadcast %c1_i32 : i32 to vector<2x32xi32>
    %918 = arith.cmpi eq, %906, %917 : vector<2x32xi32>
    %919 = arith.extui %918 : vector<2x32xi1> to vector<2x32xi32>
    %920 = arith.sitofp %919 : vector<2x32xi32> to vector<2x32xf32>
    %921 = vector.broadcast %905 : vector<1x1xf32> to vector<1x32xf32>
    %922 = arith.divf %898, %921 : vector<1x32xf32>
    %923 = vector.broadcast %922 : vector<1x32xf32> to vector<2x32xf32>
    %924 = arith.mulf %920, %923 : vector<2x32xf32>
    %925 = arith.addf %916, %924 : vector<2x32xf32>
    %c0_221 = arith.constant 0 : index
    %c0_222 = arith.constant 0 : index
    %926 = vector.load %arg8[%c0_221, %c0_222] : memref<32x8xf32, #tpu.memory_space<vmem>>, vector<32x8xf32>
    %cst_223 = arith.constant dense<0.000000e+00> : vector<2x8xf32>
    %927 = tpu.matmul %925, %926, %cst_223 {dimension_numbers = #tpu.dot_dimension_numbers<[1], [0], [0], [1], [0, 0, 1, 1], [], []>} : vector<2x32xf32>, vector<32x8xf32>, vector<2x8xf32> -> vector<2x8xf32>
    %c0_224 = arith.constant 0 : index
    %c0_225 = arith.constant 0 : index
    %928 = vector.load %arg9[%c0_224, %c0_225] : memref<1x8xf32, #tpu.memory_space<vmem>>, vector<1x8xf32>
    %929 = vector.broadcast %928 : vector<1x8xf32> to vector<2x8xf32>
    %930 = arith.addf %927, %929 : vector<2x8xf32>
    %c0_226 = arith.constant 0 : index
    %c0_227 = arith.constant 0 : index
    %931 = vector.load %arg10[%c0_226, %c0_227] : memref<2x8xf32, #tpu.memory_space<vmem>>, vector<2x8xf32>
    "tpu.trace_start"() <{level = 10 : i32, message = "nr,nq->rq"}> : () -> ()
    %cst_228 = arith.constant dense<0.000000e+00> : vector<8x8xf32>
    %932 = tpu.matmul %930, %931, %cst_228 {dimension_numbers = #tpu.dot_dimension_numbers<[0], [0], [1], [1], [0, 1, 1, 1], [], []>} : vector<2x8xf32>, vector<2x8xf32>, vector<8x8xf32> -> vector<8x8xf32>
    "tpu.trace_stop"() : () -> ()
    %cst_229 = arith.constant dense<0.000000e+00> : vector<8xf32>
    %933 = vector.multi_reduction <add>, %932, %cst_229 [0] : vector<8x8xf32> to vector<8xf32>
    %934 = vector.shape_cast %933 : vector<8xf32> to vector<1x8xf32>
    %cst_230 = arith.constant dense<0xFF800000> : vector<1xf32>
    %935 = vector.multi_reduction <maximumf>, %934, %cst_230 [1] : vector<1x8xf32> to vector<1xf32>
    %936 = vector.shape_cast %935 : vector<1xf32> to vector<1x1xf32>
    %937 = vector.broadcast %936 : vector<1x1xf32> to vector<1x8xf32>
    %938 = arith.subf %934, %937 : vector<1x8xf32>
    %939 = math.exp %938 : vector<1x8xf32>
    %cst_231 = arith.constant dense<0.000000e+00> : vector<1xf32>
    %940 = vector.multi_reduction <add>, %939, %cst_231 [1] : vector<1x8xf32> to vector<1xf32>
    %941 = vector.shape_cast %940 : vector<1xf32> to vector<1x1xf32>
    %942 = vector.broadcast %941 : vector<1x1xf32> to vector<1x8xf32>
    %943 = arith.divf %939, %942 : vector<1x8xf32>
    %c0_232 = arith.constant 0 : index
    %c0_233 = arith.constant 0 : index
    %944 = vector.load %arg11[%c0_232, %c0_233] : memref<1x8xf32, #tpu.memory_space<vmem>>, vector<1x8xf32>
    tpu.vector_store %arg11[%c0_232, %c0_233], %943 {strides = array<i32>} : memref<1x8xf32, #tpu.memory_space<vmem>>, vector<1x8xf32>,
    return
  }
}

</mosaic_0001>

<bundles_post_ra>
// kernel: matching_net_forward.1
= control target key start
LH: loop header
LB: loop body
LE: loop exit
PB: predicated region body
PF: predicated region fallthrough
CT: control target
= control target key end

     0   :  { %s5004_s0 = inlined_call_operand.vmem [shape: f32[8,32], index: 0, kind: input, shape index: {}]   ;;  %s5005_s1 = inlined_call_operand.vmem [shape: f32[16,64], index: 1, kind: input, shape index: {}]   ;;  %s5006_s2 = inlined_call_operand.vmem [shape: f32[64,128], index: 2, kind: input, shape index: {}]   ;;  %s5007_s3 = inlined_call_operand.vmem [shape: f32[32,128], index: 3, kind: input, shape index: {}]   ;;  %s5008_s4 = inlined_call_operand.vmem [shape: f32[1,128], index: 4, kind: input, shape index: {}]   ;;  %s5009_s5 = inlined_call_operand.vmem [shape: f32[32,128], index: 5, kind: input, shape index: {}]   ;;  %s5010_s6 = inlined_call_operand.vmem [shape: f32[32,128], index: 6, kind: input, shape index: {}]   ;;  %s5011_s7 = inlined_call_operand.vmem [shape: f32[1,128], index: 7, kind: input, shape index: {}]   ;;  %s5012_s8 = inlined_call_operand.vmem [shape: f32[32,8], index: 8, kind: input, shape index: {}]   ;;  %s5013_s9 = inlined_call_operand.vmem [shape: f32[1,8], index: 9, kind: input, shape index: {}]   ;;  %s5014_s10 = inlined_call_operand.vmem [shape: f32[2,8], index: 10, kind: input, shape index: {}]   ;;  %s5015_s11 = inlined_call_operand.hbm [shape: f32[1,8], index: 11, kind: output, shape index: {}]  }
   0x1   :  { %v49_v0 = vld [vmem:[%s5006_s2 + $0x38] sm:$0xff]  ;;  %v48_v1 = vld [vmem:[%s5006_s2 + $0x30] sm:$0xff]  ;;  %v47_v2 = vld [vmem:[%s5006_s2 + $0x28] sm:$0xff] }
   0x2   :  { %69 = vmatpush.msra.mxu0 %v49_v0  ;;  %v87_v3 = vld [vmem:[%s5007_s3 + $0x18] sm:$0xff]  ;;  %v86_v4 = vld [vmem:[%s5007_s3 + $0x10] sm:$0xff]  ;;  %v46_v5 = vld [vmem:[%s5006_s2 + $0x20] sm:$0xff] }
   0x3   :  { %104 = vmatpush.msra.mxu1 %v87_v3  ;;  %v85_v6 = vld [vmem:[%s5007_s3 + $0x8] sm:$0xff]  ;;  %167 = vmatpush.msra.mxu2 %v87_v3 }
   0x4   :  { %70 = vmatpush.msra.mxu0 %v48_v1 }
   0x5   :  { %105 = vmatpush.msra.mxu1 %v86_v4 }
   0x6   :  { %71 = vmatpush.msra.mxu0 %v47_v2 }
   0x7   :  { %16 = vsyncpa [#allocation3], 0  ;;  %v45_v7 = vld [vmem:[%s5006_s2 + $0x18] sm:$0xff]  ;;  %v84_v8 = vld [vmem:[%s5007_s3] sm:$0xff]  ;;  %168 = vmatpush.msra.mxu2 %v86_v4  ;;  %106 = vmatpush.msra.mxu1 %v85_v6  ;;  %v4267_v11 = vmov 0.0   ;;  %vm54_vm0 = vcmask 523264  }
   0x8   :  { %72 = vmatpush.msra.mxu0 %v46_v5  ;;  %v44_v9 = vld [vmem:[%s5006_s2 + $0x10] sm:$0xff]  ;;  %v43_v10 = vld [vmem:[%s5006_s2 + $0x8] sm:$0xff]  ;;  %v42_v12 = vld [vmem:[%s5006_s2] sm:$0xff]  ;;  %s4268_s2 = smov 64   ;;  %vm88_vm5 = vcmask 261120   ;;  %vm3470_vm15 = vcmask 1048320  }
   0x9   :  { %169 = vmatpush.msra.mxu2 %v85_v6  ;;  %107 = vmatpush.msra.mxu1 %v84_v8  ;;  %v40_v13 = vld [vmem:[%s5005_s1] sm:$0xff]  ;;  %v236_v35 = vld [vmem:[%s5009_s5 + $0x18] sm:$0xff]  ;;  %v235_v36 = vld [vmem:[%s5009_s5 + $0x10] sm:$0xff]  ;;  %s3754_s26 = sshll.u32 %s5015_s11, 4  ;;  %s3755_s26 = int_to_ptr.hbm [resolvable:$true] %s3754_s26 }
   0xa   :  { %73 = vmatpush.msra.mxu0 %v45_v7  ;;  %108 = vmatmul.f32.vlgmr.msra.gmra.mxu1 %v4267_v11  ;;  %v4376_v14 = vld [vmem:[%s5008_s4] ss:$0 sm:$0xff]  ;;  %s4269_s4 = smov 32   ;;  %v4390_v37 = vld [vmem:[%s5010_s6 + $0x18] sm:$0xff]  ;;  %v234_v38 = vld [vmem:[%s5009_s5 + $0x8] sm:$0xff] }
   0xb   :  { %170 = vmatpush.msra.mxu2 %v84_v8  ;;  %256 = vmatpush.msra.mxu3 %v236_v35  ;;  %v4399_v39 = vld [vmem:[%s5010_s6 + $0x10] sm:$0xff]  ;;  %v4404_v40 = vld [vmem:[%s5010_s6 + $0x8] sm:$0xff]  ;;  %v233_v41 = vld [vmem:[%s5009_s5] sm:$0xff] }
   0xc   :  { %74 = vmatpush.msra.mxu0 %v44_v9  ;;  %280 = vmatpush.msrb.mxu1 %v4390_v37  ;;  %v4413_v42 = vld [vmem:[%s5004_s0] sm:$0xff]  ;;  %v41_v60 = vld [vmem:[%s5005_s1 + $0x8] sm:$0xff]  ;;  %s4270_s1 = smov 96  }
   0xd   :  { %257 = vmatpush.msra.mxu3 %v235_v36  ;;  %v4418_v43 = vld [vmem:[%s5010_s6] sm:$0xff] }
   0xe   :  { %75 = vmatpush.msra.mxu0 %v43_v10  ;;  %281 = vmatpush.msrb.mxu1 %v4399_v39  ;;  %v3921_v48 = vld [vmem:[%s5011_s7] ss:$0 sm:$0xff] }
   0xf   :  { %258 = vmatpush.msra.mxu3 %v234_v38 }
  0x10   :  { %76 = vmatpush.msra.mxu0 %v42_v12  ;;  %282 = vmatpush.msrb.mxu1 %v4404_v40 }
  0x11   :  { %3763 = vmatmul.msk.f32.vlgmr.msra.gmra.mxu0 %vm54_vm0, %v40_v13  ;;  %259 = vmatpush.msra.mxu3 %v233_v41 }
  0x12   :  { %3769 = vmatmul.msk.f32.vlgmr.msra.gmra.mxu3 %vm88_vm5, %v4413_v42  ;;  %283 = vmatpush.msrb.mxu1 %v4418_v43 }
  0x13   :  { %284 = vmatmul.f32.vlgmr.msrb.gmra.mxu1 %v4267_v11 }
  0x19   :  { %3764 = vmatmul.msk.f32.gmra.mxu0 %vm54_vm0, %v41_v60 }
  0x87   :  { %v109_v16 = vpop.f32.mrf.mxu1 }
  0x8e   :  { %v78_v15 = vpop.f32.mrf.mxu0 }
  0x8f   :  { %v79_v17 = vadd.f32 %v4376_v14, %v78_v15 }
  0x90   :  { %v285_v50 = vpop.f32.mrf.mxu1 }
  0x91   :  { %v112_v18 = vadd.f32 %v109_v16, %v79_v17 }
  0x93   :  { %3923 = vtanh.f32 %v112_v18  ;;  %v3765_v20 = vmul.f32 -1.442695, %v112_v18 }
  0x95   :  { %3925 = vpow2.f32 %v3765_v20  ;;  %v261_v49 = vpop.f32.mrf.mxu3 }
  0x96   :  { %v4432_v51 = vadd.f32 %v3921_v48, %v261_v49  ;;  %v81_v9 = vpop.f32.mrf.mxu0 }
  0x97   :  { %v82_v10 = vadd.f32 %v4376_v14, %v81_v9 }
  0x98   :  { %v288_v52 = vadd.f32 %v285_v50, %v4432_v51 }
  0x99   :  { %v3924_v19 = vpop.eup %3923 }
  0x9a   :  { %135 = vrot.lane.b32.xlu0 %v3924_v19, %s4268_s2  ;;  %v3770_v56 = vmul.f32 -1.442695, %v288_v52  ;;  %v213_v19 = vlaneseq }
  0x9b   :  { %v3926_v21 = vpop.eup %3925 }
  0x9c   :  { %v116_v22 = vadd.f32 1.0, %v3926_v21  ;;  %v214_v21 = vand.u32 127, %v213_v19 }
  0x9e   :  { %3927 = vrcp.f32 %v116_v22  ;;  %v128_v28 = vand.u32 2147483648, %v116_v22  ;;  %vm122_vm2 = vweird.f32 %v116_v22  ;;  %v126_v29 = vand.u32 2147483647, %v116_v22 }
  0x9f   :  { %vm215_vm10 = vcmp.lt.s32.totalorder %v214_v21, 16 }
  0xa0   :  { %v129_v31 = vor.u32 1.1754944e-38, %v128_v28  ;;  %vm127_vm4 = vcmp.eq.f32.partialorder %v126_v29, 8.507059e+37  ;;  %v3768_v14 = vsel %vm215_vm10, 1.0, %v4267_v11 }
  0xa4   :  { %v3928_v23 = vpop.eup %3927 }
  0xa5   :  { %v118_v24 = vmul.f32 %v3928_v23, %v116_v22  ;;  %vm123_vm1 = vweird.f32 %v3928_v23 }
  0xa6   :  { %vm124_vm3 = vmor %vm122_vm2, %vm123_vm1 }
  0xa7   :  { %v119_v25 = vsub.f32 1.0, %v118_v24 }
  0xa9   :  { %v120_v26 = vmul.f32 %v3928_v23, %v119_v25 }
  0xab   :  { %v121_v27 = vadd.f32 %v3928_v23, %v120_v26 }
  0xad   :  { %v125_v30 = vsel %vm124_vm3, %v3928_v23, %v121_v27 }
  0xae   :  { %v130_v33 = vsel %vm127_vm4, %v129_v31, %v125_v30  ;;  %vm409_vm4 = vcmask 64512  }
  0xaf   :  { %v133_v44 = vmul.f32 0.0, %v130_v33 }
 0x10c   :  { %v136_v32 = vpop.permute.xlu0 %135 }
 0x10d   :  { %v138_v34 = vmul.f32 %v136_v32, %v130_v33 }
 0x10f   :  { %140 = vrot.lane.b32.xlu0 %v138_v34, %s4269_s4 }
 0x181   :  { %v141_v45 = vpop.permute.xlu0 %140 }
 0x182   :  { %v4425_v46 = vadd.f32 %v141_v45, %v133_v44 }
 0x184   :  { %3929 = vtanh.f32 %v4425_v46 }
 0x185   :  { %3931 = vtanh.f32 %v288_v52  ;;  %v218_v52 = vsub.f32 1.0, %v3768_v14 }
 0x186   :  { %3933 = vpow2.f32 %v3770_v56 }
 0x18a   :  { %v3930_v47 = vpop.eup %3929 }
 0x18b   :  { %146 = vrot.lane.b32.xlu1 %v3930_v47, %s4268_s2  ;;  %v3932_v55 = vpop.eup %3931 }
 0x18c   :  { %311 = vrot.lane.b32.xlu2 %v3932_v55, %s4268_s2  ;;  %v3934_v57 = vpop.eup %3933 }
 0x18d   :  { %v292_v58 = vadd.f32 1.0, %v3934_v57 }
 0x18f   :  { %3935 = vrcp.f32 %v292_v58  ;;  %v304_v62 = vand.u32 2147483648, %v292_v58  ;;  %vm298_vm6 = vweird.f32 %v292_v58  ;;  %v302_v0 = vand.u32 2147483647, %v292_v58 }
 0x191   :  { %v305_v2 = vor.u32 1.1754944e-38, %v304_v62  ;;  %vm303_vm9 = vcmp.eq.f32.partialorder %v302_v0, 8.507059e+37 }
 0x195   :  { %v3936_v59 = vpop.eup %3935 }
 0x196   :  { %v294_v61 = vmul.f32 %v3936_v59, %v292_v58  ;;  %vm299_vm7 = vweird.f32 %v3936_v59 }
 0x197   :  { %vm300_vm8 = vmor %vm298_vm6, %vm299_vm7 }
 0x198   :  { %v295_v63 = vsub.f32 1.0, %v294_v61 }
 0x19a   :  { %v296_v1 = vmul.f32 %v3936_v59, %v295_v63 }
 0x19c   :  { %v297_v3 = vadd.f32 %v3936_v59, %v296_v1 }
 0x19e   :  { %v301_v4 = vsel %vm300_vm8, %v3936_v59, %v297_v3 }
 0x19f   :  { %v306_v6 = vsel %vm303_vm9, %v305_v2, %v301_v4 }
 0x1a0   :  { %v309_v15 = vmul.f32 0.0, %v306_v6 }
 0x1e6   :  { %v312_v5 = vpop.permute.xlu2 %311 }
 0x1e7   :  { %v314_v7 = vmul.f32 %v312_v5, %v306_v6 }
 0x1e9   :  { %316 = vrot.lane.b32.xlu0 %v314_v7, %s4269_s4 }
 0x1fd   :  { %v147_v53 = vpop.permute.xlu1 %146 }
 0x1fe   :  { %v4435_v54 = vmul.f32 %v147_v53, %v130_v33 }
 0x200   :  { %151 = vrot.lane.b32.xlu1 %v4435_v54, %s4269_s4 }
 0x25b   :  { %v317_v16 = vpop.permute.xlu0 %316 }
 0x25c   :  { %v4447_v17 = vadd.f32 %v317_v16, %v309_v15 }
 0x272   :  { %v152_v8 = vpop.permute.xlu1 %151 }
 0x273   :  { %3766 = vmatmul.msk.f32.vlgmr.msra.gmra.mxu2 %vm88_vm5, %v152_v8 }
 0x2f6   :  { %v172_v12 = vpop.f32.mrf.mxu2 }
 0x2f7   :  { %v175_v13 = vadd.f32 %v172_v12, %v82_v10 }
 0x2f9   :  { %3937 = vtanh.f32 %v175_v13  ;;  %v3767_v22 = vmul.f32 -1.442695, %v175_v13 }
 0x2fa   :  { %3939 = vtanh.f32 %v4447_v17 }
 0x2fb   :  { %3941 = vpow2.f32 %v3767_v22 }
 0x2ff   :  { %v3938_v18 = vpop.eup %3937 }
 0x300   :  { %198 = vrot.lane.b32.xlu2 %v3938_v18, %s4268_s2  ;;  %v3940_v20 = vpop.eup %3939 }
 0x301   :  { %v3942_v23 = vpop.eup %3941 }
 0x302   :  { %v179_v24 = vadd.f32 1.0, %v3942_v23 }
 0x304   :  { %3943 = vrcp.f32 %v179_v24  ;;  %v191_v30 = vand.u32 2147483648, %v179_v24  ;;  %vm185_vm12 = vweird.f32 %v179_v24  ;;  %v189_v31 = vand.u32 2147483647, %v179_v24 }
 0x306   :  { %v192_v33 = vor.u32 1.1754944e-38, %v191_v30  ;;  %vm190_vm14 = vcmp.eq.f32.partialorder %v189_v31, 8.507059e+37 }
 0x308   :  { %322 = vrot.lane.b32.xlu2 %v3940_v20, %s4268_s2 }
 0x30a   :  { %v3944_v25 = vpop.eup %3943 }
 0x30b   :  { %v181_v26 = vmul.f32 %v3944_v25, %v179_v24  ;;  %vm186_vm11 = vweird.f32 %v3944_v25 }
 0x30c   :  { %vm187_vm13 = vmor %vm185_vm12, %vm186_vm11 }
 0x30d   :  { %v182_v27 = vsub.f32 1.0, %v181_v26 }
 0x30f   :  { %v183_v28 = vmul.f32 %v3944_v25, %v182_v27 }
 0x310   :  { %220 = vrot.lane.b32.xlu2 %v3768_v14, %s4270_s1 }
 0x311   :  { %v184_v29 = vadd.f32 %v3944_v25, %v183_v28 }
 0x313   :  { %v188_v32 = vsel %vm187_vm13, %v3944_v25, %v184_v29 }
 0x314   :  { %v193_v34 = vsel %vm190_vm14, %v192_v33, %v188_v32 }
 0x315   :  { %v196_v38 = vmul.f32 %v193_v34, %v4425_v46 }
 0x35a   :  { %v199_v35 = vpop.permute.xlu2 %198 }
 0x35b   :  { %v201_v36 = vmul.f32 %v199_v35, %v193_v34 }
 0x35d   :  { %203 = vrot.lane.b32.xlu1 %v201_v36, %s4269_s4 }
 0x362   :  { %v323_v45 = vpop.permute.xlu2 %322 }
 0x363   :  { %v325_v47 = vmul.f32 %v323_v45, %v306_v6 }
 0x365   :  { %326 = vrot.lane.b32.xlu1 %v4413_v42, %s4270_s1 }
 0x36a   :  { %v221_v55 = vpop.permute.xlu2 %220 }
 0x36b   :  { %v223_v57 = vmul.f32 %v221_v55, %v4435_v54 }
 0x3cf   :  { %v204_v41 = vpop.permute.xlu1 %203 }
 0x3d0   :  { %v206_v44 = vadd.f32 %v204_v41, %v196_v38 }
 0x3d2   :  { %3945 = vtanh.f32 %v206_v44 }
 0x3d7   :  { %v4459_v48 = vpop.permute.xlu1 %326 }
 0x3d8   :  { %v3946_v49 = vpop.eup %3945  ;;  %v329_v50 = vadd.f32 %v4459_v48, %v325_v47 }
 0x3d9   :  { %209 = vrot.lane.b32.xlu0 %v3946_v49, %s4268_s2 }
 0x3da   :  { %334 = vrot.lane.b32.xlu1 %v329_v50, %s4269_s4 }
 0x3e1   :  { %225 = vrot.lane.b32.xlu0 %v218_v52, %s4270_s1 }
 0x44b   :  { %v210_v42 = vpop.permute.xlu0 %209 }
 0x44c   :  { %v335_v53 = vpop.permute.xlu1 %334  ;;  %v212_v46 = vmul.f32 %v210_v42, %v193_v34 }
 0x44d   :  { %3771 = vmatpush.xpose.msk.msrb.mxu2 %vm88_vm5, %v335_v53  ;;  %3773 = vmatpush.xpose.msk.msrb.mxu3 %vm88_vm5, %v335_v53 }
 0x44e   :  { %v230_v58 = vmul.f32 %v221_v55, %v212_v46 }
 0x451   :  { %452 = vmatpush.msra.mxu2 %v4390_v37 }
 0x453   :  { %453 = vmatpush.msra.mxu2 %v4399_v39  ;;  %v226_v56 = vpop.permute.xlu0 %225 }
 0x454   :  { %v228_v59 = vmul.f32 %v226_v56, %v212_v46  ;;  %v231_v60 = vmul.f32 %v226_v56, %v4435_v54 }
 0x455   :  { %454 = vmatpush.msra.mxu2 %v4404_v40 }
 0x456   :  { %v4473_v61 = vadd.f32 %v228_v59, %v223_v57  ;;  %v232_v62 = vadd.f32 %v231_v60, %v230_v58 }
 0x457   :  { %455 = vmatpush.msra.mxu2 %v4418_v43 }
 0x458   :  { %v3539_v63 = vmul.f32 %v232_v62, %v232_v62  ;;  %361 = vrot.lane.b32.xlu0 %v232_v62, %s4269_s4  ;;  %331 = vrot.lane.b32.xlu2 %v4473_v61, %s4269_s4 }
 0x45a   :  { %v4479_v0 = vsel %vm3470_vm15, %v3539_v63, 0.0 }
 0x4b2   :  { %v4481_v1 = vpop.permute.xlu2 %331 }
 0x4b3   :  { %3772 = vmatmul.msk.f32.vlgmr.msrb.gmra.mxu2 %vm88_vm5, %v4481_v1  ;;  %428 = vmatpush.msra.mxu1 %v4481_v1 }
 0x4b4   :  { %609 = vmatpush.msrb.mxu2 %v4390_v37 }
 0x4b5   :  { %585 = vmatpush.msrb.mxu1 %v4481_v1 }
 0x4b6   :  { %610 = vmatpush.msrb.mxu2 %v4399_v39 }
 0x4b8   :  { %611 = vmatpush.msrb.mxu2 %v4404_v40 }
 0x4ba   :  { %612 = vmatpush.msrb.mxu2 %v4418_v43 }
 0x4ca   :  { %v4491_v54 = vpop.permute.xlu0 %361 }
 0x4cb   :  { %3774 = vmatmul.msk.f32.vlgmr.msrb.gmra.mxu3 %vm88_vm5, %v4491_v54 }
 0x536   :  { %v357_v2 = vpop.f32.mrf.mxu2 }
 0x54e   :  { %v382_v3 = vpop.f32.mrf.mxu3 }
 0x54f   :  { %v385_v4 = vmax.f32 %v357_v2, %v382_v3 }
 0x551   :  { %v386_v5 = vsub.f32 %v357_v2, %v385_v4  ;;  %v389_v6 = vsub.f32 %v382_v3, %v385_v4 }
 0x553   :  { %v387_v7 = vmul.f32 1.442695, %v386_v5  ;;  %v390_v8 = vmul.f32 1.442695, %v389_v6 }
 0x555   :  { %3947 = vpow2.f32 %v387_v7 }
 0x556   :  { %3949 = vpow2.f32 %v390_v8 }
 0x55b   :  { %v3948_v9 = vpop.eup %3947 }
 0x55c   :  { %v3950_v10 = vpop.eup %3949 }
 0x55d   :  { %v392_v12 = vadd.f32 %v3950_v10, %v3948_v9 }
 0x55f   :  { %3951 = vrcp.f32 %v392_v12  ;;  %v404_v18 = vand.u32 2147483648, %v392_v12  ;;  %v402_v21 = vand.u32 2147483647, %v392_v12  ;;  %vm398_vm1 = vweird.f32 %v392_v12 }
 0x561   :  { %v405_v22 = vor.u32 1.1754944e-38, %v404_v18  ;;  %vm403_vm3 = vcmp.eq.f32.partialorder %v402_v21, 8.507059e+37 }
 0x565   :  { %v3952_v13 = vpop.eup %3951 }
 0x566   :  { %v394_v15 = vmul.f32 %v3952_v13, %v392_v12  ;;  %vm399_vm0 = vweird.f32 %v3952_v13 }
 0x567   :  { %vm400_vm2 = vmor %vm398_vm1, %vm399_vm0 }
 0x568   :  { %v395_v16 = vsub.f32 1.0, %v394_v15 }
 0x56a   :  { %v396_v20 = vmul.f32 %v3952_v13, %v395_v16 }
 0x56c   :  { %v397_v14 = vadd.f32 %v3952_v13, %v396_v20 }
 0x56e   :  { %v401_v23 = vsel %vm400_vm2, %v3952_v13, %v397_v14 }
 0x56f   :  { %v406_v24 = vsel %vm403_vm3, %v405_v22, %v401_v23 }
 0x570   :  { %v407_v25 = vmul.f32 %v3948_v9, %v406_v24 }
 0x572   :  { %3775 = vmatmul.msk.f32.vlgmr.msra.gmra.mxu1 %vm409_vm4, %v407_v25 }
 0x573   :  { %742 = vmatpush.msra.mxu1 %v4481_v1 }
 0x5ef   :  { %v430_v26 = vpop.f32.mrf.mxu1 }
 0x5f0   :  { %3776 = vmatmul.msk.f32.vlgmr.msra.gmra.mxu2 %vm88_vm5, %v430_v26 }
 0x5f1   :  { %766 = vmatpush.msra.mxu2 %v4390_v37 }
 0x5f3   :  { %767 = vmatpush.msra.mxu2 %v4399_v39 }
 0x5f5   :  { %768 = vmatpush.msra.mxu2 %v4404_v40 }
 0x5f7   :  { %769 = vmatpush.msra.mxu2 %v4418_v43 }
 0x673   :  { %v457_v27 = vpop.f32.mrf.mxu2 }
 0x674   :  { %v460_v28 = vadd.f32 %v457_v27, %v4432_v51 }
 0x676   :  { %3953 = vtanh.f32 %v460_v28  ;;  %v3777_v30 = vmul.f32 -1.442695, %v460_v28 }
 0x678   :  { %3955 = vpow2.f32 %v3777_v30 }
 0x67c   :  { %v3954_v29 = vpop.eup %3953 }
 0x67d   :  { %483 = vrot.lane.b32.xlu1 %v3954_v29, %s4268_s2 }
 0x67e   :  { %v3956_v31 = vpop.eup %3955 }
 0x67f   :  { %v464_v32 = vadd.f32 1.0, %v3956_v31 }
 0x681   :  { %3957 = vrcp.f32 %v464_v32  ;;  %v476_v41 = vand.u32 2147483648, %v464_v32  ;;  %vm470_vm7 = vweird.f32 %v464_v32  ;;  %v474_v44 = vand.u32 2147483647, %v464_v32 }
 0x683   :  { %v477_v47 = vor.u32 1.1754944e-38, %v476_v41  ;;  %vm475_vm9 = vcmp.eq.f32.partialorder %v474_v44, 8.507059e+37 }
 0x687   :  { %v3958_v33 = vpop.eup %3957 }
 0x688   :  { %v466_v34 = vmul.f32 %v3958_v33, %v464_v32  ;;  %vm471_vm6 = vweird.f32 %v3958_v33 }
 0x689   :  { %vm472_vm8 = vmor %vm470_vm7, %vm471_vm6 }
 0x68a   :  { %v467_v35 = vsub.f32 1.0, %v466_v34 }
 0x68c   :  { %v468_v36 = vmul.f32 %v3958_v33, %v467_v35 }
 0x68e   :  { %v469_v38 = vadd.f32 %v3958_v33, %v468_v36 }
 0x690   :  { %v473_v45 = vsel %vm472_vm8, %v3958_v33, %v469_v38 }
 0x691   :  { %v478_v50 = vsel %vm475_vm9, %v477_v47, %v473_v45 }
 0x692   :  { %v481_v42 = vmul.f32 %v478_v50, %v4447_v17 }
 0x6ef   :  { %v484_v49 = vpop.permute.xlu1 %483 }
 0x6f0   :  { %v486_v52 = vmul.f32 %v484_v49, %v478_v50 }
 0x6f2   :  { %488 = vrot.lane.b32.xlu2 %v486_v52, %s4269_s4 }
 0x74c   :  { %v489_v53 = vpop.permute.xlu2 %488 }
 0x74d   :  { %v4506_v46 = vadd.f32 %v489_v53, %v481_v42 }
 0x74f   :  { %3959 = vtanh.f32 %v4506_v46 }
 0x755   :  { %v3960_v55 = vpop.eup %3959 }
 0x756   :  { %494 = vrot.lane.b32.xlu0 %v3960_v55, %s4268_s2 }
 0x7c8   :  { %v495_v56 = vpop.permute.xlu0 %494 }
 0x7c9   :  { %v497_v57 = vmul.f32 %v495_v56, %v478_v50 }
 0x7cb   :  { %v498_v58 = vadd.f32 %v497_v57, %v4459_v48 }
 0x7cd   :  { %500 = vrot.lane.b32.xlu1 %v498_v58, %s4269_s4 }
 0x83f   :  { %v501_v59 = vpop.permute.xlu1 %500 }
 0x840   :  { %3778 = vmatpush.xpose.msk.msra.mxu3 %vm88_vm5, %v501_v59  ;;  %3780 = vmatpush.xpose.msk.msrb.mxu0 %vm88_vm5, %v501_v59 }
 0x843   :  { %3779 = vmatmul.msk.f32.vlgmr.msra.gmra.mxu3 %vm88_vm5, %v4481_v1  ;;  %3781 = vmatmul.msk.f32.vlgmr.msrb.gmra.mxu0 %vm88_vm5, %v4491_v54 }
 0x8c0   :  { %v541_v17 = vpop.f32.mrf.mxu0 }
 0x8c6   :  { %v521_v60 = vpop.f32.mrf.mxu3 }
 0x8c7   :  { %v544_v62 = vmax.f32 %v521_v60, %v541_v17 }
 0x8c9   :  { %v545_v63 = vsub.f32 %v521_v60, %v544_v62  ;;  %v548_v2 = vsub.f32 %v541_v17, %v544_v62 }
 0x8cb   :  { %v546_v3 = vmul.f32 1.442695, %v545_v63  ;;  %v549_v4 = vmul.f32 1.442695, %v548_v2 }
 0x8cd   :  { %3961 = vpow2.f32 %v546_v3 }
 0x8ce   :  { %3963 = vpow2.f32 %v549_v4 }
 0x8d3   :  { %v3962_v5 = vpop.eup %3961 }
 0x8d4   :  { %v3964_v6 = vpop.eup %3963 }
 0x8d5   :  { %v551_v7 = vadd.f32 %v3964_v6, %v3962_v5 }
 0x8d7   :  { %3965 = vrcp.f32 %v551_v7  ;;  %v563_v12 = vand.u32 2147483648, %v551_v7  ;;  %v561_v15 = vand.u32 2147483647, %v551_v7  ;;  %vm557_vm11 = vweird.f32 %v551_v7 }
 0x8d9   :  { %v564_v18 = vor.u32 1.1754944e-38, %v563_v12  ;;  %vm562_vm13 = vcmp.eq.f32.partialorder %v561_v15, 8.507059e+37 }
 0x8dd   :  { %v3966_v8 = vpop.eup %3965 }
 0x8de   :  { %v553_v9 = vmul.f32 %v3966_v8, %v551_v7  ;;  %vm558_vm10 = vweird.f32 %v3966_v8 }
 0x8df   :  { %vm559_vm12 = vmor %vm557_vm11, %vm558_vm10 }
 0x8e0   :  { %v554_v10 = vsub.f32 1.0, %v553_v9 }
 0x8e2   :  { %v555_v13 = vmul.f32 %v3966_v8, %v554_v10 }
 0x8e4   :  { %v556_v16 = vadd.f32 %v3966_v8, %v555_v13 }
 0x8e6   :  { %v560_v20 = vsel %vm559_vm12, %v3966_v8, %v556_v16 }
 0x8e7   :  { %v565_v21 = vsel %vm562_vm13, %v564_v18, %v560_v20 }
 0x8e8   :  { %v566_v14 = vmul.f32 %v3962_v5, %v565_v21 }
 0x8ea   :  { %3782 = vmatmul.msk.f32.vlgmr.msrb.gmra.mxu1 %vm409_vm4, %v566_v14 }
 0x8eb   :  { %899 = vmatpush.msrb.mxu1 %v4481_v1 }
 0x967   :  { %v587_v22 = vpop.f32.mrf.mxu1 }
 0x968   :  { %3783 = vmatmul.msk.f32.vlgmr.msrb.gmra.mxu2 %vm88_vm5, %v587_v22 }
 0x969   :  { %923 = vmatpush.msrb.mxu2 %v4390_v37 }
 0x96b   :  { %924 = vmatpush.msrb.mxu2 %v4399_v39 }
 0x96d   :  { %925 = vmatpush.msrb.mxu2 %v4404_v40 }
 0x96f   :  { %926 = vmatpush.msrb.mxu2 %v4418_v43 }
 0x9eb   :  { %v614_v23 = vpop.f32.mrf.mxu2 }
 0x9ec   :  { %v617_v24 = vadd.f32 %v614_v23, %v4432_v51 }
 0x9ee   :  { %3967 = vtanh.f32 %v617_v24  ;;  %v3784_v26 = vmul.f32 -1.442695, %v617_v24 }
 0x9f0   :  { %3969 = vpow2.f32 %v3784_v26 }
 0x9f4   :  { %v3968_v25 = vpop.eup %3967 }
 0x9f5   :  { %640 = vrot.lane.b32.xlu2 %v3968_v25, %s4268_s2 }
 0x9f6   :  { %v3970_v27 = vpop.eup %3969 }
 0x9f7   :  { %v621_v28 = vadd.f32 1.0, %v3970_v27 }
 0x9f9   :  { %3971 = vrcp.f32 %v621_v28  ;;  %v633_v34 = vand.u32 2147483648, %v621_v28  ;;  %vm627_vm0 = vweird.f32 %v621_v28  ;;  %v631_v35 = vand.u32 2147483647, %v621_v28 }
 0x9fb   :  { %v634_v38 = vor.u32 1.1754944e-38, %v633_v34  ;;  %vm632_vm2 = vcmp.eq.f32.partialorder %v631_v35, 8.507059e+37 }
 0x9ff   :  { %v3972_v29 = vpop.eup %3971 }
 0xa00   :  { %v623_v30 = vmul.f32 %v3972_v29, %v621_v28  ;;  %vm628_vm14 = vweird.f32 %v3972_v29 }
 0xa01   :  { %vm629_vm1 = vmor %vm627_vm0, %vm628_vm14 }
 0xa02   :  { %v624_v31 = vsub.f32 1.0, %v623_v30 }
 0xa04   :  { %v625_v32 = vmul.f32 %v3972_v29, %v624_v31 }
 0xa06   :  { %v626_v33 = vadd.f32 %v3972_v29, %v625_v32 }
 0xa08   :  { %v630_v36 = vsel %vm629_vm1, %v3972_v29, %v626_v33 }
 0xa09   :  { %v635_v44 = vsel %vm632_vm2, %v634_v38, %v630_v36 }
 0xa0a   :  { %v638_v47 = vmul.f32 %v635_v44, %v4506_v46 }
 0xa4f   :  { %v641_v41 = vpop.permute.xlu2 %640 }
 0xa50   :  { %v643_v45 = vmul.f32 %v641_v41, %v635_v44 }
 0xa52   :  { %645 = vrot.lane.b32.xlu0 %v643_v45, %s4269_s4 }
 0xac4   :  { %v646_v49 = vpop.permute.xlu0 %645 }
 0xac5   :  { %v4529_v50 = vadd.f32 %v646_v49, %v638_v47 }
 0xac7   :  { %3973 = vtanh.f32 %v4529_v50 }
 0xacd   :  { %v3974_v52 = vpop.eup %3973 }
 0xace   :  { %651 = vrot.lane.b32.xlu1 %v3974_v52, %s4268_s2 }
 0xb40   :  { %v652_v42 = vpop.permute.xlu1 %651 }
 0xb41   :  { %v654_v53 = vmul.f32 %v652_v42, %v635_v44 }
 0xb43   :  { %v655_v55 = vadd.f32 %v654_v53, %v4459_v48 }
 0xb45   :  { %657 = vrot.lane.b32.xlu2 %v655_v55, %s4269_s4 }
 0xb9f   :  { %v658_v56 = vpop.permute.xlu2 %657 }
 0xba0   :  { %3785 = vmatpush.xpose.msk.msrb.mxu3 %vm88_vm5, %v658_v56  ;;  %3787 = vmatpush.xpose.msk.msra.mxu0 %vm88_vm5, %v658_v56 }
 0xba3   :  { %3786 = vmatmul.msk.f32.vlgmr.msrb.gmra.mxu3 %vm88_vm5, %v4481_v1  ;;  %3788 = vmatmul.msk.f32.vlgmr.msra.gmra.mxu0 %vm88_vm5, %v4491_v54 }
 0xc20   :  { %v698_v46 = vpop.f32.mrf.mxu0 }
 0xc26   :  { %v678_v57 = vpop.f32.mrf.mxu3 }
 0xc27   :  { %v701_v58 = vmax.f32 %v678_v57, %v698_v46 }
 0xc29   :  { %v702_v59 = vsub.f32 %v678_v57, %v701_v58  ;;  %v705_v17 = vsub.f32 %v698_v46, %v701_v58 }
 0xc2b   :  { %v703_v60 = vmul.f32 1.442695, %v702_v59  ;;  %v706_v62 = vmul.f32 1.442695, %v705_v17 }
 0xc2d   :  { %3975 = vpow2.f32 %v703_v60 }
 0xc2e   :  { %3977 = vpow2.f32 %v706_v62 }
 0xc33   :  { %v3976_v63 = vpop.eup %3975 }
 0xc34   :  { %v3978_v2 = vpop.eup %3977 }
 0xc35   :  { %v708_v3 = vadd.f32 %v3978_v2, %v3976_v63 }
 0xc37   :  { %3979 = vrcp.f32 %v708_v3  ;;  %v720_v7 = vand.u32 2147483648, %v708_v3  ;;  %v718_v9 = vand.u32 2147483647, %v708_v3  ;;  %vm714_vm6 = vweird.f32 %v708_v3 }
 0xc39   :  { %v721_v12 = vor.u32 1.1754944e-38, %v720_v7  ;;  %vm719_vm8 = vcmp.eq.f32.partialorder %v718_v9, 8.507059e+37 }
 0xc3d   :  { %v3980_v4 = vpop.eup %3979 }
 0xc3e   :  { %v710_v5 = vmul.f32 %v3980_v4, %v708_v3  ;;  %vm715_vm3 = vweird.f32 %v3980_v4 }
 0xc3f   :  { %vm716_vm7 = vmor %vm714_vm6, %vm715_vm3 }
 0xc40   :  { %v711_v6 = vsub.f32 1.0, %v710_v5 }
 0xc42   :  { %v712_v8 = vmul.f32 %v3980_v4, %v711_v6 }
 0xc44   :  { %v713_v10 = vadd.f32 %v3980_v4, %v712_v8 }
 0xc46   :  { %v717_v13 = vsel %vm716_vm7, %v3980_v4, %v713_v10 }
 0xc47   :  { %v722_v15 = vsel %vm719_vm8, %v721_v12, %v717_v13 }
 0xc48   :  { %v723_v16 = vmul.f32 %v3976_v63, %v722_v15 }
 0xc4a   :  { %3789 = vmatmul.msk.f32.vlgmr.msra.gmra.mxu1 %vm409_vm4, %v723_v16 }
 0xc4b   :  { %1056 = vmatpush.msra.mxu1 %v4481_v1 }
 0xcc7   :  { %v744_v18 = vpop.f32.mrf.mxu1 }
 0xcc8   :  { %3790 = vmatmul.msk.f32.vlgmr.msra.gmra.mxu2 %vm88_vm5, %v744_v18 }
 0xcc9   :  { %1080 = vmatpush.msra.mxu2 %v4390_v37 }
 0xccb   :  { %1081 = vmatpush.msra.mxu2 %v4399_v39 }
 0xccd   :  { %1082 = vmatpush.msra.mxu2 %v4404_v40 }
 0xccf   :  { %1083 = vmatpush.msra.mxu2 %v4418_v43 }
 0xd4b   :  { %v771_v20 = vpop.f32.mrf.mxu2 }
 0xd4c   :  { %v774_v21 = vadd.f32 %v771_v20, %v4432_v51 }
 0xd4e   :  { %3981 = vtanh.f32 %v774_v21  ;;  %v3791_v22 = vmul.f32 -1.442695, %v774_v21 }
 0xd50   :  { %3983 = vpow2.f32 %v3791_v22 }
 0xd54   :  { %v3982_v14 = vpop.eup %3981 }
 0xd55   :  { %797 = vrot.lane.b32.xlu0 %v3982_v14, %s4268_s2 }
 0xd56   :  { %v3984_v23 = vpop.eup %3983 }
 0xd57   :  { %v778_v24 = vadd.f32 1.0, %v3984_v23 }
 0xd59   :  { %3985 = vrcp.f32 %v778_v24  ;;  %v790_v40 = vand.u32 2147483648, %v778_v24  ;;  %vm784_vm10 = vweird.f32 %v778_v24  ;;  %v788_v43 = vand.u32 2147483647, %v778_v24 }
 0xd5b   :  { %v791_v29 = vor.u32 1.1754944e-38, %v790_v40  ;;  %vm789_vm12 = vcmp.eq.f32.partialorder %v788_v43, 8.507059e+37 }
 0xd5f   :  { %v3986_v25 = vpop.eup %3985 }
 0xd60   :  { %v780_v37 = vmul.f32 %v3986_v25, %v778_v24  ;;  %vm785_vm9 = vweird.f32 %v3986_v25 }
 0xd61   :  { %vm786_vm11 = vmor %vm784_vm10, %vm785_vm9 }
 0xd62   :  { %v781_v26 = vsub.f32 1.0, %v780_v37 }
 0xd64   :  { %v782_v39 = vmul.f32 %v3986_v25, %v781_v26 }
 0xd66   :  { %v783_v27 = vadd.f32 %v3986_v25, %v782_v39 }
 0xd68   :  { %v787_v28 = vsel %vm786_vm11, %v3986_v25, %v783_v27 }
 0xd69   :  { %v792_v31 = vsel %vm789_vm12, %v791_v29, %v787_v28 }
 0xd6a   :  { %v795_v33 = vmul.f32 %v792_v31, %v4529_v50 }
 0xdc7   :  { %v798_v30 = vpop.permute.xlu0 %797 }
 0xdc8   :  { %v800_v32 = vmul.f32 %v798_v30, %v792_v31 }
 0xdca   :  { %802 = vrot.lane.b32.xlu1 %v800_v32, %s4269_s4 }
 0xe3c   :  { %v803_v34 = vpop.permute.xlu1 %802 }
 0xe3d   :  { %v4552_v35 = vadd.f32 %v803_v34, %v795_v33 }
 0xe3f   :  { %3987 = vtanh.f32 %v4552_v35 }
 0xe45   :  { %v3988_v36 = vpop.eup %3987 }
 0xe46   :  { %808 = vrot.lane.b32.xlu2 %v3988_v36, %s4268_s2 }
 0xea0   :  { %v809_v38 = vpop.permute.xlu2 %808 }
 0xea1   :  { %v811_v41 = vmul.f32 %v809_v38, %v792_v31 }
 0xea3   :  { %v812_v44 = vadd.f32 %v811_v41, %v4459_v48 }
 0xea5   :  { %814 = vrot.lane.b32.xlu0 %v812_v44, %s4269_s4 }
 0xf17   :  { %v815_v45 = vpop.permute.xlu0 %814 }
 0xf18   :  { %3792 = vmatpush.xpose.msk.msra.mxu3 %vm88_vm5, %v815_v45  ;;  %3794 = vmatpush.xpose.msk.msrb.mxu0 %vm88_vm5, %v815_v45 }
 0xf1b   :  { %3793 = vmatmul.msk.f32.vlgmr.msra.gmra.mxu3 %vm88_vm5, %v4481_v1  ;;  %3795 = vmatmul.msk.f32.vlgmr.msrb.gmra.mxu0 %vm88_vm5, %v4491_v54 }
 0xf98   :  { %v855_v47 = vpop.f32.mrf.mxu0 }
 0xf9e   :  { %v835_v49 = vpop.f32.mrf.mxu3 }
 0xf9f   :  { %v858_v50 = vmax.f32 %v835_v49, %v855_v47 }
 0xfa1   :  { %v859_v52 = vsub.f32 %v835_v49, %v858_v50  ;;  %v862_v42 = vsub.f32 %v855_v47, %v858_v50 }
 0xfa3   :  { %v860_v53 = vmul.f32 1.442695, %v859_v52  ;;  %v863_v55 = vmul.f32 1.442695, %v862_v42 }
 0xfa5   :  { %3989 = vpow2.f32 %v860_v53 }
 0xfa6   :  { %3991 = vpow2.f32 %v863_v55 }
 0xfab   :  { %v3990_v56 = vpop.eup %3989 }
 0xfac   :  { %v3992_v46 = vpop.eup %3991 }
 0xfad   :  { %v865_v57 = vadd.f32 %v3992_v46, %v3990_v56 }
 0xfaf   :  { %3993 = vrcp.f32 %v865_v57  ;;  %v877_v60 = vand.u32 2147483648, %v865_v57  ;;  %v875_v63 = vand.u32 2147483647, %v865_v57  ;;  %vm871_vm14 = vweird.f32 %v865_v57 }
 0xfb1   :  { %v878_v3 = vor.u32 1.1754944e-38, %v877_v60  ;;  %vm876_vm1 = vcmp.eq.f32.partialorder %v875_v63, 8.507059e+37 }
 0xfb5   :  { %v3994_v58 = vpop.eup %3993 }
 0xfb6   :  { %v867_v59 = vmul.f32 %v3994_v58, %v865_v57  ;;  %vm872_vm13 = vweird.f32 %v3994_v58 }
 0xfb7   :  { %vm873_vm0 = vmor %vm871_vm14, %vm872_vm13 }
 0xfb8   :  { %v868_v17 = vsub.f32 1.0, %v867_v59 }
 0xfba   :  { %v869_v62 = vmul.f32 %v3994_v58, %v868_v17 }
 0xfbc   :  { %v870_v2 = vadd.f32 %v3994_v58, %v869_v62 }
 0xfbe   :  { %v874_v4 = vsel %vm873_vm0, %v3994_v58, %v870_v2 }
 0xfbf   :  { %v879_v5 = vsel %vm876_vm1, %v878_v3, %v874_v4 }
 0xfc0   :  { %v880_v6 = vmul.f32 %v3990_v56, %v879_v5 }
 0xfc2   :  { %3796 = vmatmul.msk.f32.vlgmr.msrb.gmra.mxu1 %vm409_vm4, %v880_v6 }
 0xfc3   :  { %1213 = vmatpush.msrb.mxu1 %v4481_v1 }
0x103f   :  { %v901_v7 = vpop.f32.mrf.mxu1 }
0x1040   :  { %3797 = vmatmul.msk.f32.vlgmr.msrb.gmra.mxu2 %vm88_vm5, %v901_v7 }
0x10c3   :  { %v928_v8 = vpop.f32.mrf.mxu2 }
0x10c4   :  { %v931_v9 = vadd.f32 %v928_v8, %v4432_v51 }
0x10c6   :  { %3995 = vtanh.f32 %v931_v9  ;;  %v3798_v12 = vmul.f32 -1.442695, %v931_v9 }
0x10c8   :  { %3997 = vpow2.f32 %v3798_v12 }
0x10cc   :  { %v3996_v10 = vpop.eup %3995 }
0x10cd   :  { %954 = vrot.lane.b32.xlu1 %v3996_v10, %s4268_s2 }
0x10ce   :  { %v3998_v13 = vpop.eup %3997 }
0x10cf   :  { %v935_v15 = vadd.f32 1.0, %v3998_v13 }
0x10d1   :  { %3999 = vrcp.f32 %v935_v15  ;;  %v947_v22 = vand.u32 2147483648, %v935_v15  ;;  %vm941_vm3 = vweird.f32 %v935_v15  ;;  %v945_v23 = vand.u32 2147483647, %v935_v15 }
0x10d3   :  { %v948_v25 = vor.u32 1.1754944e-38, %v947_v22  ;;  %vm946_vm7 = vcmp.eq.f32.partialorder %v945_v23, 8.507059e+37 }
0x10d7   :  { %v4000_v16 = vpop.eup %3999 }
0x10d8   :  { %v937_v18 = vmul.f32 %v4000_v16, %v935_v15  ;;  %vm942_vm2 = vweird.f32 %v4000_v16 }
0x10d9   :  { %vm943_vm6 = vmor %vm941_vm3, %vm942_vm2 }
0x10da   :  { %v938_v20 = vsub.f32 1.0, %v937_v18 }
0x10dc   :  { %v939_v21 = vmul.f32 %v4000_v16, %v938_v20 }
0x10de   :  { %v940_v14 = vadd.f32 %v4000_v16, %v939_v21 }
0x10e0   :  { %v944_v24 = vsel %vm943_vm6, %v4000_v16, %v940_v14 }
0x10e1   :  { %v949_v26 = vsel %vm946_vm7, %v948_v25, %v944_v24 }
0x10e2   :  { %v952_v27 = vmul.f32 %v949_v26, %v4552_v35 }
0x113f   :  { %v955_v37 = vpop.permute.xlu1 %954 }
0x1140   :  { %v957_v39 = vmul.f32 %v955_v37, %v949_v26 }
0x1142   :  { %959 = vrot.lane.b32.xlu2 %v957_v39, %s4269_s4 }
0x119c   :  { %v960_v40 = vpop.permute.xlu2 %959 }
0x119d   :  { %v4571_v43 = vadd.f32 %v960_v40, %v952_v27 }
0x119f   :  { %4001 = vtanh.f32 %v4571_v43 }
0x11a5   :  { %v4002_v28 = vpop.eup %4001 }
0x11a6   :  { %965 = vrot.lane.b32.xlu0 %v4002_v28, %s4268_s2 }
0x1218   :  { %v966_v29 = vpop.permute.xlu0 %965 }
0x1219   :  { %v968_v30 = vmul.f32 %v966_v29, %v949_v26 }
0x121b   :  { %v969_v31 = vadd.f32 %v968_v30, %v4459_v48 }
0x121d   :  { %971 = vrot.lane.b32.xlu1 %v969_v31, %s4269_s4 }
0x128f   :  { %v972_v32 = vpop.permute.xlu1 %971 }
0x1290   :  { %3799 = vmatpush.xpose.msk.msrb.mxu3 %vm88_vm5, %v972_v32  ;;  %3801 = vmatpush.xpose.msk.msra.mxu0 %vm88_vm5, %v972_v32  ;;  %v4605_v32 = vld [vmem:[%s5010_s6 + $0x18] sm:$0xff] }
0x1291   :  { %1237 = vmatpush.msrb.mxu2 %v4605_v32 }
0x1293   :  { %3800 = vmatmul.msk.f32.vlgmr.msrb.gmra.mxu3 %vm88_vm5, %v4481_v1  ;;  %3802 = vmatmul.msk.f32.vlgmr.msra.gmra.mxu0 %vm88_vm5, %v4491_v54 }
0x1310   :  { %v1012_v33 = vpop.f32.mrf.mxu0 }
0x1316   :  { %v992_v34 = vpop.f32.mrf.mxu3 }
0x1317   :  { %v1015_v35 = vmax.f32 %v992_v34, %v1012_v33 }
0x1319   :  { %v1016_v36 = vsub.f32 %v992_v34, %v1015_v35  ;;  %v1019_v38 = vsub.f32 %v1012_v33, %v1015_v35  ;;  %v4610_v33 = vld [vmem:[%s5010_s6 + $0x10] sm:$0xff]  ;;  %v4616_v34 = vld [vmem:[%s5010_s6 + $0x8] sm:$0xff] }
0x131a   :  { %1238 = vmatpush.msrb.mxu2 %v4610_v33 }
0x131b   :  { %v1017_v41 = vmul.f32 1.442695, %v1016_v36  ;;  %v1020_v44 = vmul.f32 1.442695, %v1019_v38 }
0x131c   :  { %1239 = vmatpush.msrb.mxu2 %v4616_v34 }
0x131d   :  { %4003 = vpow2.f32 %v1017_v41 }
0x131e   :  { %4005 = vpow2.f32 %v1020_v44 }
0x1323   :  { %v4004_v45 = vpop.eup %4003 }
0x1324   :  { %v4006_v47 = vpop.eup %4005 }
0x1325   :  { %v1022_v49 = vadd.f32 %v4006_v47, %v4004_v45 }
0x1327   :  { %4007 = vrcp.f32 %v1022_v49  ;;  %v1034_v53 = vand.u32 2147483648, %v1022_v49  ;;  %v1032_v56 = vand.u32 2147483647, %v1022_v49  ;;  %vm1028_vm9 = vweird.f32 %v1022_v49 }
0x1329   :  { %v1035_v57 = vor.u32 1.1754944e-38, %v1034_v53  ;;  %vm1033_vm11 = vcmp.eq.f32.partialorder %v1032_v56, 8.507059e+37 }
0x132d   :  { %v4008_v50 = vpop.eup %4007 }
0x132e   :  { %v1024_v52 = vmul.f32 %v4008_v50, %v1022_v49  ;;  %vm1029_vm8 = vweird.f32 %v4008_v50 }
0x132f   :  { %vm1030_vm10 = vmor %vm1028_vm9, %vm1029_vm8 }
0x1330   :  { %v1025_v42 = vsub.f32 1.0, %v1024_v52 }
0x1332   :  { %v1026_v55 = vmul.f32 %v4008_v50, %v1025_v42 }
0x1334   :  { %v1027_v46 = vadd.f32 %v4008_v50, %v1026_v55 }
0x1336   :  { %v1031_v58 = vsel %vm1030_vm10, %v4008_v50, %v1027_v46  ;;  %v4625_v46 = vld [vmem:[%s5010_s6] sm:$0xff] }
0x1337   :  { %v1036_v59 = vsel %vm1033_vm11, %v1035_v57, %v1031_v58  ;;  %1240 = vmatpush.msrb.mxu2 %v4625_v46 }
0x1338   :  { %v1037_v17 = vmul.f32 %v4004_v45, %v1036_v59 }
0x133a   :  { %3803 = vmatmul.msk.f32.vlgmr.msra.gmra.mxu1 %vm409_vm4, %v1037_v17 }
0x133b   :  { %1370 = vmatpush.msra.mxu1 %v4481_v1 }
0x13b7   :  { %v1058_v60 = vpop.f32.mrf.mxu1 }
0x13b8   :  { %3804 = vmatmul.msk.f32.vlgmr.msra.gmra.mxu2 %vm88_vm5, %v1058_v60 }
0x13b9   :  { %1394 = vmatpush.msra.mxu2 %v4605_v32 }
0x13bb   :  { %1395 = vmatpush.msra.mxu2 %v4610_v33 }
0x13bd   :  { %1396 = vmatpush.msra.mxu2 %v4616_v34 }
0x13bf   :  { %1397 = vmatpush.msra.mxu2 %v4625_v46 }
0x143b   :  { %v1085_v62 = vpop.f32.mrf.mxu2 }
0x143c   :  { %v1088_v63 = vadd.f32 %v1085_v62, %v4432_v51 }
0x143e   :  { %4009 = vtanh.f32 %v1088_v63  ;;  %v3805_v3 = vmul.f32 -1.442695, %v1088_v63 }
0x1440   :  { %4011 = vpow2.f32 %v3805_v3 }
0x1444   :  { %v4010_v2 = vpop.eup %4009 }
0x1445   :  { %1111 = vrot.lane.b32.xlu2 %v4010_v2, %s4268_s2 }
0x1446   :  { %v4012_v4 = vpop.eup %4011 }
0x1447   :  { %v1092_v5 = vadd.f32 1.0, %v4012_v4 }
0x1449   :  { %4013 = vrcp.f32 %v1092_v5  ;;  %v1104_v12 = vand.u32 2147483648, %v1092_v5  ;;  %vm1098_vm13 = vweird.f32 %v1092_v5  ;;  %v1102_v13 = vand.u32 2147483647, %v1092_v5 }
0x144b   :  { %v1105_v16 = vor.u32 1.1754944e-38, %v1104_v12  ;;  %vm1103_vm0 = vcmp.eq.f32.partialorder %v1102_v13, 8.507059e+37 }
0x144f   :  { %v4014_v6 = vpop.eup %4013 }
0x1450   :  { %v1094_v7 = vmul.f32 %v4014_v6, %v1092_v5  ;;  %vm1099_vm12 = vweird.f32 %v4014_v6 }
0x1451   :  { %vm1100_vm14 = vmor %vm1098_vm13, %vm1099_vm12 }
0x1452   :  { %v1095_v8 = vsub.f32 1.0, %v1094_v7 }
0x1454   :  { %v1096_v9 = vmul.f32 %v4014_v6, %v1095_v8 }
0x1456   :  { %v1097_v10 = vadd.f32 %v4014_v6, %v1096_v9 }
0x1458   :  { %v1101_v15 = vsel %vm1100_vm14, %v4014_v6, %v1097_v10 }
0x1459   :  { %v1106_v20 = vsel %vm1103_vm0, %v1105_v16, %v1101_v15 }
0x145a   :  { %v1109_v14 = vmul.f32 %v1106_v20, %v4571_v43 }
0x149f   :  { %v1112_v18 = vpop.permute.xlu2 %1111 }
0x14a0   :  { %v1114_v21 = vmul.f32 %v1112_v18, %v1106_v20 }
0x14a2   :  { %1116 = vrot.lane.b32.xlu0 %v1114_v21, %s4269_s4 }
0x1514   :  { %v1117_v22 = vpop.permute.xlu0 %1116 }
0x1515   :  { %v4590_v23 = vadd.f32 %v1117_v22, %v1109_v14 }
0x1517   :  { %4015 = vtanh.f32 %v4590_v23 }
0x151d   :  { %v4016_v24 = vpop.eup %4015 }
0x151e   :  { %1122 = vrot.lane.b32.xlu1 %v4016_v24, %s4268_s2 }
0x1590   :  { %v1123_v25 = vpop.permute.xlu1 %1122 }
0x1591   :  { %v1125_v37 = vmul.f32 %v1123_v25, %v1106_v20 }
0x1593   :  { %v1126_v26 = vadd.f32 %v1125_v37, %v4459_v48 }
0x1595   :  { %1128 = vrot.lane.b32.xlu2 %v1126_v26, %s4269_s4 }
0x15ef   :  { %v1129_v39 = vpop.permute.xlu2 %1128 }
0x15f0   :  { %3806 = vmatpush.xpose.msk.msra.mxu3 %vm88_vm5, %v1129_v39  ;;  %3808 = vmatpush.xpose.msk.msrb.mxu0 %vm88_vm5, %v1129_v39 }
0x15f3   :  { %3807 = vmatmul.msk.f32.vlgmr.msra.gmra.mxu3 %vm88_vm5, %v4481_v1  ;;  %3809 = vmatmul.msk.f32.vlgmr.msrb.gmra.mxu0 %vm88_vm5, %v4491_v54 }
0x1670   :  { %v1169_v27 = vpop.f32.mrf.mxu0 }
0x1676   :  { %v1149_v40 = vpop.f32.mrf.mxu3 }
0x1677   :  { %v1172_v43 = vmax.f32 %v1149_v40, %v1169_v27 }
0x1679   :  { %v1173_v28 = vsub.f32 %v1149_v40, %v1172_v43  ;;  %v1176_v29 = vsub.f32 %v1169_v27, %v1172_v43 }
0x167b   :  { %v1174_v30 = vmul.f32 1.442695, %v1173_v28  ;;  %v1177_v31 = vmul.f32 1.442695, %v1176_v29 }
0x167d   :  { %4017 = vpow2.f32 %v1174_v30 }
0x167e   :  { %4019 = vpow2.f32 %v1177_v31 }
0x1683   :  { %v4018_v35 = vpop.eup %4017 }
0x1684   :  { %v4020_v36 = vpop.eup %4019 }
0x1685   :  { %v1179_v38 = vadd.f32 %v4020_v36, %v4018_v35 }
0x1687   :  { %4021 = vrcp.f32 %v1179_v38  ;;  %v1191_v47 = vand.u32 2147483648, %v1179_v38  ;;  %v1189_v50 = vand.u32 2147483647, %v1179_v38  ;;  %vm1185_vm2 = vweird.f32 %v1179_v38 }
0x1689   :  { %v1192_v42 = vor.u32 1.1754944e-38, %v1191_v47  ;;  %vm1190_vm6 = vcmp.eq.f32.partialorder %v1189_v50, 8.507059e+37 }
0x168d   :  { %v4022_v41 = vpop.eup %4021 }
0x168e   :  { %v1181_v44 = vmul.f32 %v4022_v41, %v1179_v38  ;;  %vm1186_vm1 = vweird.f32 %v4022_v41 }
0x168f   :  { %vm1187_vm3 = vmor %vm1185_vm2, %vm1186_vm1 }
0x1690   :  { %v1182_v45 = vsub.f32 1.0, %v1181_v44 }
0x1692   :  { %v1183_v49 = vmul.f32 %v4022_v41, %v1182_v45 }
0x1694   :  { %v1184_v52 = vadd.f32 %v4022_v41, %v1183_v49 }
0x1696   :  { %v1188_v53 = vsel %vm1187_vm3, %v4022_v41, %v1184_v52 }
0x1697   :  { %v1193_v55 = vsel %vm1190_vm6, %v1192_v42, %v1188_v53 }
0x1698   :  { %v1194_v56 = vmul.f32 %v4018_v35, %v1193_v55 }
0x169a   :  { %3810 = vmatmul.msk.f32.vlgmr.msrb.gmra.mxu1 %vm409_vm4, %v1194_v56 }
0x169b   :  { %1527 = vmatpush.msrb.mxu1 %v4481_v1 }
0x1717   :  { %v1215_v57 = vpop.f32.mrf.mxu1 }
0x1718   :  { %3811 = vmatmul.msk.f32.vlgmr.msrb.gmra.mxu2 %vm88_vm5, %v1215_v57 }
0x1719   :  { %1551 = vmatpush.msrb.mxu2 %v4605_v32 }
0x171b   :  { %1552 = vmatpush.msrb.mxu2 %v4610_v33 }
0x171d   :  { %1553 = vmatpush.msrb.mxu2 %v4616_v34 }
0x171f   :  { %1554 = vmatpush.msrb.mxu2 %v4625_v46 }
0x179b   :  { %v1242_v58 = vpop.f32.mrf.mxu2 }
0x179c   :  { %v1245_v59 = vadd.f32 %v1242_v58, %v4432_v51 }
0x179e   :  { %4023 = vtanh.f32 %v1245_v59  ;;  %v3812_v60 = vmul.f32 -1.442695, %v1245_v59 }
0x17a0   :  { %4025 = vpow2.f32 %v3812_v60 }
0x17a4   :  { %v4024_v17 = vpop.eup %4023 }
0x17a5   :  { %1268 = vrot.lane.b32.xlu0 %v4024_v17, %s4268_s2 }
0x17a6   :  { %v4026_v62 = vpop.eup %4025 }
0x17a7   :  { %v1249_v63 = vadd.f32 1.0, %v4026_v62 }
0x17a9   :  { %4027 = vrcp.f32 %v1249_v63  ;;  %v1261_v7 = vand.u32 2147483648, %v1249_v63  ;;  %vm1255_vm8 = vweird.f32 %v1249_v63  ;;  %v1259_v8 = vand.u32 2147483647, %v1249_v63 }
0x17ab   :  { %v1262_v10 = vor.u32 1.1754944e-38, %v1261_v7  ;;  %vm1260_vm10 = vcmp.eq.f32.partialorder %v1259_v8, 8.507059e+37 }
0x17af   :  { %v4028_v2 = vpop.eup %4027 }
0x17b0   :  { %v1251_v3 = vmul.f32 %v4028_v2, %v1249_v63  ;;  %vm1256_vm7 = vweird.f32 %v4028_v2 }
0x17b1   :  { %vm1257_vm9 = vmor %vm1255_vm8, %vm1256_vm7 }
0x17b2   :  { %v1252_v4 = vsub.f32 1.0, %v1251_v3 }
0x17b4   :  { %v1253_v5 = vmul.f32 %v4028_v2, %v1252_v4 }
0x17b6   :  { %v1254_v6 = vadd.f32 %v4028_v2, %v1253_v5 }
0x17b8   :  { %v1258_v9 = vsel %vm1257_vm9, %v4028_v2, %v1254_v6 }
0x17b9   :  { %v1263_v13 = vsel %vm1260_vm10, %v1262_v10, %v1258_v9 }
0x17ba   :  { %v1266_v16 = vmul.f32 %v1263_v13, %v4590_v23 }
0x1817   :  { %v1269_v12 = vpop.permute.xlu0 %1268 }
0x1818   :  { %v1271_v15 = vmul.f32 %v1269_v12, %v1263_v13 }
0x181a   :  { %1273 = vrot.lane.b32.xlu1 %v1271_v15, %s4269_s4 }
0x188c   :  { %v1274_v18 = vpop.permute.xlu1 %1273 }
0x188d   :  { %v4641_v20 = vadd.f32 %v1274_v18, %v1266_v16 }
0x188f   :  { %4029 = vtanh.f32 %v4641_v20 }
0x1895   :  { %v4030_v21 = vpop.eup %4029 }
0x1896   :  { %1279 = vrot.lane.b32.xlu2 %v4030_v21, %s4268_s2 }
0x18f0   :  { %v1280_v14 = vpop.permute.xlu2 %1279 }
0x18f1   :  { %v1282_v22 = vmul.f32 %v1280_v14, %v1263_v13 }
0x18f3   :  { %v1283_v24 = vadd.f32 %v1282_v22, %v4459_v48 }
0x18f5   :  { %1285 = vrot.lane.b32.xlu0 %v1283_v24, %s4269_s4 }
0x1967   :  { %v1286_v25 = vpop.permute.xlu0 %1285 }
0x1968   :  { %3813 = vmatpush.xpose.msk.msrb.mxu3 %vm88_vm5, %v1286_v25  ;;  %3815 = vmatpush.xpose.msk.msra.mxu0 %vm88_vm5, %v1286_v25 }
0x196b   :  { %3814 = vmatmul.msk.f32.vlgmr.msrb.gmra.mxu3 %vm88_vm5, %v4481_v1  ;;  %3816 = vmatmul.msk.f32.vlgmr.msra.gmra.mxu0 %vm88_vm5, %v4491_v54 }
0x19e8   :  { %v1326_v23 = vpop.f32.mrf.mxu0 }
0x19ee   :  { %v1306_v37 = vpop.f32.mrf.mxu3 }
0x19ef   :  { %v1329_v26 = vmax.f32 %v1306_v37, %v1326_v23 }
0x19f1   :  { %v1330_v39 = vsub.f32 %v1306_v37, %v1329_v26  ;;  %v1333_v27 = vsub.f32 %v1326_v23, %v1329_v26 }
0x19f3   :  { %v1331_v40 = vmul.f32 1.442695, %v1330_v39  ;;  %v1334_v43 = vmul.f32 1.442695, %v1333_v27 }
0x19f5   :  { %4031 = vpow2.f32 %v1331_v40 }
0x19f6   :  { %4033 = vpow2.f32 %v1334_v43 }
0x19fb   :  { %v4032_v28 = vpop.eup %4031 }
0x19fc   :  { %v4034_v29 = vpop.eup %4033 }
0x19fd   :  { %v1336_v30 = vadd.f32 %v4034_v29, %v4032_v28 }
0x19ff   :  { %4035 = vrcp.f32 %v1336_v30  ;;  %v1348_v38 = vand.u32 2147483648, %v1336_v30  ;;  %v1346_v44 = vand.u32 2147483647, %v1336_v30  ;;  %vm1342_vm12 = vweird.f32 %v1336_v30 }
0x1a01   :  { %v1349_v47 = vor.u32 1.1754944e-38, %v1348_v38  ;;  %vm1347_vm14 = vcmp.eq.f32.partialorder %v1346_v44, 8.507059e+37 }
0x1a05   :  { %v4036_v31 = vpop.eup %4035 }
0x1a06   :  { %v1338_v35 = vmul.f32 %v4036_v31, %v1336_v30  ;;  %vm1343_vm11 = vweird.f32 %v4036_v31 }
0x1a07   :  { %vm1344_vm13 = vmor %vm1342_vm12, %vm1343_vm11 }
0x1a08   :  { %v1339_v36 = vsub.f32 1.0, %v1338_v35 }
0x1a0a   :  { %v1340_v41 = vmul.f32 %v4036_v31, %v1339_v36 }
0x1a0c   :  { %v1341_v45 = vadd.f32 %v4036_v31, %v1340_v41 }
0x1a0e   :  { %v1345_v49 = vsel %vm1344_vm13, %v4036_v31, %v1341_v45 }
0x1a0f   :  { %v1350_v50 = vsel %vm1347_vm14, %v1349_v47, %v1345_v49 }
0x1a10   :  { %v1351_v52 = vmul.f32 %v4032_v28, %v1350_v50 }
0x1a12   :  { %3817 = vmatmul.msk.f32.vlgmr.msra.gmra.mxu1 %vm409_vm4, %v1351_v52 }
0x1a13   :  { %1684 = vmatpush.msra.mxu1 %v4481_v1 }
0x1a8f   :  { %v1372_v42 = vpop.f32.mrf.mxu1 }
0x1a90   :  { %3818 = vmatmul.msk.f32.vlgmr.msra.gmra.mxu2 %vm88_vm5, %v1372_v42 }
0x1a91   :  { %1708 = vmatpush.msra.mxu2 %v4605_v32 }
0x1a93   :  { %1709 = vmatpush.msra.mxu2 %v4610_v33 }
0x1a95   :  { %1710 = vmatpush.msra.mxu2 %v4616_v34 }
0x1a97   :  { %1711 = vmatpush.msra.mxu2 %v4625_v46 }
0x1b13   :  { %v1399_v53 = vpop.f32.mrf.mxu2 }
0x1b14   :  { %v1402_v55 = vadd.f32 %v1399_v53, %v4432_v51 }
0x1b16   :  { %4037 = vtanh.f32 %v1402_v55  ;;  %v3819_v57 = vmul.f32 -1.442695, %v1402_v55 }
0x1b18   :  { %4039 = vpow2.f32 %v3819_v57 }
0x1b1c   :  { %v4038_v56 = vpop.eup %4037 }
0x1b1d   :  { %1425 = vrot.lane.b32.xlu1 %v4038_v56, %s4268_s2 }
0x1b1e   :  { %v4040_v58 = vpop.eup %4039 }
0x1b1f   :  { %v1406_v59 = vadd.f32 1.0, %v4040_v58 }
0x1b21   :  { %4041 = vrcp.f32 %v1406_v59  ;;  %v1418_v3 = vand.u32 2147483648, %v1406_v59  ;;  %vm1412_vm1 = vweird.f32 %v1406_v59  ;;  %v1416_v4 = vand.u32 2147483647, %v1406_v59 }
0x1b23   :  { %v1419_v6 = vor.u32 1.1754944e-38, %v1418_v3  ;;  %vm1417_vm3 = vcmp.eq.f32.partialorder %v1416_v4, 8.507059e+37 }
0x1b27   :  { %v4042_v17 = vpop.eup %4041 }
0x1b28   :  { %v1408_v60 = vmul.f32 %v4042_v17, %v1406_v59  ;;  %vm1413_vm0 = vweird.f32 %v4042_v17 }
0x1b29   :  { %vm1414_vm2 = vmor %vm1412_vm1, %vm1413_vm0 }
0x1b2a   :  { %v1409_v62 = vsub.f32 1.0, %v1408_v60 }
0x1b2c   :  { %v1410_v63 = vmul.f32 %v4042_v17, %v1409_v62 }
0x1b2e   :  { %v1411_v2 = vadd.f32 %v4042_v17, %v1410_v63 }
0x1b30   :  { %v1415_v5 = vsel %vm1414_vm2, %v4042_v17, %v1411_v2 }
0x1b31   :  { %v1420_v8 = vsel %vm1417_vm3, %v1419_v6, %v1415_v5 }
0x1b32   :  { %v1423_v10 = vmul.f32 %v1420_v8, %v4641_v20 }
0x1b8f   :  { %v1426_v7 = vpop.permute.xlu1 %1425 }
0x1b90   :  { %v1428_v9 = vmul.f32 %v1426_v7, %v1420_v8 }
0x1b92   :  { %1430 = vrot.lane.b32.xlu2 %v1428_v9, %s4269_s4 }
0x1bec   :  { %v1431_v12 = vpop.permute.xlu2 %1430 }
0x1bed   :  { %v4664_v13 = vadd.f32 %v1431_v12, %v1423_v10 }
0x1bef   :  { %4043 = vtanh.f32 %v4664_v13 }
0x1bf5   :  { %v4044_v15 = vpop.eup %4043 }
0x1bf6   :  { %1436 = vrot.lane.b32.xlu0 %v4044_v15, %s4268_s2 }
0x1c68   :  { %v1437_v16 = vpop.permute.xlu0 %1436 }
0x1c69   :  { %v1439_v18 = vmul.f32 %v1437_v16, %v1420_v8 }
0x1c6b   :  { %v1440_v21 = vadd.f32 %v1439_v18, %v4459_v48 }
0x1c6d   :  { %1442 = vrot.lane.b32.xlu1 %v1440_v21, %s4269_s4 }
0x1cdf   :  { %v1443_v14 = vpop.permute.xlu1 %1442 }
0x1ce0   :  { %3820 = vmatpush.xpose.msk.msra.mxu3 %vm88_vm5, %v1443_v14  ;;  %3822 = vmatpush.xpose.msk.msrb.mxu0 %vm88_vm5, %v1443_v14 }
0x1ce3   :  { %3821 = vmatmul.msk.f32.vlgmr.msra.gmra.mxu3 %vm88_vm5, %v4481_v1  ;;  %3823 = vmatmul.msk.f32.vlgmr.msrb.gmra.mxu0 %vm88_vm5, %v4491_v54 }
0x1d60   :  { %v1483_v20 = vpop.f32.mrf.mxu0 }
0x1d66   :  { %v1463_v22 = vpop.f32.mrf.mxu3 }
0x1d67   :  { %v1486_v24 = vmax.f32 %v1463_v22, %v1483_v20 }
0x1d69   :  { %v1487_v25 = vsub.f32 %v1463_v22, %v1486_v24  ;;  %v1490_v23 = vsub.f32 %v1483_v20, %v1486_v24 }
0x1d6b   :  { %v1488_v37 = vmul.f32 1.442695, %v1487_v25  ;;  %v1491_v26 = vmul.f32 1.442695, %v1490_v23 }
0x1d6d   :  { %4045 = vpow2.f32 %v1488_v37 }
0x1d6e   :  { %4047 = vpow2.f32 %v1491_v26 }
0x1d73   :  { %v4046_v39 = vpop.eup %4045 }
0x1d74   :  { %v4048_v27 = vpop.eup %4047 }
0x1d75   :  { %v1493_v40 = vadd.f32 %v4048_v27, %v4046_v39 }
0x1d77   :  { %4049 = vrcp.f32 %v1493_v40  ;;  %v1505_v30 = vand.u32 2147483648, %v1493_v40  ;;  %v1503_v35 = vand.u32 2147483647, %v1493_v40  ;;  %vm1499_vm7 = vweird.f32 %v1493_v40 }
0x1d79   :  { %v1506_v38 = vor.u32 1.1754944e-38, %v1505_v30  ;;  %vm1504_vm9 = vcmp.eq.f32.partialorder %v1503_v35, 8.507059e+37 }
0x1d7d   :  { %v4050_v43 = vpop.eup %4049 }
0x1d7e   :  { %v1495_v28 = vmul.f32 %v4050_v43, %v1493_v40  ;;  %vm1500_vm6 = vweird.f32 %v4050_v43 }
0x1d7f   :  { %vm1501_vm8 = vmor %vm1499_vm7, %vm1500_vm6 }
0x1d80   :  { %v1496_v29 = vsub.f32 1.0, %v1495_v28 }
0x1d82   :  { %v1497_v31 = vmul.f32 %v4050_v43, %v1496_v29 }
0x1d84   :  { %v1498_v36 = vadd.f32 %v4050_v43, %v1497_v31 }
0x1d86   :  { %v1502_v41 = vsel %vm1501_vm8, %v4050_v43, %v1498_v36 }
0x1d87   :  { %v1507_v44 = vsel %vm1504_vm9, %v1506_v38, %v1502_v41 }
0x1d88   :  { %v1508_v45 = vmul.f32 %v4046_v39, %v1507_v44 }
0x1d8a   :  { %3824 = vmatmul.msk.f32.vlgmr.msrb.gmra.mxu1 %vm409_vm4, %v1508_v45 }
0x1d8b   :  { %1841 = vmatpush.msrb.mxu1 %v4481_v1 }
0x1e07   :  { %v1529_v47 = vpop.f32.mrf.mxu1 }
0x1e08   :  { %3825 = vmatmul.msk.f32.vlgmr.msrb.gmra.mxu2 %vm88_vm5, %v1529_v47 }
0x1e09   :  { %1865 = vmatpush.msrb.mxu2 %v4605_v32 }
0x1e0b   :  { %1866 = vmatpush.msrb.mxu2 %v4610_v33 }
0x1e0d   :  { %1867 = vmatpush.msrb.mxu2 %v4616_v34 }
0x1e0f   :  { %1868 = vmatpush.msrb.mxu2 %v4625_v46 }
0x1e8b   :  { %v1556_v49 = vpop.f32.mrf.mxu2 }
0x1e8c   :  { %v1559_v50 = vadd.f32 %v1556_v49, %v4432_v51 }
0x1e8e   :  { %4051 = vtanh.f32 %v1559_v50  ;;  %v3826_v42 = vmul.f32 -1.442695, %v1559_v50 }
0x1e90   :  { %4053 = vpow2.f32 %v3826_v42 }
0x1e94   :  { %v4052_v52 = vpop.eup %4051 }
0x1e95   :  { %1582 = vrot.lane.b32.xlu2 %v4052_v52, %s4268_s2 }
0x1e96   :  { %v4054_v53 = vpop.eup %4053 }
0x1e97   :  { %v1563_v55 = vadd.f32 1.0, %v4054_v53 }
0x1e99   :  { %4055 = vrcp.f32 %v1563_v55  ;;  %v1575_v60 = vand.u32 2147483648, %v1563_v55  ;;  %vm1569_vm11 = vweird.f32 %v1563_v55  ;;  %v1573_v62 = vand.u32 2147483647, %v1563_v55 }
0x1e9b   :  { %v1576_v2 = vor.u32 1.1754944e-38, %v1575_v60  ;;  %vm1574_vm13 = vcmp.eq.f32.partialorder %v1573_v62, 8.507059e+37 }
0x1e9f   :  { %v4056_v56 = vpop.eup %4055 }
0x1ea0   :  { %v1565_v57 = vmul.f32 %v4056_v56, %v1563_v55  ;;  %vm1570_vm10 = vweird.f32 %v4056_v56 }
0x1ea1   :  { %vm1571_vm12 = vmor %vm1569_vm11, %vm1570_vm10 }
0x1ea2   :  { %v1566_v58 = vsub.f32 1.0, %v1565_v57 }
0x1ea4   :  { %v1567_v59 = vmul.f32 %v4056_v56, %v1566_v58 }
0x1ea6   :  { %v1568_v17 = vadd.f32 %v4056_v56, %v1567_v59 }
0x1ea8   :  { %v1572_v63 = vsel %vm1571_vm12, %v4056_v56, %v1568_v17 }
0x1ea9   :  { %v1577_v4 = vsel %vm1574_vm13, %v1576_v2, %v1572_v63 }
0x1eaa   :  { %v1580_v6 = vmul.f32 %v1577_v4, %v4664_v13 }
0x1eef   :  { %v1583_v3 = vpop.permute.xlu2 %1582 }
0x1ef0   :  { %v1585_v5 = vmul.f32 %v1583_v3, %v1577_v4 }
0x1ef2   :  { %1587 = vrot.lane.b32.xlu0 %v1585_v5, %s4269_s4 }
0x1f64   :  { %v1588_v7 = vpop.permute.xlu0 %1587 }
0x1f65   :  { %v4687_v8 = vadd.f32 %v1588_v7, %v1580_v6 }
0x1f67   :  { %4057 = vtanh.f32 %v4687_v8 }
0x1f6d   :  { %v4058_v9 = vpop.eup %4057 }
0x1f6e   :  { %1593 = vrot.lane.b32.xlu1 %v4058_v9, %s4268_s2 }
0x1fe0   :  { %v1594_v10 = vpop.permute.xlu1 %1593 }
0x1fe1   :  { %v1596_v12 = vmul.f32 %v1594_v10, %v1577_v4 }
0x1fe3   :  { %v1597_v15 = vadd.f32 %v1596_v12, %v4459_v48 }
0x1fe5   :  { %1599 = vrot.lane.b32.xlu2 %v1597_v15, %s4269_s4 }
0x203f   :  { %v1600_v16 = vpop.permute.xlu2 %1599 }
0x2040   :  { %3827 = vmatpush.xpose.msk.msrb.mxu3 %vm88_vm5, %v1600_v16  ;;  %3829 = vmatpush.xpose.msk.msra.mxu0 %vm88_vm5, %v1600_v16 }
0x2043   :  { %3828 = vmatmul.msk.f32.vlgmr.msrb.gmra.mxu3 %vm88_vm5, %v4481_v1  ;;  %3830 = vmatmul.msk.f32.vlgmr.msra.gmra.mxu0 %vm88_vm5, %v4491_v54 }
0x20c0   :  { %v1640_v13 = vpop.f32.mrf.mxu0 }
0x20c6   :  { %v1620_v18 = vpop.f32.mrf.mxu3 }
0x20c7   :  { %v1643_v21 = vmax.f32 %v1620_v18, %v1640_v13 }
0x20c9   :  { %v1644_v14 = vsub.f32 %v1620_v18, %v1643_v21  ;;  %v1647_v20 = vsub.f32 %v1640_v13, %v1643_v21 }
0x20cb   :  { %v1645_v22 = vmul.f32 1.442695, %v1644_v14  ;;  %v1648_v24 = vmul.f32 1.442695, %v1647_v20 }
0x20cd   :  { %4059 = vpow2.f32 %v1645_v22 }
0x20ce   :  { %4061 = vpow2.f32 %v1648_v24 }
0x20d3   :  { %v4060_v25 = vpop.eup %4059 }
0x20d4   :  { %v4062_v23 = vpop.eup %4061 }
0x20d5   :  { %v1650_v37 = vadd.f32 %v4062_v23, %v4060_v25 }
0x20d7   :  { %4063 = vrcp.f32 %v1650_v37  ;;  %v1662_v40 = vand.u32 2147483648, %v1650_v37  ;;  %v1660_v28 = vand.u32 2147483647, %v1650_v37  ;;  %vm1656_vm0 = vweird.f32 %v1650_v37 }
0x20d9   :  { %v1663_v30 = vor.u32 1.1754944e-38, %v1662_v40  ;;  %vm1661_vm2 = vcmp.eq.f32.partialorder %v1660_v28, 8.507059e+37 }
0x20dd   :  { %v4064_v26 = vpop.eup %4063 }
0x20de   :  { %v1652_v39 = vmul.f32 %v4064_v26, %v1650_v37  ;;  %vm1657_vm14 = vweird.f32 %v4064_v26 }
0x20df   :  { %vm1658_vm1 = vmor %vm1656_vm0, %vm1657_vm14 }
0x20e0   :  { %v1653_v27 = vsub.f32 1.0, %v1652_v39 }
0x20e2   :  { %v1654_v43 = vmul.f32 %v4064_v26, %v1653_v27 }
0x20e4   :  { %v1655_v29 = vadd.f32 %v4064_v26, %v1654_v43 }
0x20e6   :  { %v1659_v31 = vsel %vm1658_vm1, %v4064_v26, %v1655_v29 }
0x20e7   :  { %v1664_v35 = vsel %vm1661_vm2, %v1663_v30, %v1659_v31 }
0x20e8   :  { %v1665_v36 = vmul.f32 %v4060_v25, %v1664_v35 }
0x20ea   :  { %3831 = vmatmul.msk.f32.vlgmr.msra.gmra.mxu1 %vm409_vm4, %v1665_v36 }
0x20eb   :  { %1998 = vmatpush.msra.mxu1 %v4481_v1 }
0x2167   :  { %v1686_v38 = vpop.f32.mrf.mxu1 }
0x2168   :  { %3832 = vmatmul.msk.f32.vlgmr.msra.gmra.mxu2 %vm88_vm5, %v1686_v38 }
0x2169   :  { %2022 = vmatpush.msra.mxu2 %v4605_v32 }
0x216b   :  { %2023 = vmatpush.msra.mxu2 %v4610_v33 }
0x216d   :  { %2024 = vmatpush.msra.mxu2 %v4616_v34 }
0x216f   :  { %2025 = vmatpush.msra.mxu2 %v4625_v46 }
0x21eb   :  { %v1713_v41 = vpop.f32.mrf.mxu2 }
0x21ec   :  { %v1716_v44 = vadd.f32 %v1713_v41, %v4432_v51 }
0x21ee   :  { %4065 = vtanh.f32 %v1716_v44  ;;  %v3833_v47 = vmul.f32 -1.442695, %v1716_v44 }
0x21f0   :  { %4067 = vpow2.f32 %v3833_v47 }
0x21f4   :  { %v4066_v45 = vpop.eup %4065 }
0x21f5   :  { %1739 = vrot.lane.b32.xlu0 %v4066_v45, %s4268_s2 }
0x21f6   :  { %v4068_v49 = vpop.eup %4067 }
0x21f7   :  { %v1720_v50 = vadd.f32 1.0, %v4068_v49 }
0x21f9   :  { %4069 = vrcp.f32 %v1720_v50  ;;  %v1732_v57 = vand.u32 2147483648, %v1720_v50  ;;  %vm1726_vm6 = vweird.f32 %v1720_v50  ;;  %v1730_v58 = vand.u32 2147483647, %v1720_v50 }
0x21fb   :  { %v1733_v17 = vor.u32 1.1754944e-38, %v1732_v57  ;;  %vm1731_vm8 = vcmp.eq.f32.partialorder %v1730_v58, 8.507059e+37 }
0x21ff   :  { %v4070_v52 = vpop.eup %4069 }
0x2200   :  { %v1722_v42 = vmul.f32 %v4070_v52, %v1720_v50  ;;  %vm1727_vm3 = vweird.f32 %v4070_v52 }
0x2201   :  { %vm1728_vm7 = vmor %vm1726_vm6, %vm1727_vm3 }
0x2202   :  { %v1723_v53 = vsub.f32 1.0, %v1722_v42 }
0x2204   :  { %v1724_v55 = vmul.f32 %v4070_v52, %v1723_v53 }
0x2206   :  { %v1725_v56 = vadd.f32 %v4070_v52, %v1724_v55 }
0x2208   :  { %v1729_v59 = vsel %vm1728_vm7, %v4070_v52, %v1725_v56 }
0x2209   :  { %v1734_v62 = vsel %vm1731_vm8, %v1733_v17, %v1729_v59 }
0x220a   :  { %v1737_v2 = vmul.f32 %v1734_v62, %v4687_v8 }
0x2267   :  { %v1740_v60 = vpop.permute.xlu0 %1739 }
0x2268   :  { %v1742_v63 = vmul.f32 %v1740_v60, %v1734_v62 }
0x226a   :  { %1744 = vrot.lane.b32.xlu1 %v1742_v63, %s4269_s4 }
0x22dc   :  { %v1745_v3 = vpop.permute.xlu1 %1744 }
0x22dd   :  { %v4710_v4 = vadd.f32 %v1745_v3, %v1737_v2 }
0x22df   :  { %4071 = vtanh.f32 %v4710_v4 }
0x22e5   :  { %v4072_v5 = vpop.eup %4071 }
0x22e6   :  { %1750 = vrot.lane.b32.xlu2 %v4072_v5, %s4268_s2 }
0x2340   :  { %v1751_v6 = vpop.permute.xlu2 %1750 }
0x2341   :  { %v1753_v7 = vmul.f32 %v1751_v6, %v1734_v62 }
0x2343   :  { %v1754_v9 = vadd.f32 %v1753_v7, %v4459_v48 }
0x2345   :  { %1756 = vrot.lane.b32.xlu0 %v1754_v9, %s4269_s4 }
0x23b7   :  { %v1757_v10 = vpop.permute.xlu0 %1756 }
0x23b8   :  { %3834 = vmatpush.xpose.msk.msra.mxu3 %vm88_vm5, %v1757_v10  ;;  %3836 = vmatpush.xpose.msk.msrb.mxu0 %vm88_vm5, %v1757_v10 }
0x23bb   :  { %3835 = vmatmul.msk.f32.vlgmr.msra.gmra.mxu3 %vm88_vm5, %v4481_v1  ;;  %3837 = vmatmul.msk.f32.vlgmr.msrb.gmra.mxu0 %vm88_vm5, %v4491_v54 }
0x2438   :  { %v1797_v8 = vpop.f32.mrf.mxu0 }
0x243e   :  { %v1777_v12 = vpop.f32.mrf.mxu3 }
0x243f   :  { %v1800_v15 = vmax.f32 %v1777_v12, %v1797_v8 }
0x2441   :  { %v1801_v16 = vsub.f32 %v1777_v12, %v1800_v15  ;;  %v1804_v13 = vsub.f32 %v1797_v8, %v1800_v15 }
0x2443   :  { %v1802_v18 = vmul.f32 1.442695, %v1801_v16  ;;  %v1805_v21 = vmul.f32 1.442695, %v1804_v13 }
0x2445   :  { %4073 = vpow2.f32 %v1802_v18 }
0x2446   :  { %4075 = vpow2.f32 %v1805_v21 }
0x244b   :  { %v4074_v14 = vpop.eup %4073 }
0x244c   :  { %v4076_v20 = vpop.eup %4075 }
0x244d   :  { %v1807_v22 = vadd.f32 %v4076_v20, %v4074_v14 }
0x244f   :  { %4077 = vrcp.f32 %v1807_v22  ;;  %v1819_v37 = vand.u32 2147483648, %v1807_v22  ;;  %v1817_v39 = vand.u32 2147483647, %v1807_v22  ;;  %vm1813_vm10 = vweird.f32 %v1807_v22 }
0x2451   :  { %v1820_v40 = vor.u32 1.1754944e-38, %v1819_v37  ;;  %vm1818_vm12 = vcmp.eq.f32.partialorder %v1817_v39, 8.507059e+37 }
0x2455   :  { %v4078_v24 = vpop.eup %4077 }
0x2456   :  { %v1809_v25 = vmul.f32 %v4078_v24, %v1807_v22  ;;  %vm1814_vm9 = vweird.f32 %v4078_v24 }
0x2457   :  { %vm1815_vm11 = vmor %vm1813_vm10, %vm1814_vm9 }
0x2458   :  { %v1810_v23 = vsub.f32 1.0, %v1809_v25 }
0x245a   :  { %v1811_v26 = vmul.f32 %v4078_v24, %v1810_v23 }
0x245c   :  { %v1812_v27 = vadd.f32 %v4078_v24, %v1811_v26 }
0x245e   :  { %v1816_v43 = vsel %vm1815_vm11, %v4078_v24, %v1812_v27 }
0x245f   :  { %v1821_v28 = vsel %vm1818_vm12, %v1820_v40, %v1816_v43 }
0x2460   :  { %v1822_v29 = vmul.f32 %v4074_v14, %v1821_v28 }
0x2462   :  { %3838 = vmatmul.msk.f32.vlgmr.msrb.gmra.mxu1 %vm409_vm4, %v1822_v29 }
0x2463   :  { %2155 = vmatpush.msrb.mxu1 %v4481_v1 }
0x24df   :  { %v1843_v30 = vpop.f32.mrf.mxu1 }
0x24e0   :  { %3839 = vmatmul.msk.f32.vlgmr.msrb.gmra.mxu2 %vm88_vm5, %v1843_v30 }
0x24e1   :  { %2179 = vmatpush.msrb.mxu2 %v4605_v32 }
0x24e3   :  { %2180 = vmatpush.msrb.mxu2 %v4610_v33 }
0x24e5   :  { %2181 = vmatpush.msrb.mxu2 %v4616_v34 }
0x24e7   :  { %2182 = vmatpush.msrb.mxu2 %v4625_v46 }
0x2563   :  { %v1870_v31 = vpop.f32.mrf.mxu2 }
0x2564   :  { %v1873_v35 = vadd.f32 %v1870_v31, %v4432_v51 }
0x2566   :  { %4079 = vtanh.f32 %v1873_v35  ;;  %v3840_v38 = vmul.f32 -1.442695, %v1873_v35 }
0x2568   :  { %4081 = vpow2.f32 %v3840_v38 }
0x256c   :  { %v4080_v36 = vpop.eup %4079 }
0x256d   :  { %1896 = vrot.lane.b32.xlu1 %v4080_v36, %s4268_s2 }
0x256e   :  { %v4082_v41 = vpop.eup %4081 }
0x256f   :  { %v1877_v44 = vadd.f32 1.0, %v4082_v41 }
0x2571   :  { %4083 = vrcp.f32 %v1877_v44  ;;  %v1889_v34 = vand.u32 2147483648, %v1877_v44  ;;  %vm1883_vm14 = vweird.f32 %v1877_v44  ;;  %v1887_v46 = vand.u32 2147483647, %v1877_v44 }
0x2573   :  { %v1890_v52 = vor.u32 1.1754944e-38, %v1889_v34  ;;  %vm1888_vm1 = vcmp.eq.f32.partialorder %v1887_v46, 8.507059e+37 }
0x2577   :  { %v4084_v45 = vpop.eup %4083 }
0x2578   :  { %v1879_v32 = vmul.f32 %v4084_v45, %v1877_v44  ;;  %vm1884_vm13 = vweird.f32 %v4084_v45 }
0x2579   :  { %vm1885_vm0 = vmor %vm1883_vm14, %vm1884_vm13 }
0x257a   :  { %v1880_v47 = vsub.f32 1.0, %v1879_v32 }
0x257c   :  { %v1881_v33 = vmul.f32 %v4084_v45, %v1880_v47 }
0x257e   :  { %v1882_v49 = vadd.f32 %v4084_v45, %v1881_v33 }
0x2580   :  { %v1886_v50 = vsel %vm1885_vm0, %v4084_v45, %v1882_v49 }
0x2581   :  { %v1891_v53 = vsel %vm1888_vm1, %v1890_v52, %v1886_v50 }
0x2582   :  { %v1894_v56 = vmul.f32 %v1891_v53, %v4710_v4 }
0x25df   :  { %v1897_v42 = vpop.permute.xlu1 %1896 }
0x25e0   :  { %v1899_v55 = vmul.f32 %v1897_v42, %v1891_v53 }
0x25e2   :  { %1901 = vrot.lane.b32.xlu2 %v1899_v55, %s4269_s4 }
0x263c   :  { %v1902_v57 = vpop.permute.xlu2 %1901 }
0x263d   :  { %v4733_v58 = vadd.f32 %v1902_v57, %v1894_v56 }
0x263f   :  { %4085 = vtanh.f32 %v4733_v58 }
0x2645   :  { %v4086_v59 = vpop.eup %4085 }
0x2646   :  { %1907 = vrot.lane.b32.xlu0 %v4086_v59, %s4268_s2 }
0x26b8   :  { %v1908_v17 = vpop.permute.xlu0 %1907 }
0x26b9   :  { %v1910_v60 = vmul.f32 %v1908_v17, %v1891_v53 }
0x26bb   :  { %v1911_v62 = vadd.f32 %v1910_v60, %v4459_v48 }
0x26bd   :  { %1913 = vrot.lane.b32.xlu1 %v1911_v62, %s4269_s4 }
0x272f   :  { %v1914_v63 = vpop.permute.xlu1 %1913 }
0x2730   :  { %3841 = vmatpush.xpose.msk.msrb.mxu3 %vm88_vm5, %v1914_v63  ;;  %3843 = vmatpush.xpose.msk.msra.mxu0 %vm88_vm5, %v1914_v63 }
0x2733   :  { %3842 = vmatmul.msk.f32.vlgmr.msrb.gmra.mxu3 %vm88_vm5, %v4481_v1  ;;  %3844 = vmatmul.msk.f32.vlgmr.msra.gmra.mxu0 %vm88_vm5, %v4491_v54 }
0x27b0   :  { %v1954_v2 = vpop.f32.mrf.mxu0 }
0x27b6   :  { %v1934_v3 = vpop.f32.mrf.mxu3 }
0x27b7   :  { %v1957_v4 = vmax.f32 %v1934_v3, %v1954_v2 }
0x27b9   :  { %v1958_v5 = vsub.f32 %v1934_v3, %v1957_v4  ;;  %v1961_v6 = vsub.f32 %v1954_v2, %v1957_v4 }
0x27bb   :  { %v1959_v7 = vmul.f32 1.442695, %v1958_v5  ;;  %v1962_v9 = vmul.f32 1.442695, %v1961_v6 }
0x27bd   :  { %4087 = vpow2.f32 %v1959_v7 }
0x27be   :  { %4089 = vpow2.f32 %v1962_v9 }
0x27c3   :  { %v4088_v10 = vpop.eup %4087 }
0x27c4   :  { %v4090_v8 = vpop.eup %4089 }
0x27c5   :  { %v1964_v12 = vadd.f32 %v4090_v8, %v4088_v10 }
0x27c7   :  { %4091 = vrcp.f32 %v1964_v12  ;;  %v1976_v18 = vand.u32 2147483648, %v1964_v12  ;;  %v1974_v14 = vand.u32 2147483647, %v1964_v12  ;;  %vm1970_vm3 = vweird.f32 %v1964_v12 }
0x27c9   :  { %v1977_v22 = vor.u32 1.1754944e-38, %v1976_v18  ;;  %vm1975_vm7 = vcmp.eq.f32.partialorder %v1974_v14, 8.507059e+37 }
0x27cd   :  { %v4092_v15 = vpop.eup %4091 }
0x27ce   :  { %v1966_v16 = vmul.f32 %v4092_v15, %v1964_v12  ;;  %vm1971_vm2 = vweird.f32 %v4092_v15 }
0x27cf   :  { %vm1972_vm6 = vmor %vm1970_vm3, %vm1971_vm2 }
0x27d0   :  { %v1967_v13 = vsub.f32 1.0, %v1966_v16 }
0x27d2   :  { %v1968_v21 = vmul.f32 %v4092_v15, %v1967_v13 }
0x27d4   :  { %v1969_v20 = vadd.f32 %v4092_v15, %v1968_v21 }
0x27d6   :  { %v1973_v24 = vsel %vm1972_vm6, %v4092_v15, %v1969_v20 }
0x27d7   :  { %v1978_v25 = vsel %vm1975_vm7, %v1977_v22, %v1973_v24 }
0x27d8   :  { %v1979_v23 = vmul.f32 %v4088_v10, %v1978_v25 }
0x27da   :  { %3845 = vmatmul.msk.f32.vlgmr.msra.gmra.mxu1 %vm409_vm4, %v1979_v23 }
0x27db   :  { %2312 = vmatpush.msra.mxu1 %v4481_v1 }
0x2857   :  { %v2000_v37 = vpop.f32.mrf.mxu1 }
0x2858   :  { %3846 = vmatmul.msk.f32.vlgmr.msra.gmra.mxu2 %vm88_vm5, %v2000_v37 }
0x28db   :  { %v2027_v26 = vpop.f32.mrf.mxu2 }
0x28dc   :  { %v2030_v39 = vadd.f32 %v2027_v26, %v4432_v51 }
0x28de   :  { %4093 = vtanh.f32 %v2030_v39  ;;  %v3847_v40 = vmul.f32 -1.442695, %v2030_v39 }
0x28e0   :  { %4095 = vpow2.f32 %v3847_v40 }
0x28e4   :  { %v4094_v27 = vpop.eup %4093 }
0x28e5   :  { %2053 = vrot.lane.b32.xlu2 %v4094_v27, %s4268_s2 }
0x28e6   :  { %v4096_v43 = vpop.eup %4095 }
0x28e7   :  { %v2034_v28 = vadd.f32 1.0, %v4096_v43 }
0x28e9   :  { %4097 = vrcp.f32 %v2034_v28  ;;  %v2046_v38 = vand.u32 2147483648, %v2034_v28  ;;  %vm2040_vm9 = vweird.f32 %v2034_v28  ;;  %v2044_v41 = vand.u32 2147483647, %v2034_v28 }
0x28eb   :  { %v2047_v45 = vor.u32 1.1754944e-38, %v2046_v38  ;;  %vm2045_vm11 = vcmp.eq.f32.partialorder %v2044_v41, 8.507059e+37 }
0x28ef   :  { %v4098_v29 = vpop.eup %4097 }
0x28f0   :  { %v2036_v30 = vmul.f32 %v4098_v29, %v2034_v28  ;;  %vm2041_vm8 = vweird.f32 %v4098_v29 }
0x28f1   :  { %vm2042_vm10 = vmor %vm2040_vm9, %vm2041_vm8 }
0x28f2   :  { %v2037_v31 = vsub.f32 1.0, %v2036_v30 }
0x28f4   :  { %v2038_v35 = vmul.f32 %v4098_v29, %v2037_v31 }
0x28f6   :  { %v2039_v36 = vadd.f32 %v4098_v29, %v2038_v35 }
0x28f8   :  { %v2043_v44 = vsel %vm2042_vm10, %v4098_v29, %v2039_v36 }
0x28f9   :  { %v2048_v47 = vsel %vm2045_vm11, %v2047_v45, %v2043_v44 }
0x28fa   :  { %v2051_v49 = vmul.f32 %v2048_v47, %v4733_v58 }
0x293f   :  { %v2054_v32 = vpop.permute.xlu2 %2053 }
0x2940   :  { %v2056_v33 = vmul.f32 %v2054_v32, %v2048_v47 }
0x2942   :  { %2058 = vrot.lane.b32.xlu0 %v2056_v33, %s4269_s4 }
0x29b4   :  { %v2059_v34 = vpop.permute.xlu0 %2058 }
0x29b5   :  { %v4752_v46 = vadd.f32 %v2059_v34, %v2051_v49 }
0x29b7   :  { %4099 = vtanh.f32 %v4752_v46 }
0x29bd   :  { %v4100_v50 = vpop.eup %4099 }
0x29be   :  { %2064 = vrot.lane.b32.xlu1 %v4100_v50, %s4268_s2 }
0x2a30   :  { %v2065_v52 = vpop.permute.xlu1 %2064 }
0x2a31   :  { %v2067_v42 = vmul.f32 %v2065_v52, %v2048_v47 }
0x2a33   :  { %v2068_v53 = vadd.f32 %v2067_v42, %v4459_v48 }
0x2a35   :  { %2070 = vrot.lane.b32.xlu2 %v2068_v53, %s4269_s4 }
0x2a8f   :  { %v2071_v55 = vpop.permute.xlu2 %2070 }
0x2a90   :  { %3848 = vmatpush.xpose.msk.msra.mxu3 %vm88_vm5, %v2071_v55  ;;  %3850 = vmatpush.xpose.msk.msrb.mxu0 %vm88_vm5, %v2071_v55  ;;  %v4786_v55 = vld [vmem:[%s5010_s6 + $0x18] sm:$0xff] }
0x2a91   :  { %2336 = vmatpush.msra.mxu2 %v4786_v55 }
0x2a93   :  { %3849 = vmatmul.msk.f32.vlgmr.msra.gmra.mxu3 %vm88_vm5, %v4481_v1  ;;  %3851 = vmatmul.msk.f32.vlgmr.msrb.gmra.mxu0 %vm88_vm5, %v4491_v54 }
0x2b10   :  { %v2111_v56 = vpop.f32.mrf.mxu0 }
0x2b16   :  { %v2091_v57 = vpop.f32.mrf.mxu3 }
0x2b17   :  { %v2114_v58 = vmax.f32 %v2091_v57, %v2111_v56 }
0x2b19   :  { %v2115_v59 = vsub.f32 %v2091_v57, %v2114_v58  ;;  %v2118_v17 = vsub.f32 %v2111_v56, %v2114_v58  ;;  %v4791_v56 = vld [vmem:[%s5010_s6 + $0x10] sm:$0xff]  ;;  %v4797_v57 = vld [vmem:[%s5010_s6 + $0x8] sm:$0xff] }
0x2b1a   :  { %2337 = vmatpush.msra.mxu2 %v4791_v56 }
0x2b1b   :  { %v2116_v60 = vmul.f32 1.442695, %v2115_v59  ;;  %v2119_v62 = vmul.f32 1.442695, %v2118_v17 }
0x2b1c   :  { %2338 = vmatpush.msra.mxu2 %v4797_v57 }
0x2b1d   :  { %4101 = vpow2.f32 %v2116_v60 }
0x2b1e   :  { %4103 = vpow2.f32 %v2119_v62 }
0x2b23   :  { %v4102_v63 = vpop.eup %4101 }
0x2b24   :  { %v4104_v2 = vpop.eup %4103 }
0x2b25   :  { %v2121_v3 = vadd.f32 %v4104_v2, %v4102_v63 }
0x2b27   :  { %4105 = vrcp.f32 %v2121_v3  ;;  %v2133_v7 = vand.u32 2147483648, %v2121_v3  ;;  %v2131_v10 = vand.u32 2147483647, %v2121_v3  ;;  %vm2127_vm13 = vweird.f32 %v2121_v3 }
0x2b29   :  { %v2134_v12 = vor.u32 1.1754944e-38, %v2133_v7  ;;  %vm2132_vm0 = vcmp.eq.f32.partialorder %v2131_v10, 8.507059e+37 }
0x2b2d   :  { %v4106_v4 = vpop.eup %4105 }
0x2b2e   :  { %v2123_v5 = vmul.f32 %v4106_v4, %v2121_v3  ;;  %vm2128_vm12 = vweird.f32 %v4106_v4 }
0x2b2f   :  { %vm2129_vm14 = vmor %vm2127_vm13, %vm2128_vm12 }
0x2b30   :  { %v2124_v6 = vsub.f32 1.0, %v2123_v5 }
0x2b32   :  { %v2125_v9 = vmul.f32 %v4106_v4, %v2124_v6 }
0x2b34   :  { %v2126_v8 = vadd.f32 %v4106_v4, %v2125_v9 }
0x2b36   :  { %v2130_v15 = vsel %vm2129_vm14, %v4106_v4, %v2126_v8  ;;  %v4806_v8 = vld [vmem:[%s5010_s6] sm:$0xff] }
0x2b37   :  { %v2135_v16 = vsel %vm2132_vm0, %v2134_v12, %v2130_v15  ;;  %2339 = vmatpush.msra.mxu2 %v4806_v8 }
0x2b38   :  { %v2136_v13 = vmul.f32 %v4102_v63, %v2135_v16 }
0x2b3a   :  { %3852 = vmatmul.msk.f32.vlgmr.msrb.gmra.mxu1 %vm409_vm4, %v2136_v13 }
0x2b3b   :  { %2469 = vmatpush.msrb.mxu1 %v4481_v1 }
0x2bb7   :  { %v2157_v18 = vpop.f32.mrf.mxu1 }
0x2bb8   :  { %3853 = vmatmul.msk.f32.vlgmr.msrb.gmra.mxu2 %vm88_vm5, %v2157_v18 }
0x2bb9   :  { %2493 = vmatpush.msrb.mxu2 %v4786_v55 }
0x2bbb   :  { %2494 = vmatpush.msrb.mxu2 %v4791_v56 }
0x2bbd   :  { %2495 = vmatpush.msrb.mxu2 %v4797_v57 }
0x2bbf   :  { %2496 = vmatpush.msrb.mxu2 %v4806_v8 }
0x2c3b   :  { %v2184_v21 = vpop.f32.mrf.mxu2 }
0x2c3c   :  { %v2187_v14 = vadd.f32 %v2184_v21, %v4432_v51 }
0x2c3e   :  { %4107 = vtanh.f32 %v2187_v14  ;;  %v3854_v22 = vmul.f32 -1.442695, %v2187_v14 }
0x2c40   :  { %4109 = vpow2.f32 %v3854_v22 }
0x2c44   :  { %v4108_v20 = vpop.eup %4107 }
0x2c45   :  { %2210 = vrot.lane.b32.xlu0 %v4108_v20, %s4268_s2 }
0x2c46   :  { %v4110_v24 = vpop.eup %4109 }
0x2c47   :  { %v2191_v25 = vadd.f32 1.0, %v4110_v24 }
0x2c49   :  { %4111 = vrcp.f32 %v2191_v25  ;;  %v2203_v40 = vand.u32 2147483648, %v2191_v25  ;;  %vm2197_vm2 = vweird.f32 %v2191_v25  ;;  %v2201_v43 = vand.u32 2147483647, %v2191_v25 }
0x2c4b   :  { %v2204_v29 = vor.u32 1.1754944e-38, %v2203_v40  ;;  %vm2202_vm6 = vcmp.eq.f32.partialorder %v2201_v43, 8.507059e+37 }
0x2c4f   :  { %v4112_v23 = vpop.eup %4111 }
0x2c50   :  { %v2193_v37 = vmul.f32 %v4112_v23, %v2191_v25  ;;  %vm2198_vm1 = vweird.f32 %v4112_v23 }
0x2c51   :  { %vm2199_vm3 = vmor %vm2197_vm2, %vm2198_vm1 }
0x2c52   :  { %v2194_v26 = vsub.f32 1.0, %v2193_v37 }
0x2c54   :  { %v2195_v39 = vmul.f32 %v4112_v23, %v2194_v26 }
0x2c56   :  { %v2196_v27 = vadd.f32 %v4112_v23, %v2195_v39 }
0x2c58   :  { %v2200_v28 = vsel %vm2199_vm3, %v4112_v23, %v2196_v27 }
0x2c59   :  { %v2205_v31 = vsel %vm2202_vm6, %v2204_v29, %v2200_v28 }
0x2c5a   :  { %v2208_v36 = vmul.f32 %v2205_v31, %v4752_v46 }
0x2cb7   :  { %v2211_v30 = vpop.permute.xlu0 %2210 }
0x2cb8   :  { %v2213_v35 = vmul.f32 %v2211_v30, %v2205_v31 }
0x2cba   :  { %2215 = vrot.lane.b32.xlu1 %v2213_v35, %s4269_s4 }
0x2d2c   :  { %v2216_v38 = vpop.permute.xlu1 %2215 }
0x2d2d   :  { %v4771_v41 = vadd.f32 %v2216_v38, %v2208_v36 }
0x2d2f   :  { %4113 = vtanh.f32 %v4771_v41 }
0x2d35   :  { %v4114_v44 = vpop.eup %4113 }
0x2d36   :  { %2221 = vrot.lane.b32.xlu2 %v4114_v44, %s4268_s2 }
0x2d90   :  { %v2222_v45 = vpop.permute.xlu2 %2221 }
0x2d91   :  { %v2224_v32 = vmul.f32 %v2222_v45, %v2205_v31 }
0x2d93   :  { %v2225_v47 = vadd.f32 %v2224_v32, %v4459_v48 }
0x2d95   :  { %2227 = vrot.lane.b32.xlu0 %v2225_v47, %s4269_s4 }
0x2e07   :  { %v2228_v33 = vpop.permute.xlu0 %2227 }
0x2e08   :  { %3855 = vmatpush.xpose.msk.msrb.mxu3 %vm88_vm5, %v2228_v33  ;;  %3857 = vmatpush.xpose.msk.msra.mxu0 %vm88_vm5, %v2228_v33 }
0x2e0b   :  { %3856 = vmatmul.msk.f32.vlgmr.msrb.gmra.mxu3 %vm88_vm5, %v4481_v1  ;;  %3858 = vmatmul.msk.f32.vlgmr.msra.gmra.mxu0 %vm88_vm5, %v4491_v54 }
0x2e88   :  { %v2268_v49 = vpop.f32.mrf.mxu0 }
0x2e8e   :  { %v2248_v34 = vpop.f32.mrf.mxu3 }
0x2e8f   :  { %v2271_v46 = vmax.f32 %v2248_v34, %v2268_v49 }
0x2e91   :  { %v2272_v50 = vsub.f32 %v2248_v34, %v2271_v46  ;;  %v2275_v52 = vsub.f32 %v2268_v49, %v2271_v46 }
0x2e93   :  { %v2273_v42 = vmul.f32 1.442695, %v2272_v50  ;;  %v2276_v53 = vmul.f32 1.442695, %v2275_v52 }
0x2e95   :  { %4115 = vpow2.f32 %v2273_v42 }
0x2e96   :  { %4117 = vpow2.f32 %v2276_v53 }
0x2e9b   :  { %v4116_v58 = vpop.eup %4115 }
0x2e9c   :  { %v4118_v59 = vpop.eup %4117 }
0x2e9d   :  { %v2278_v17 = vadd.f32 %v4118_v59, %v4116_v58 }
0x2e9f   :  { %4119 = vrcp.f32 %v2278_v17  ;;  %v2290_v2 = vand.u32 2147483648, %v2278_v17  ;;  %v2288_v4 = vand.u32 2147483647, %v2278_v17  ;;  %vm2284_vm8 = vweird.f32 %v2278_v17 }
0x2ea1   :  { %v2291_v6 = vor.u32 1.1754944e-38, %v2290_v2  ;;  %vm2289_vm10 = vcmp.eq.f32.partialorder %v2288_v4, 8.507059e+37 }
0x2ea5   :  { %v4120_v60 = vpop.eup %4119 }
0x2ea6   :  { %v2280_v62 = vmul.f32 %v4120_v60, %v2278_v17  ;;  %vm2285_vm7 = vweird.f32 %v4120_v60 }
0x2ea7   :  { %vm2286_vm9 = vmor %vm2284_vm8, %vm2285_vm7 }
0x2ea8   :  { %v2281_v63 = vsub.f32 1.0, %v2280_v62 }
0x2eaa   :  { %v2282_v3 = vmul.f32 %v4120_v60, %v2281_v63 }
0x2eac   :  { %v2283_v5 = vadd.f32 %v4120_v60, %v2282_v3 }
0x2eae   :  { %v2287_v7 = vsel %vm2286_vm9, %v4120_v60, %v2283_v5 }
0x2eaf   :  { %v2292_v9 = vsel %vm2289_vm10, %v2291_v6, %v2287_v7 }
0x2eb0   :  { %v2293_v10 = vmul.f32 %v4116_v58, %v2292_v9 }
0x2eb2   :  { %3859 = vmatmul.msk.f32.vlgmr.msra.gmra.mxu1 %vm409_vm4, %v2293_v10 }
0x2eb3   :  { %2626 = vmatpush.msra.mxu1 %v4481_v1 }
0x2f2f   :  { %v2314_v12 = vpop.f32.mrf.mxu1 }
0x2f30   :  { %3860 = vmatmul.msk.f32.vlgmr.msra.gmra.mxu2 %vm88_vm5, %v2314_v12 }
0x2f31   :  { %2650 = vmatpush.msra.mxu2 %v4786_v55 }
0x2f33   :  { %2651 = vmatpush.msra.mxu2 %v4791_v56 }
0x2f35   :  { %2652 = vmatpush.msra.mxu2 %v4797_v57 }
0x2f37   :  { %2653 = vmatpush.msra.mxu2 %v4806_v8 }
0x2fb3   :  { %v2341_v15 = vpop.f32.mrf.mxu2 }
0x2fb4   :  { %v2344_v16 = vadd.f32 %v2341_v15, %v4432_v51 }
0x2fb6   :  { %4121 = vtanh.f32 %v2344_v16  ;;  %v3861_v18 = vmul.f32 -1.442695, %v2344_v16 }
0x2fb8   :  { %4123 = vpow2.f32 %v3861_v18 }
0x2fbc   :  { %v4122_v13 = vpop.eup %4121 }
0x2fbd   :  { %2367 = vrot.lane.b32.xlu1 %v4122_v13, %s4268_s2 }
0x2fbe   :  { %v4124_v21 = vpop.eup %4123 }
0x2fbf   :  { %v2348_v14 = vadd.f32 1.0, %v4124_v21 }
0x2fc1   :  { %4125 = vrcp.f32 %v2348_v14  ;;  %v2360_v37 = vand.u32 2147483648, %v2348_v14  ;;  %vm2354_vm12 = vweird.f32 %v2348_v14  ;;  %v2358_v26 = vand.u32 2147483647, %v2348_v14 }
0x2fc3   :  { %v2361_v27 = vor.u32 1.1754944e-38, %v2360_v37  ;;  %vm2359_vm14 = vcmp.eq.f32.partialorder %v2358_v26, 8.507059e+37 }
0x2fc7   :  { %v4126_v20 = vpop.eup %4125 }
0x2fc8   :  { %v2350_v22 = vmul.f32 %v4126_v20, %v2348_v14  ;;  %vm2355_vm11 = vweird.f32 %v4126_v20 }
0x2fc9   :  { %vm2356_vm13 = vmor %vm2354_vm12, %vm2355_vm11 }
0x2fca   :  { %v2351_v24 = vsub.f32 1.0, %v2350_v22 }
0x2fcc   :  { %v2352_v25 = vmul.f32 %v4126_v20, %v2351_v24 }
0x2fce   :  { %v2353_v23 = vadd.f32 %v4126_v20, %v2352_v25 }
0x2fd0   :  { %v2357_v39 = vsel %vm2356_vm13, %v4126_v20, %v2353_v23 }
0x2fd1   :  { %v2362_v43 = vsel %vm2359_vm14, %v2361_v27, %v2357_v39 }
0x2fd2   :  { %v2365_v29 = vmul.f32 %v2362_v43, %v4771_v41 }
0x302f   :  { %v2368_v40 = vpop.permute.xlu1 %2367 }
0x3030   :  { %v2370_v28 = vmul.f32 %v2368_v40, %v2362_v43 }
0x3032   :  { %2372 = vrot.lane.b32.xlu2 %v2370_v28, %s4269_s4 }
0x308c   :  { %v2373_v30 = vpop.permute.xlu2 %2372 }
0x308d   :  { %v4822_v31 = vadd.f32 %v2373_v30, %v2365_v29 }
0x308f   :  { %4127 = vtanh.f32 %v4822_v31 }
0x3095   :  { %v4128_v35 = vpop.eup %4127 }
0x3096   :  { %2378 = vrot.lane.b32.xlu0 %v4128_v35, %s4268_s2 }
0x3108   :  { %v2379_v36 = vpop.permute.xlu0 %2378 }
0x3109   :  { %v2381_v38 = vmul.f32 %v2379_v36, %v2362_v43 }
0x310b   :  { %v2382_v44 = vadd.f32 %v2381_v38, %v4459_v48 }
0x310d   :  { %2384 = vrot.lane.b32.xlu1 %v2382_v44, %s4269_s4 }
0x317f   :  { %v2385_v45 = vpop.permute.xlu1 %2384 }
0x3180   :  { %3862 = vmatpush.xpose.msk.msra.mxu3 %vm88_vm5, %v2385_v45  ;;  %3864 = vmatpush.xpose.msk.msrb.mxu0 %vm88_vm5, %v2385_v45 }
0x3183   :  { %3863 = vmatmul.msk.f32.vlgmr.msra.gmra.mxu3 %vm88_vm5, %v4481_v1  ;;  %3865 = vmatmul.msk.f32.vlgmr.msrb.gmra.mxu0 %vm88_vm5, %v4491_v54 }
0x3200   :  { %v2425_v41 = vpop.f32.mrf.mxu0 }
0x3206   :  { %v2405_v32 = vpop.f32.mrf.mxu3 }
0x3207   :  { %v2428_v47 = vmax.f32 %v2405_v32, %v2425_v41 }
0x3209   :  { %v2429_v33 = vsub.f32 %v2405_v32, %v2428_v47  ;;  %v2432_v49 = vsub.f32 %v2425_v41, %v2428_v47 }
0x320b   :  { %v2430_v34 = vmul.f32 1.442695, %v2429_v33  ;;  %v2433_v46 = vmul.f32 1.442695, %v2432_v49 }
0x320d   :  { %4129 = vpow2.f32 %v2430_v34 }
0x320e   :  { %4131 = vpow2.f32 %v2433_v46 }
0x3213   :  { %v4130_v50 = vpop.eup %4129 }
0x3214   :  { %v4132_v52 = vpop.eup %4131 }
0x3215   :  { %v2435_v42 = vadd.f32 %v4132_v52, %v4130_v50 }
0x3217   :  { %4133 = vrcp.f32 %v2435_v42  ;;  %v2447_v17 = vand.u32 2147483648, %v2435_v42  ;;  %v2445_v62 = vand.u32 2147483647, %v2435_v42  ;;  %vm2441_vm1 = vweird.f32 %v2435_v42 }
0x3219   :  { %v2448_v2 = vor.u32 1.1754944e-38, %v2447_v17  ;;  %vm2446_vm3 = vcmp.eq.f32.partialorder %v2445_v62, 8.507059e+37 }
0x321d   :  { %v4134_v53 = vpop.eup %4133 }
0x321e   :  { %v2437_v58 = vmul.f32 %v4134_v53, %v2435_v42  ;;  %vm2442_vm0 = vweird.f32 %v4134_v53 }
0x321f   :  { %vm2443_vm2 = vmor %vm2441_vm1, %vm2442_vm0 }
0x3220   :  { %v2438_v59 = vsub.f32 1.0, %v2437_v58 }
0x3222   :  { %v2439_v60 = vmul.f32 %v4134_v53, %v2438_v59 }
0x3224   :  { %v2440_v63 = vadd.f32 %v4134_v53, %v2439_v60 }
0x3226   :  { %v2444_v3 = vsel %vm2443_vm2, %v4134_v53, %v2440_v63 }
0x3227   :  { %v2449_v4 = vsel %vm2446_vm3, %v2448_v2, %v2444_v3 }
0x3228   :  { %v2450_v5 = vmul.f32 %v4130_v50, %v2449_v4 }
0x322a   :  { %3866 = vmatmul.msk.f32.vlgmr.msrb.gmra.mxu1 %vm409_vm4, %v2450_v5 }
0x322b   :  { %2783 = vmatpush.msrb.mxu1 %v4481_v1 }
0x32a7   :  { %v2471_v6 = vpop.f32.mrf.mxu1 }
0x32a8   :  { %3867 = vmatmul.msk.f32.vlgmr.msrb.gmra.mxu2 %vm88_vm5, %v2471_v6 }
0x32a9   :  { %2807 = vmatpush.msrb.mxu2 %v4786_v55 }
0x32ab   :  { %2808 = vmatpush.msrb.mxu2 %v4791_v56 }
0x32ad   :  { %2809 = vmatpush.msrb.mxu2 %v4797_v57 }
0x32af   :  { %2810 = vmatpush.msrb.mxu2 %v4806_v8 }
0x332b   :  { %v2498_v7 = vpop.f32.mrf.mxu2 }
0x332c   :  { %v2501_v9 = vadd.f32 %v2498_v7, %v4432_v51 }
0x332e   :  { %4135 = vtanh.f32 %v2501_v9  ;;  %v3868_v12 = vmul.f32 -1.442695, %v2501_v9 }
0x3330   :  { %4137 = vpow2.f32 %v3868_v12 }
0x3334   :  { %v4136_v10 = vpop.eup %4135 }
0x3335   :  { %2524 = vrot.lane.b32.xlu2 %v4136_v10, %s4268_s2 }
0x3336   :  { %v4138_v15 = vpop.eup %4137 }
0x3337   :  { %v2505_v16 = vadd.f32 1.0, %v4138_v15 }
0x3339   :  { %4139 = vrcp.f32 %v2505_v16  ;;  %v2517_v22 = vand.u32 2147483648, %v2505_v16  ;;  %vm2511_vm7 = vweird.f32 %v2505_v16  ;;  %v2515_v24 = vand.u32 2147483647, %v2505_v16 }
0x333b   :  { %v2518_v23 = vor.u32 1.1754944e-38, %v2517_v22  ;;  %vm2516_vm9 = vcmp.eq.f32.partialorder %v2515_v24, 8.507059e+37 }
0x333f   :  { %v4140_v13 = vpop.eup %4139 }
0x3340   :  { %v2507_v18 = vmul.f32 %v4140_v13, %v2505_v16  ;;  %vm2512_vm6 = vweird.f32 %v4140_v13 }
0x3341   :  { %vm2513_vm8 = vmor %vm2511_vm7, %vm2512_vm6 }
0x3342   :  { %v2508_v21 = vsub.f32 1.0, %v2507_v18 }
0x3344   :  { %v2509_v14 = vmul.f32 %v4140_v13, %v2508_v21 }
0x3346   :  { %v2510_v20 = vadd.f32 %v4140_v13, %v2509_v14 }
0x3348   :  { %v2514_v25 = vsel %vm2513_vm8, %v4140_v13, %v2510_v20 }
0x3349   :  { %v2519_v26 = vsel %vm2516_vm9, %v2518_v23, %v2514_v25 }
0x334a   :  { %v2522_v27 = vmul.f32 %v2519_v26, %v4822_v31 }
0x338f   :  { %v2525_v37 = vpop.permute.xlu2 %2524 }
0x3390   :  { %v2527_v39 = vmul.f32 %v2525_v37, %v2519_v26 }
0x3392   :  { %2529 = vrot.lane.b32.xlu0 %v2527_v39, %s4269_s4 }
0x3404   :  { %v2530_v40 = vpop.permute.xlu0 %2529 }
0x3405   :  { %v4845_v43 = vadd.f32 %v2530_v40, %v2522_v27 }
0x3407   :  { %4141 = vtanh.f32 %v4845_v43 }
0x340d   :  { %v4142_v28 = vpop.eup %4141 }
0x340e   :  { %2535 = vrot.lane.b32.xlu1 %v4142_v28, %s4268_s2 }
0x3480   :  { %v2536_v29 = vpop.permute.xlu1 %2535 }
0x3481   :  { %v2538_v30 = vmul.f32 %v2536_v29, %v2519_v26 }
0x3483   :  { %v2539_v35 = vadd.f32 %v2538_v30, %v4459_v48 }
0x3485   :  { %2541 = vrot.lane.b32.xlu2 %v2539_v35, %s4269_s4 }
0x34df   :  { %v2542_v36 = vpop.permute.xlu2 %2541 }
0x34e0   :  { %3869 = vmatpush.xpose.msk.msrb.mxu3 %vm88_vm5, %v2542_v36  ;;  %3871 = vmatpush.xpose.msk.msra.mxu0 %vm88_vm5, %v2542_v36 }
0x34e3   :  { %3870 = vmatmul.msk.f32.vlgmr.msrb.gmra.mxu3 %vm88_vm5, %v4481_v1  ;;  %3872 = vmatmul.msk.f32.vlgmr.msra.gmra.mxu0 %vm88_vm5, %v4491_v54 }
0x3560   :  { %v2582_v31 = vpop.f32.mrf.mxu0 }
0x3566   :  { %v2562_v38 = vpop.f32.mrf.mxu3 }
0x3567   :  { %v2585_v44 = vmax.f32 %v2562_v38, %v2582_v31 }
0x3569   :  { %v2586_v45 = vsub.f32 %v2562_v38, %v2585_v44  ;;  %v2589_v41 = vsub.f32 %v2582_v31, %v2585_v44 }
0x356b   :  { %v2587_v32 = vmul.f32 1.442695, %v2586_v45  ;;  %v2590_v47 = vmul.f32 1.442695, %v2589_v41 }
0x356d   :  { %4143 = vpow2.f32 %v2587_v32 }
0x356e   :  { %4145 = vpow2.f32 %v2590_v47 }
0x3573   :  { %v4144_v33 = vpop.eup %4143 }
0x3574   :  { %v4146_v49 = vpop.eup %4145 }
0x3575   :  { %v2592_v34 = vadd.f32 %v4146_v49, %v4144_v33 }
0x3577   :  { %4147 = vrcp.f32 %v2592_v34  ;;  %v2604_v42 = vand.u32 2147483648, %v2592_v34  ;;  %v2602_v58 = vand.u32 2147483647, %v2592_v34  ;;  %vm2598_vm11 = vweird.f32 %v2592_v34 }
0x3579   :  { %v2605_v17 = vor.u32 1.1754944e-38, %v2604_v42  ;;  %vm2603_vm13 = vcmp.eq.f32.partialorder %v2602_v58, 8.507059e+37 }
0x357d   :  { %v4148_v46 = vpop.eup %4147 }
0x357e   :  { %v2594_v50 = vmul.f32 %v4148_v46, %v2592_v34  ;;  %vm2599_vm10 = vweird.f32 %v4148_v46 }
0x357f   :  { %vm2600_vm12 = vmor %vm2598_vm11, %vm2599_vm10 }
0x3580   :  { %v2595_v52 = vsub.f32 1.0, %v2594_v50 }
0x3582   :  { %v2596_v53 = vmul.f32 %v4148_v46, %v2595_v52 }
0x3584   :  { %v2597_v59 = vadd.f32 %v4148_v46, %v2596_v53 }
0x3586   :  { %v2601_v60 = vsel %vm2600_vm12, %v4148_v46, %v2597_v59 }
0x3587   :  { %v2606_v62 = vsel %vm2603_vm13, %v2605_v17, %v2601_v60 }
0x3588   :  { %v2607_v63 = vmul.f32 %v4144_v33, %v2606_v62 }
0x358a   :  { %3873 = vmatmul.msk.f32.vlgmr.msra.gmra.mxu1 %vm409_vm4, %v2607_v63 }
0x358b   :  { %2940 = vmatpush.msra.mxu1 %v4481_v1 }
0x3607   :  { %v2628_v2 = vpop.f32.mrf.mxu1 }
0x3608   :  { %3874 = vmatmul.msk.f32.vlgmr.msra.gmra.mxu2 %vm88_vm5, %v2628_v2 }
0x3609   :  { %2964 = vmatpush.msra.mxu2 %v4786_v55 }
0x360b   :  { %2965 = vmatpush.msra.mxu2 %v4791_v56 }
0x360d   :  { %2966 = vmatpush.msra.mxu2 %v4797_v57 }
0x360f   :  { %2967 = vmatpush.msra.mxu2 %v4806_v8 }
0x368b   :  { %v2655_v3 = vpop.f32.mrf.mxu2 }
0x368c   :  { %v2658_v4 = vadd.f32 %v2655_v3, %v4432_v51 }
0x368e   :  { %4149 = vtanh.f32 %v2658_v4  ;;  %v3875_v6 = vmul.f32 -1.442695, %v2658_v4 }
0x3690   :  { %4151 = vpow2.f32 %v3875_v6 }
0x3694   :  { %v4150_v5 = vpop.eup %4149 }
0x3695   :  { %2681 = vrot.lane.b32.xlu0 %v4150_v5, %s4268_s2 }
0x3696   :  { %v4152_v7 = vpop.eup %4151 }
0x3697   :  { %v2662_v9 = vadd.f32 1.0, %v4152_v7 }
0x3699   :  { %4153 = vrcp.f32 %v2662_v9  ;;  %v2674_v18 = vand.u32 2147483648, %v2662_v9  ;;  %vm2668_vm0 = vweird.f32 %v2662_v9  ;;  %v2672_v21 = vand.u32 2147483647, %v2662_v9 }
0x369b   :  { %v2675_v20 = vor.u32 1.1754944e-38, %v2674_v18  ;;  %vm2673_vm2 = vcmp.eq.f32.partialorder %v2672_v21, 8.507059e+37 }
0x369f   :  { %v4154_v10 = vpop.eup %4153 }
0x36a0   :  { %v2664_v12 = vmul.f32 %v4154_v10, %v2662_v9  ;;  %vm2669_vm14 = vweird.f32 %v4154_v10 }
0x36a1   :  { %vm2670_vm1 = vmor %vm2668_vm0, %vm2669_vm14 }
0x36a2   :  { %v2665_v15 = vsub.f32 1.0, %v2664_v12 }
0x36a4   :  { %v2666_v16 = vmul.f32 %v4154_v10, %v2665_v15 }
0x36a6   :  { %v2667_v13 = vadd.f32 %v4154_v10, %v2666_v16 }
0x36a8   :  { %v2671_v14 = vsel %vm2670_vm1, %v4154_v10, %v2667_v13 }
0x36a9   :  { %v2676_v24 = vsel %vm2673_vm2, %v2675_v20, %v2671_v14 }
0x36aa   :  { %v2679_v23 = vmul.f32 %v2676_v24, %v4845_v43 }
0x3707   :  { %v2682_v22 = vpop.permute.xlu0 %2681 }
0x3708   :  { %v2684_v25 = vmul.f32 %v2682_v22, %v2676_v24 }
0x370a   :  { %2686 = vrot.lane.b32.xlu1 %v2684_v25, %s4269_s4 }
0x377c   :  { %v2687_v37 = vpop.permute.xlu1 %2686 }
0x377d   :  { %v4868_v26 = vadd.f32 %v2687_v37, %v2679_v23 }
0x377f   :  { %4155 = vtanh.f32 %v4868_v26 }
0x3785   :  { %v4156_v39 = vpop.eup %4155 }
0x3786   :  { %2692 = vrot.lane.b32.xlu2 %v4156_v39, %s4268_s2 }
0x37e0   :  { %v2693_v27 = vpop.permute.xlu2 %2692 }
0x37e1   :  { %v2695_v40 = vmul.f32 %v2693_v27, %v2676_v24 }
0x37e3   :  { %v2696_v28 = vadd.f32 %v2695_v40, %v4459_v48 }
0x37e5   :  { %2698 = vrot.lane.b32.xlu0 %v2696_v28, %s4269_s4 }
0x3857   :  { %v2699_v29 = vpop.permute.xlu0 %2698 }
0x3858   :  { %3876 = vmatpush.xpose.msk.msra.mxu3 %vm88_vm5, %v2699_v29  ;;  %3878 = vmatpush.xpose.msk.msrb.mxu0 %vm88_vm5, %v2699_v29 }
0x385b   :  { %3877 = vmatmul.msk.f32.vlgmr.msra.gmra.mxu3 %vm88_vm5, %v4481_v1  ;;  %3879 = vmatmul.msk.f32.vlgmr.msrb.gmra.mxu0 %vm88_vm5, %v4491_v54 }
0x38d8   :  { %v2739_v43 = vpop.f32.mrf.mxu0 }
0x38de   :  { %v2719_v30 = vpop.f32.mrf.mxu3 }
0x38df   :  { %v2742_v35 = vmax.f32 %v2719_v30, %v2739_v43 }
0x38e1   :  { %v2743_v36 = vsub.f32 %v2719_v30, %v2742_v35  ;;  %v2746_v31 = vsub.f32 %v2739_v43, %v2742_v35 }
0x38e3   :  { %v2744_v38 = vmul.f32 1.442695, %v2743_v36  ;;  %v2747_v44 = vmul.f32 1.442695, %v2746_v31 }
0x38e5   :  { %4157 = vpow2.f32 %v2744_v38 }
0x38e6   :  { %4159 = vpow2.f32 %v2747_v44 }
0x38eb   :  { %v4158_v45 = vpop.eup %4157 }
0x38ec   :  { %v4160_v41 = vpop.eup %4159 }
0x38ed   :  { %v2749_v32 = vadd.f32 %v4160_v41, %v4158_v45 }
0x38ef   :  { %4161 = vrcp.f32 %v2749_v32  ;;  %v2761_v34 = vand.u32 2147483648, %v2749_v32  ;;  %v2759_v50 = vand.u32 2147483647, %v2749_v32  ;;  %vm2755_vm6 = vweird.f32 %v2749_v32 }
0x38f1   :  { %v2762_v42 = vor.u32 1.1754944e-38, %v2761_v34  ;;  %vm2760_vm8 = vcmp.eq.f32.partialorder %v2759_v50, 8.507059e+37 }
0x38f5   :  { %v4162_v47 = vpop.eup %4161 }
0x38f6   :  { %v2751_v33 = vmul.f32 %v4162_v47, %v2749_v32  ;;  %vm2756_vm3 = vweird.f32 %v4162_v47 }
0x38f7   :  { %vm2757_vm7 = vmor %vm2755_vm6, %vm2756_vm3 }
0x38f8   :  { %v2752_v49 = vsub.f32 1.0, %v2751_v33 }
0x38fa   :  { %v2753_v46 = vmul.f32 %v4162_v47, %v2752_v49 }
0x38fc   :  { %v2754_v52 = vadd.f32 %v4162_v47, %v2753_v46 }
0x38fe   :  { %v2758_v53 = vsel %vm2757_vm7, %v4162_v47, %v2754_v52 }
0x38ff   :  { %v2763_v58 = vsel %vm2760_vm8, %v2762_v42, %v2758_v53 }
0x3900   :  { %v2764_v59 = vmul.f32 %v4158_v45, %v2763_v58 }
0x3902   :  { %3880 = vmatmul.msk.f32.vlgmr.msrb.gmra.mxu1 %vm409_vm4, %v2764_v59 }
0x3903   :  { %3097 = vmatpush.msrb.mxu1 %v4481_v1 }
0x397f   :  { %v2785_v17 = vpop.f32.mrf.mxu1 }
0x3980   :  { %3881 = vmatmul.msk.f32.vlgmr.msrb.gmra.mxu2 %vm88_vm5, %v2785_v17 }
0x3981   :  { %3121 = vmatpush.msrb.mxu2 %v4786_v55 }
0x3983   :  { %3122 = vmatpush.msrb.mxu2 %v4791_v56 }
0x3985   :  { %3123 = vmatpush.msrb.mxu2 %v4797_v57 }
0x3987   :  { %3124 = vmatpush.msrb.mxu2 %v4806_v8 }
0x3a03   :  { %v2812_v60 = vpop.f32.mrf.mxu2 }
0x3a04   :  { %v2815_v62 = vadd.f32 %v2812_v60, %v4432_v51 }
0x3a06   :  { %4163 = vtanh.f32 %v2815_v62  ;;  %v3882_v2 = vmul.f32 -1.442695, %v2815_v62 }
0x3a08   :  { %4165 = vpow2.f32 %v3882_v2 }
0x3a0c   :  { %v4164_v63 = vpop.eup %4163 }
0x3a0d   :  { %2838 = vrot.lane.b32.xlu1 %v4164_v63, %s4268_s2 }
0x3a0e   :  { %v4166_v3 = vpop.eup %4165 }
0x3a0f   :  { %v2819_v4 = vadd.f32 1.0, %v4166_v3 }
0x3a11   :  { %4167 = vrcp.f32 %v2819_v4  ;;  %v2831_v12 = vand.u32 2147483648, %v2819_v4  ;;  %vm2825_vm10 = vweird.f32 %v2819_v4  ;;  %v2829_v15 = vand.u32 2147483647, %v2819_v4 }
0x3a13   :  { %v2832_v13 = vor.u32 1.1754944e-38, %v2831_v12  ;;  %vm2830_vm12 = vcmp.eq.f32.partialorder %v2829_v15, 8.507059e+37 }
0x3a17   :  { %v4168_v5 = vpop.eup %4167 }
0x3a18   :  { %v2821_v6 = vmul.f32 %v4168_v5, %v2819_v4  ;;  %vm2826_vm9 = vweird.f32 %v4168_v5 }
0x3a19   :  { %vm2827_vm11 = vmor %vm2825_vm10, %vm2826_vm9 }
0x3a1a   :  { %v2822_v7 = vsub.f32 1.0, %v2821_v6 }
0x3a1c   :  { %v2823_v9 = vmul.f32 %v4168_v5, %v2822_v7 }
0x3a1e   :  { %v2824_v10 = vadd.f32 %v4168_v5, %v2823_v9 }
0x3a20   :  { %v2828_v16 = vsel %vm2827_vm11, %v4168_v5, %v2824_v10 }
0x3a21   :  { %v2833_v21 = vsel %vm2830_vm12, %v2832_v13, %v2828_v16 }
0x3a22   :  { %v2836_v20 = vmul.f32 %v2833_v21, %v4868_v26 }
0x3a7f   :  { %v2839_v18 = vpop.permute.xlu1 %2838 }
0x3a80   :  { %v2841_v14 = vmul.f32 %v2839_v18, %v2833_v21 }
0x3a82   :  { %2843 = vrot.lane.b32.xlu2 %v2841_v14, %s4269_s4 }
0x3adc   :  { %v2844_v22 = vpop.permute.xlu2 %2843 }
0x3add   :  { %v4891_v24 = vadd.f32 %v2844_v22, %v2836_v20 }
0x3adf   :  { %4169 = vtanh.f32 %v4891_v24 }
0x3ae5   :  { %v4170_v25 = vpop.eup %4169 }
0x3ae6   :  { %2849 = vrot.lane.b32.xlu0 %v4170_v25, %s4268_s2 }
0x3b58   :  { %v2850_v23 = vpop.permute.xlu0 %2849 }
0x3b59   :  { %v2852_v37 = vmul.f32 %v2850_v23, %v2833_v21 }
0x3b5b   :  { %v2853_v39 = vadd.f32 %v2852_v37, %v4459_v48 }
0x3b5d   :  { %2855 = vrot.lane.b32.xlu1 %v2853_v39, %s4269_s4 }
0x3bcf   :  { %v2856_v27 = vpop.permute.xlu1 %2855 }
0x3bd0   :  { %3883 = vmatpush.xpose.msk.msrb.mxu3 %vm88_vm5, %v2856_v27  ;;  %3885 = vmatpush.xpose.msk.msra.mxu0 %vm88_vm5, %v2856_v27 }
0x3bd3   :  { %3884 = vmatmul.msk.f32.vlgmr.msrb.gmra.mxu3 %vm88_vm5, %v4481_v1  ;;  %3886 = vmatmul.msk.f32.vlgmr.msra.gmra.mxu0 %vm88_vm5, %v4491_v54 }
0x3c50   :  { %v2896_v26 = vpop.f32.mrf.mxu0 }
0x3c56   :  { %v2876_v40 = vpop.f32.mrf.mxu3 }
0x3c57   :  { %v2899_v28 = vmax.f32 %v2876_v40, %v2896_v26 }
0x3c59   :  { %v2900_v29 = vsub.f32 %v2876_v40, %v2899_v28  ;;  %v2903_v43 = vsub.f32 %v2896_v26, %v2899_v28 }
0x3c5b   :  { %v2901_v30 = vmul.f32 1.442695, %v2900_v29  ;;  %v2904_v35 = vmul.f32 1.442695, %v2903_v43 }
0x3c5d   :  { %4171 = vpow2.f32 %v2901_v30 }
0x3c5e   :  { %4173 = vpow2.f32 %v2904_v35 }
0x3c63   :  { %v4172_v36 = vpop.eup %4171 }
0x3c64   :  { %v4174_v31 = vpop.eup %4173 }
0x3c65   :  { %v2906_v38 = vadd.f32 %v4174_v31, %v4172_v36 }
0x3c67   :  { %4175 = vrcp.f32 %v2906_v38  ;;  %v2918_v32 = vand.u32 2147483648, %v2906_v38  ;;  %v2916_v33 = vand.u32 2147483647, %v2906_v38  ;;  %vm2912_vm14 = vweird.f32 %v2906_v38 }
0x3c69   :  { %v2919_v34 = vor.u32 1.1754944e-38, %v2918_v32  ;;  %vm2917_vm1 = vcmp.eq.f32.partialorder %v2916_v33, 8.507059e+37 }
0x3c6d   :  { %v4176_v44 = vpop.eup %4175 }
0x3c6e   :  { %v2908_v45 = vmul.f32 %v4176_v44, %v2906_v38  ;;  %vm2913_vm13 = vweird.f32 %v4176_v44 }
0x3c6f   :  { %vm2914_vm0 = vmor %vm2912_vm14, %vm2913_vm13 }
0x3c70   :  { %v2909_v41 = vsub.f32 1.0, %v2908_v45 }
0x3c72   :  { %v2910_v47 = vmul.f32 %v4176_v44, %v2909_v41 }
0x3c74   :  { %v2911_v49 = vadd.f32 %v4176_v44, %v2910_v47 }
0x3c76   :  { %v2915_v46 = vsel %vm2914_vm0, %v4176_v44, %v2911_v49 }
0x3c77   :  { %v2920_v50 = vsel %vm2917_vm1, %v2919_v34, %v2915_v46 }
0x3c78   :  { %v2921_v52 = vmul.f32 %v4172_v36, %v2920_v50 }
0x3c7a   :  { %3887 = vmatmul.msk.f32.vlgmr.msra.gmra.mxu1 %vm409_vm4, %v2921_v52 }
0x3c7b   :  { %3254 = vmatpush.msra.mxu1 %v4481_v1 }
0x3cf7   :  { %v2942_v42 = vpop.f32.mrf.mxu1 }
0x3cf8   :  { %3888 = vmatmul.msk.f32.vlgmr.msra.gmra.mxu2 %vm88_vm5, %v2942_v42 }
0x3cf9   :  { %3278 = vmatpush.msra.mxu2 %v4786_v55 }
0x3cfb   :  { %3279 = vmatpush.msra.mxu2 %v4791_v56 }
0x3cfd   :  { %3280 = vmatpush.msra.mxu2 %v4797_v57 }
0x3cff   :  { %3281 = vmatpush.msra.mxu2 %v4806_v8 }
0x3d7b   :  { %v2969_v53 = vpop.f32.mrf.mxu2 }
0x3d7c   :  { %v2972_v58 = vadd.f32 %v2969_v53, %v4432_v51 }
0x3d7e   :  { %4177 = vtanh.f32 %v2972_v58  ;;  %v3889_v17 = vmul.f32 -1.442695, %v2972_v58 }
0x3d80   :  { %4179 = vpow2.f32 %v3889_v17 }
0x3d84   :  { %v4178_v59 = vpop.eup %4177 }
0x3d85   :  { %2995 = vrot.lane.b32.xlu2 %v4178_v59, %s4268_s2 }
0x3d86   :  { %v4180_v60 = vpop.eup %4179 }
0x3d87   :  { %v2976_v62 = vadd.f32 1.0, %v4180_v60 }
0x3d89   :  { %4181 = vrcp.f32 %v2976_v62  ;;  %v2988_v57 = vand.u32 2147483648, %v2976_v62  ;;  %vm2982_vm3 = vweird.f32 %v2976_v62  ;;  %v2986_v8 = vand.u32 2147483647, %v2976_v62 }
0x3d8b   :  { %v2989_v5 = vor.u32 1.1754944e-38, %v2988_v57  ;;  %vm2987_vm7 = vcmp.eq.f32.partialorder %v2986_v8, 8.507059e+37 }
0x3d8f   :  { %v4182_v63 = vpop.eup %4181 }
0x3d90   :  { %v2978_v55 = vmul.f32 %v4182_v63, %v2976_v62  ;;  %vm2983_vm2 = vweird.f32 %v4182_v63 }
0x3d91   :  { %vm2984_vm6 = vmor %vm2982_vm3, %vm2983_vm2 }
0x3d92   :  { %v2979_v2 = vsub.f32 1.0, %v2978_v55 }
0x3d94   :  { %v2980_v56 = vmul.f32 %v4182_v63, %v2979_v2 }
0x3d96   :  { %v2981_v3 = vadd.f32 %v4182_v63, %v2980_v56 }
0x3d98   :  { %v2985_v4 = vsel %vm2984_vm6, %v4182_v63, %v2981_v3 }
0x3d99   :  { %v2990_v7 = vsel %vm2987_vm7, %v2989_v5, %v2985_v4 }
0x3d9a   :  { %v2993_v10 = vmul.f32 %v2990_v7, %v4891_v24 }
0x3ddf   :  { %v2996_v6 = vpop.permute.xlu2 %2995 }
0x3de0   :  { %v2998_v9 = vmul.f32 %v2996_v6, %v2990_v7 }
0x3de2   :  { %3000 = vrot.lane.b32.xlu0 %v2998_v9, %s4269_s4 }
0x3e54   :  { %v3001_v12 = vpop.permute.xlu0 %3000 }
0x3e55   :  { %v4914_v15 = vadd.f32 %v3001_v12, %v2993_v10 }
0x3e57   :  { %4183 = vtanh.f32 %v4914_v15 }
0x3e5d   :  { %v4184_v16 = vpop.eup %4183 }
0x3e5e   :  { %3006 = vrot.lane.b32.xlu1 %v4184_v16, %s4268_s2 }
0x3ed0   :  { %v3007_v13 = vpop.permute.xlu1 %3006 }
0x3ed1   :  { %v3009_v18 = vmul.f32 %v3007_v13, %v2990_v7 }
0x3ed3   :  { %v3010_v21 = vadd.f32 %v3009_v18, %v4459_v48 }
0x3ed5   :  { %3012 = vrot.lane.b32.xlu2 %v3010_v21, %s4269_s4 }
0x3f2f   :  { %v3013_v14 = vpop.permute.xlu2 %3012 }
0x3f30   :  { %3890 = vmatpush.xpose.msk.msra.mxu3 %vm88_vm5, %v3013_v14  ;;  %3892 = vmatpush.xpose.msk.msrb.mxu0 %vm88_vm5, %v3013_v14 }
0x3f33   :  { %3891 = vmatmul.msk.f32.vlgmr.msra.gmra.mxu3 %vm88_vm5, %v4481_v1  ;;  %3893 = vmatmul.msk.f32.vlgmr.msrb.gmra.mxu0 %vm88_vm5, %v4491_v54 }
0x3fb0   :  { %v3053_v20 = vpop.f32.mrf.mxu0 }
0x3fb6   :  { %v3033_v22 = vpop.f32.mrf.mxu3 }
0x3fb7   :  { %v3056_v24 = vmax.f32 %v3033_v22, %v3053_v20 }
0x3fb9   :  { %v3057_v25 = vsub.f32 %v3033_v22, %v3056_v24  ;;  %v3060_v23 = vsub.f32 %v3053_v20, %v3056_v24 }
0x3fbb   :  { %v3058_v37 = vmul.f32 1.442695, %v3057_v25  ;;  %v3061_v39 = vmul.f32 1.442695, %v3060_v23 }
0x3fbd   :  { %4185 = vpow2.f32 %v3058_v37 }
0x3fbe   :  { %4187 = vpow2.f32 %v3061_v39 }
0x3fc3   :  { %v4186_v27 = vpop.eup %4185 }
0x3fc4   :  { %v4188_v26 = vpop.eup %4187 }
0x3fc5   :  { %v3063_v40 = vadd.f32 %v4188_v26, %v4186_v27 }
0x3fc7   :  { %4189 = vrcp.f32 %v3063_v40  ;;  %v3075_v30 = vand.u32 2147483648, %v3063_v40  ;;  %v3073_v36 = vand.u32 2147483647, %v3063_v40  ;;  %vm3069_vm9 = vweird.f32 %v3063_v40 }
0x3fc9   :  { %v3076_v38 = vor.u32 1.1754944e-38, %v3075_v30  ;;  %vm3074_vm11 = vcmp.eq.f32.partialorder %v3073_v36, 8.507059e+37 }
0x3fcd   :  { %v4190_v28 = vpop.eup %4189 }
0x3fce   :  { %v3065_v29 = vmul.f32 %v4190_v28, %v3063_v40  ;;  %vm3070_vm8 = vweird.f32 %v4190_v28 }
0x3fcf   :  { %vm3071_vm10 = vmor %vm3069_vm9, %vm3070_vm8 }
0x3fd0   :  { %v3066_v43 = vsub.f32 1.0, %v3065_v29 }
0x3fd2   :  { %v3067_v35 = vmul.f32 %v4190_v28, %v3066_v43 }
0x3fd4   :  { %v3068_v31 = vadd.f32 %v4190_v28, %v3067_v35 }
0x3fd6   :  { %v3072_v44 = vsel %vm3071_vm10, %v4190_v28, %v3068_v31 }
0x3fd7   :  { %v3077_v45 = vsel %vm3074_vm11, %v3076_v38, %v3072_v44  ;;  %v3469_v38 = vmul.f32 %v4473_v61, %v4473_v61 }
0x3fd8   :  { %v3078_v41 = vmul.f32 %v4186_v27, %v3077_v45 }
0x3fd9   :  { %v3471_v44 = vsel %vm3470_vm15, %v3469_v38, 0.0 }
0x3fda   :  { %3894 = vmatmul.msk.f32.vlgmr.msrb.gmra.mxu1 %vm409_vm4, %v3078_v41  ;;  %v3472_v45 = vrot.slane %v3471_v44, 4 }
0x3fdb   :  { %3412 = vmatpush.msrb.mxu1 %v4481_v1 }
0x3fdc   :  { %v3473_v41 = vadd.f32 %v3472_v45, %v3471_v44 }
0x4057   :  { %v3099_v32 = vpop.f32.mrf.mxu1 }
0x4058   :  { %3895 = vmatmul.msk.f32.vlgmr.msrb.gmra.mxu2 %vm88_vm5, %v3099_v32 }
0x4059   :  { %3436 = vmatpush.msrb.mxu2 %v4491_v54 }
0x40db   :  { %v3126_v47 = vpop.f32.mrf.mxu2 }
0x40dc   :  { %v3129_v33 = vadd.f32 %v3126_v47, %v4432_v51  ;;  %v3474_v47 = vrot.slane %v3473_v41, 2 }
0x40de   :  { %4191 = vtanh.f32 %v3129_v33  ;;  %v3896_v34 = vmul.f32 -1.442695, %v3129_v33  ;;  %v3475_v33 = vadd.f32 %v3474_v47, %v3473_v41 }
0x40e0   :  { %4193 = vpow2.f32 %v3896_v34  ;;  %v3476_v34 = vrot.slane %v3475_v33, 1 }
0x40e4   :  { %v4192_v49 = vpop.eup %4191 }
0x40e5   :  { %3152 = vrot.lane.b32.xlu0 %v4192_v49, %s4268_s2 }
0x40e6   :  { %v4194_v46 = vpop.eup %4193 }
0x40e7   :  { %v3133_v50 = vadd.f32 1.0, %v4194_v46 }
0x40e9   :  { %4195 = vrcp.f32 %v3133_v50  ;;  %v3145_v17 = vand.u32 2147483648, %v3133_v50  ;;  %vm3139_vm13 = vweird.f32 %v3133_v50  ;;  %v3143_v60 = vand.u32 2147483647, %v3133_v50 }
0x40eb   :  { %v3146_v63 = vor.u32 1.1754944e-38, %v3145_v17  ;;  %vm3144_vm0 = vcmp.eq.f32.partialorder %v3143_v60, 8.507059e+37 }
0x40ef   :  { %v4196_v52 = vpop.eup %4195 }
0x40f0   :  { %v3135_v42 = vmul.f32 %v4196_v52, %v3133_v50  ;;  %vm3140_vm12 = vweird.f32 %v4196_v52  ;;  %v3477_v50 = vadd.f32 %v3476_v34, %v3475_v33 }
0x40f1   :  { %vm3141_vm14 = vmor %vm3139_vm13, %vm3140_vm12 }
0x40f2   :  { %v3136_v53 = vsub.f32 1.0, %v3135_v42  ;;  %vm3485_vm10 = vcmp.eq.f32.partialorder %v3477_v50, inf  ;;  %vm3487_vm11 = vcmp.eq.f32.partialorder %v3477_v50, 0.0 }
0x40f4   :  { %v3137_v58 = vmul.f32 %v4196_v52, %v3136_v53 }
0x40f6   :  { %v3138_v59 = vadd.f32 %v4196_v52, %v3137_v58 }
0x40f8   :  { %v3142_v62 = vsel %vm3141_vm14, %v4196_v52, %v3138_v59 }
0x40f9   :  { %v3147_v2 = vsel %vm3144_vm0, %v3146_v63, %v3142_v62 }
0x40fa   :  { %v3150_v3 = vmul.f32 %v3147_v2, %v4914_v15 }
0x4157   :  { %v3153_v55 = vpop.permute.xlu0 %3152 }
0x4158   :  { %v3155_v56 = vmul.f32 %v3153_v55, %v3147_v2 }
0x415a   :  { %3157 = vrot.lane.b32.xlu1 %v3155_v56, %s4269_s4 }
0x41cc   :  { %v3158_v57 = vpop.permute.xlu1 %3157 }
0x41cd   :  { %v4934_v8 = vadd.f32 %v3158_v57, %v3150_v3 }
0x41cf   :  { %4197 = vtanh.f32 %v4934_v8 }
0x41d5   :  { %v4198_v4 = vpop.eup %4197 }
0x41d6   :  { %3163 = vrot.lane.b32.xlu2 %v4198_v4, %s4268_s2 }
0x4230   :  { %v3164_v5 = vpop.permute.xlu2 %3163 }
0x4231   :  { %v3166_v6 = vmul.f32 %v3164_v5, %v3147_v2 }
0x4233   :  { %v3167_v7 = vadd.f32 %v3166_v6, %v4459_v48 }
0x4235   :  { %3169 = vrot.lane.b32.xlu0 %v3167_v7, %s4269_s4 }
0x42a7   :  { %v3170_v9 = vpop.permute.xlu0 %3169 }
0x42a8   :  { %3897 = vmatpush.xpose.msk.msrb.mxu3 %vm88_vm5, %v3170_v9  ;;  %3899 = vmatpush.xpose.msk.msra.mxu0 %vm88_vm5, %v3170_v9  ;;  %v3488_v9 = vand.u32 2147483648, %v3477_v50 }
0x42ab   :  { %3898 = vmatmul.msk.f32.vlgmr.msrb.gmra.mxu3 %vm88_vm5, %v4481_v1  ;;  %3900 = vmatmul.msk.f32.vlgmr.msra.gmra.mxu0 %vm88_vm5, %v4491_v54 }
0x4328   :  { %v3210_v10 = vpop.f32.mrf.mxu0 }
0x432e   :  { %v3190_v12 = vpop.f32.mrf.mxu3 }
0x432f   :  { %v3213_v15 = vmax.f32 %v3190_v12, %v3210_v10 }
0x4331   :  { %v3214_v16 = vsub.f32 %v3190_v12, %v3213_v15  ;;  %v3217_v13 = vsub.f32 %v3210_v10, %v3213_v15  ;;  %v3541_v12 = vrot.slane %v4479_v0, 4 }
0x4333   :  { %v3215_v18 = vmul.f32 1.442695, %v3214_v16  ;;  %v3218_v21 = vmul.f32 1.442695, %v3217_v13  ;;  %v3542_v15 = vadd.f32 %v3541_v12, %v4479_v0 }
0x4335   :  { %4199 = vpow2.f32 %v3215_v18  ;;  %v3543_v16 = vrot.slane %v3542_v15, 2 }
0x4336   :  { %4201 = vpow2.f32 %v3218_v21 }
0x4337   :  { %v3544_v13 = vadd.f32 %v3543_v16, %v3542_v15 }
0x4339   :  { %v3545_v18 = vrot.slane %v3544_v13, 1 }
0x433b   :  { %v4200_v14 = vpop.eup %4199  ;;  %v3546_v21 = vadd.f32 %v3545_v18, %v3544_v13 }
0x433c   :  { %v4202_v20 = vpop.eup %4201 }
0x433d   :  { %v3220_v22 = vadd.f32 %v4202_v20, %v4200_v14  ;;  %vm3554_vm12 = vcmp.eq.f32.partialorder %v3546_v21, inf  ;;  %vm3556_vm13 = vcmp.eq.f32.partialorder %v3546_v21, 0.0 }
0x433f   :  { %4203 = vrcp.f32 %v3220_v22  ;;  %v3232_v37 = vand.u32 2147483648, %v3220_v22  ;;  %v3230_v27 = vand.u32 2147483647, %v3220_v22  ;;  %vm3226_vm2 = vweird.f32 %v3220_v22 }
0x4341   :  { %v3233_v40 = vor.u32 1.1754944e-38, %v3232_v37  ;;  %vm3231_vm6 = vcmp.eq.f32.partialorder %v3230_v27, 8.507059e+37 }
0x4345   :  { %v4204_v24 = vpop.eup %4203 }
0x4346   :  { %v3222_v25 = vmul.f32 %v4204_v24, %v3220_v22  ;;  %vm3227_vm1 = vweird.f32 %v4204_v24 }
0x4347   :  { %vm3228_vm3 = vmor %vm3226_vm2, %vm3227_vm1 }
0x4348   :  { %v3223_v23 = vsub.f32 1.0, %v3222_v25 }
0x434a   :  { %v3224_v39 = vmul.f32 %v4204_v24, %v3223_v23 }
0x434c   :  { %v3225_v26 = vadd.f32 %v4204_v24, %v3224_v39 }
0x434e   :  { %v3229_v28 = vsel %vm3228_vm3, %v4204_v24, %v3225_v26 }
0x434f   :  { %v3234_v29 = vsel %vm3231_vm6, %v3233_v40, %v3229_v28  ;;  %v3557_v28 = vand.u32 2147483648, %v3546_v21 }
0x4350   :  { %v3235_v43 = vmul.f32 %v4200_v14, %v3234_v29 }
0x4352   :  { %3901 = vmatmul.msk.f32.vlgmr.msra.gmra.mxu1 %vm409_vm4, %v3235_v43 }
0x43cf   :  { %v3256_v30 = vpop.f32.mrf.mxu1 }
0x43d0   :  { %3902 = vmatmul.msk.f32.vlgmr.msra.gmra.mxu2 %vm88_vm5, %v3256_v30 }
0x4453   :  { %v3283_v35 = vpop.f32.mrf.mxu2 }
0x4454   :  { %v3286_v36 = vadd.f32 %v3283_v35, %v4432_v51 }
0x4456   :  { %4205 = vtanh.f32 %v3286_v36  ;;  %v3903_v32 = vmul.f32 -1.442695, %v3286_v36 }
0x4458   :  { %4207 = vpow2.f32 %v3903_v32 }
0x445c   :  { %v4206_v31 = vpop.eup %4205 }
0x445d   :  { %3309 = vrot.lane.b32.xlu1 %v4206_v31, %s4268_s2 }
0x445e   :  { %v4208_v49 = vpop.eup %4207 }
0x445f   :  { %v3290_v46 = vadd.f32 1.0, %v4208_v49 }
0x4461   :  { %4209 = vrcp.f32 %v3290_v46  ;;  %v3302_v62 = vand.u32 2147483648, %v3290_v46  ;;  %vm3296_vm7 = vweird.f32 %v3290_v46  ;;  %v3300_v63 = vand.u32 2147483647, %v3290_v46 }
0x4462   :  { %4211 = vrsqrt.f32 %v3477_v50 }
0x4463   :  { %v3303_v56 = vor.u32 1.1754944e-38, %v3302_v62  ;;  %vm3301_vm9 = vcmp.eq.f32.partialorder %v3300_v63, 8.507059e+37  ;;  %4213 = vrsqrt.f32 %v3546_v21 }
0x4467   :  { %v4210_v51 = vpop.eup %4209 }
0x4468   :  { %v4212_v52 = vpop.eup %4211  ;;  %v3292_v42 = vmul.f32 %v4210_v51, %v3290_v46  ;;  %vm3297_vm15 = vweird.f32 %v4210_v51 }
0x4469   :  { %v3479_v53 = vmul.f32 %v4212_v52, %v3477_v50  ;;  %vm3298_vm8 = vmor %vm3296_vm7, %vm3297_vm15  ;;  %v4214_v14 = vpop.eup %4213 }
0x446a   :  { %v3293_v58 = vsub.f32 1.0, %v3292_v42  ;;  %v3548_v20 = vmul.f32 %v4214_v14, %v3546_v21 }
0x446b   :  { %v3480_v61 = vmul.f32 %v4212_v52, %v3479_v53 }
0x446c   :  { %v3294_v59 = vmul.f32 %v4210_v51, %v3293_v58  ;;  %v3549_v22 = vmul.f32 %v4214_v14, %v3548_v20 }
0x446d   :  { %v3481_v17 = vmul.f32 0.5, %v3480_v61 }
0x446e   :  { %v3295_v60 = vadd.f32 %v4210_v51, %v3294_v59  ;;  %v3550_v24 = vmul.f32 0.5, %v3549_v22 }
0x446f   :  { %v3482_v55 = vsub.f32 1.5, %v3481_v17 }
0x4470   :  { %v3299_v2 = vsel %vm3298_vm8, %v4210_v51, %v3295_v60  ;;  %v3551_v39 = vsub.f32 1.5, %v3550_v24 }
0x4471   :  { %v3483_v3 = vmul.f32 %v4212_v52, %v3482_v55  ;;  %v3304_v4 = vsel %vm3301_vm9, %v3303_v56, %v3299_v2 }
0x4472   :  { %v3307_v25 = vmul.f32 %v3304_v4, %v4934_v8  ;;  %v3552_v27 = vmul.f32 %v4214_v14, %v3551_v39 }
0x4473   :  { %v3484_v6 = vmul.f32 %v3483_v3, %v3477_v50 }
0x4474   :  { %v3553_v0 = vmul.f32 %v3552_v27, %v3546_v21 }
0x4475   :  { %v3486_v7 = vsel %vm3485_vm10, %v3477_v50, %v3484_v6 }
0x4476   :  { %v3489_v10 = vsel %vm3487_vm11, %v3488_v9, %v3486_v7  ;;  %v3555_v40 = vsel %vm3554_vm12, %v3546_v21, %v3553_v0 }
0x4477   :  { %v3558_v29 = vsel %vm3556_vm13, %v3557_v28, %v3555_v40 }
0x44cf   :  { %v3310_v57 = vpop.permute.xlu1 %3309 }
0x44d0   :  { %v3312_v5 = vmul.f32 %v3310_v57, %v3304_v4 }
0x44d2   :  { %3314 = vrot.lane.b32.xlu2 %v3312_v5, %s4269_s4 }
0x44da   :  { %3491 = vrot.lane.b32.xlu2 %v3489_v10, %s4269_s4 }
0x452c   :  { %v3315_v23 = vpop.permute.xlu2 %3314 }
0x452d   :  { %v3317_v37 = vadd.f32 %v3315_v23, %v3307_v25 }
0x452f   :  { %4215 = vtanh.f32 %v3317_v37 }
0x4535   :  { %v4216_v26 = vpop.eup %4215 }
0x4536   :  { %3320 = vrot.lane.b32.xlu0 %v4216_v26, %s4268_s2 }
0x453e   :  { %3560 = vrot.lane.b32.xlu0 %v3558_v29, %s4269_s4  ;;  %v3492_v29 = vpop.permute.xlu2 %3491 }
0x45a8   :  { %v3321_v43 = vpop.permute.xlu0 %3320 }
0x45a9   :  { %v3323_v30 = vmul.f32 %v3321_v43, %v3304_v4 }
0x45ab   :  { %v3324_v8 = vadd.f32 %v3323_v30, %v4459_v48 }
0x45ad   :  { %3326 = vrot.lane.b32.xlu1 %v3324_v8, %s4269_s4 }
0x461f   :  { %v3327_v35 = vpop.permute.xlu1 %3326 }
0x4620   :  { %3904 = vmatpush.xpose.msk.msra.mxu3 %vm88_vm5, %v3327_v35  ;;  %3906 = vmatpush.xpose.msk.msrb.mxu0 %vm88_vm5, %v3327_v35 }
0x4623   :  { %3905 = vmatmul.msk.f32.vlgmr.msra.gmra.mxu3 %vm88_vm5, %v4481_v1  ;;  %3907 = vmatmul.msk.f32.vlgmr.msrb.gmra.mxu0 %vm88_vm5, %v4491_v54 }
0x46a0   :  { %v3367_v36 = vpop.f32.mrf.mxu0 }
0x46a6   :  { %v3347_v31 = vpop.f32.mrf.mxu3 }
0x46a7   :  { %v3370_v38 = vmax.f32 %v3347_v31, %v3367_v36 }
0x46a9   :  { %v3371_v44 = vsub.f32 %v3347_v31, %v3370_v38  ;;  %v3374_v45 = vsub.f32 %v3367_v36, %v3370_v38 }
0x46ab   :  { %v3372_v41 = vmul.f32 1.442695, %v3371_v44  ;;  %v3375_v48 = vmul.f32 1.442695, %v3374_v45 }
0x46ad   :  { %4217 = vpow2.f32 %v3372_v41 }
0x46ae   :  { %4219 = vpow2.f32 %v3375_v48 }
0x46b3   :  { %v4218_v32 = vpop.eup %4217 }
0x46b4   :  { %v4220_v47 = vpop.eup %4219 }
0x46b5   :  { %v3377_v33 = vadd.f32 %v4220_v47, %v4218_v32 }
0x46b7   :  { %4221 = vrcp.f32 %v3377_v33  ;;  %v3389_v50 = vand.u32 2147483648, %v3377_v33  ;;  %v3387_v52 = vand.u32 2147483647, %v3377_v33  ;;  %vm3383_vm0 = vweird.f32 %v3377_v33 }
0x46b9   :  { %v3390_v53 = vor.u32 1.1754944e-38, %v3389_v50  ;;  %vm3388_vm2 = vcmp.eq.f32.partialorder %v3387_v52, 8.507059e+37 }
0x46bd   :  { %v4222_v49 = vpop.eup %4221 }
0x46be   :  { %v3379_v34 = vmul.f32 %v4222_v49, %v3377_v33  ;;  %vm3384_vm14 = vweird.f32 %v4222_v49 }
0x46bf   :  { %vm3385_vm1 = vmor %vm3383_vm0, %vm3384_vm14 }
0x46c0   :  { %v3380_v46 = vsub.f32 1.0, %v3379_v34 }
0x46c2   :  { %v3381_v51 = vmul.f32 %v4222_v49, %v3380_v46 }
0x46c4   :  { %v3382_v42 = vadd.f32 %v4222_v49, %v3381_v51 }
0x46c6   :  { %v3386_v58 = vsel %vm3385_vm1, %v4222_v49, %v3382_v42  ;;  %vm3582_vm1 = vcmask 253952  }
0x46c7   :  { %v3391_v61 = vsel %vm3388_vm2, %v3390_v53, %v3386_v58 }
0x46c8   :  { %v3392_v59 = vmul.f32 %v4218_v32, %v3391_v61  ;;  %v3393_v17 = vmul.f32 %v4220_v47, %v3391_v61  ;;  %v3561_v32 = vpop.permute.xlu0 %3560 }
0x46ca   :  { %3908 = vmatmul.msk.f32.vlgmr.msrb.gmra.mxu1 %vm409_vm4, %v3392_v59  ;;  %3909 = vmatmul.msk.f32.vlgmr.msrb.gmra.mxu2 %vm409_vm4, %v3393_v17 }
0x4747   :  { %v3414_v60 = vpop.f32.mrf.mxu1 }
0x4748   :  { %v3449_v62 = vmul.f32 %v3414_v60, %v3414_v60  ;;  %v3441_v24 = vmul.f32 %v3414_v60, %v4481_v1 }
0x474a   :  { %v3450_v63 = vsel %vm88_vm5, %v3449_v62, 0.0  ;;  %v3442_v27 = vsel %vm88_vm5, %v3441_v24, 0.0 }
0x474b   :  { %v3451_v55 = vrot.slane %v3450_v63, 4  ;;  %v3443_v43 = vrot.slane %v3442_v27, 4 }
0x474d   :  { %v3452_v2 = vadd.f32 %v3451_v55, %v3450_v63  ;;  %v3438_v56 = vpop.f32.mrf.mxu2  ;;  %v3444_v38 = vadd.f32 %v3443_v43, %v3442_v27  ;;  %v3623_v27 = vld [vmem:[%s5012_s8 + $0x8] sm:$0xff] }
0x474e   :  { %v3519_v3 = vmul.f32 %v3438_v56, %v3438_v56  ;;  %v3511_v8 = vmul.f32 %v3438_v56, %v4491_v54 }
0x474f   :  { %v3453_v57 = vrot.slane %v3452_v2, 2  ;;  %v3445_v49 = vrot.slane %v3444_v38, 2 }
0x4750   :  { %v3520_v4 = vsel %vm88_vm5, %v3519_v3, 0.0  ;;  %v3512_v44 = vsel %vm88_vm5, %v3511_v8, 0.0 }
0x4751   :  { %v3454_v5 = vadd.f32 %v3453_v57, %v3452_v2  ;;  %v3521_v6 = vrot.slane %v3520_v4, 4  ;;  %v3513_v47 = vrot.slane %v3512_v44, 4  ;;  %v3446_v51 = vadd.f32 %v3445_v49, %v3444_v38 }
0x4753   :  { %v3455_v7 = vrot.slane %v3454_v5, 1  ;;  %v3522_v9 = vadd.f32 %v3521_v6, %v3520_v4  ;;  %v3514_v50 = vadd.f32 %v3513_v47, %v3512_v44  ;;  %v3447_v61 = vrot.slane %v3446_v51, 1 }
0x4755   :  { %v3456_v10 = vadd.f32 %v3455_v7, %v3454_v5  ;;  %v3523_v12 = vrot.slane %v3522_v9, 2  ;;  %v3515_v58 = vrot.slane %v3514_v50, 2  ;;  %v3448_v56 = vadd.f32 %v3447_v61, %v3446_v51 }
0x4757   :  { %4223 = vrsqrt.f32 %v3456_v10  ;;  %v3524_v15 = vadd.f32 %v3523_v12, %v3522_v9  ;;  %vm3464_vm3 = vcmp.eq.f32.partialorder %v3456_v10, inf  ;;  %v3467_v0 = vand.u32 2147483648, %v3456_v10 }
0x4758   :  { %vm3466_vm6 = vcmp.eq.f32.partialorder %v3456_v10, 0.0  ;;  %v3516_v55 = vadd.f32 %v3515_v58, %v3514_v50  ;;  %v3922_v50 = vld [vmem:[%s5013_s9] ss:$0 sm:$0xff]  ;;  %s4271_s9 = smov [#allocation2]  }
0x4759   :  { %v3525_v16 = vrot.slane %v3524_v15, 1 }
0x475a   :  { %v3517_v7 = vrot.slane %v3516_v55, 1 }
0x475b   :  { %v3526_v13 = vadd.f32 %v3525_v16, %v3524_v15 }
0x475d   :  { %v4224_v18 = vpop.eup %4223  ;;  %4225 = vrsqrt.f32 %v3526_v13  ;;  %vm3534_vm15 = vcmp.eq.f32.partialorder %v3526_v13, inf  ;;  %v3537_v41 = vand.u32 2147483648, %v3526_v13  ;;  %vm3536_vm7 = vcmp.eq.f32.partialorder %v3526_v13, 0.0 }
0x475e   :  { %v3458_v21 = vmul.f32 %v4224_v18, %v3456_v10 }
0x4760   :  { %v3459_v14 = vmul.f32 %v4224_v18, %v3458_v21 }
0x4762   :  { %v3460_v20 = vmul.f32 0.5, %v3459_v14 }
0x4763   :  { %v4226_v22 = vpop.eup %4225 }
0x4764   :  { %v3461_v25 = vsub.f32 1.5, %v3460_v20  ;;  %v3528_v23 = vmul.f32 %v4226_v22, %v3526_v13 }
0x4766   :  { %v3462_v37 = vmul.f32 %v4224_v18, %v3461_v25  ;;  %v3529_v39 = vmul.f32 %v4226_v22, %v3528_v23 }
0x4768   :  { %v3463_v26 = vmul.f32 %v3462_v37, %v3456_v10  ;;  %v3530_v40 = vmul.f32 0.5, %v3529_v39  ;;  %v3625_v37 = vld [vmem:[%s5012_s8 + $0x18] sm:$0xff]  ;;  %v3624_v39 = vld [vmem:[%s5012_s8 + $0x10] sm:$0xff] }
0x4769   :  { %3645 = vmatpush.msrb.mxu3 %v3625_v37 }
0x476a   :  { %v3465_v28 = vsel %vm3464_vm3, %v3456_v10, %v3463_v26  ;;  %v3531_v35 = vsub.f32 1.5, %v3530_v40  ;;  %v3622_v26 = vld [vmem:[%s5012_s8] sm:$0xff] }
0x476b   :  { %v3468_v30 = vsel %vm3466_vm6, %v3467_v0, %v3465_v28  ;;  %3646 = vmatpush.msrb.mxu3 %v3624_v39 }
0x476c   :  { %v3494_v36 = vmul.f32 %v3492_v29, %v3468_v30  ;;  %v3532_v1 = vmul.f32 %v4226_v22, %v3531_v35  ;;  %v3593_v35 = vshrl.u32 %v213_v19, 7 }
0x476d   :  { %3647 = vmatpush.msrb.mxu3 %v3623_v27 }
0x476e   :  { %v3495_v31 = vmax.f32 %v3494_v36, 1e-08  ;;  %v3533_v45 = vmul.f32 %v3532_v1, %v3526_v13 }
0x476f   :  { %3648 = vmatpush.msrb.mxu3 %v3622_v26 }
0x4770   :  { %4227 = vrcp.f32 %v3495_v31  ;;  %v3535_v48 = vsel %vm3534_vm15, %v3526_v13, %v3533_v45  ;;  %v3507_v53 = vand.u32 2147483648, %v3495_v31  ;;  %v3505_v17 = vand.u32 2147483647, %v3495_v31 }
0x4771   :  { %v3538_v33 = vsel %vm3536_vm7, %v3537_v41, %v3535_v48  ;;  %vm3501_vm9 = vweird.f32 %v3495_v31  ;;  %v3518_v13 = vadd.f32 %v3517_v7, %v3516_v55  ;;  %vm3594_vm15 = vcmp.eq.s32.totalorder %v3593_v35, 0 }
0x4772   :  { %v3563_v34 = vmul.f32 %v3561_v32, %v3538_v33  ;;  %v3508_v63 = vor.u32 1.1754944e-38, %v3507_v53  ;;  %vm3506_vm11 = vcmp.eq.f32.partialorder %v3505_v17, 8.507059e+37  ;;  %vm3615_vm7 = vcmp.eq.s32.totalorder %v3593_v35, 1 }
0x4773   :  { %v3910_v32 = vsel %vm3594_vm15, 1.0, %v4267_v11  ;;  %v3911_v47 = vsel %vm3615_vm7, 1.0, %v4267_v11 }
0x4774   :  { %v3564_v46 = vmax.f32 %v3563_v34, 1e-08 }
0x4776   :  { %v4228_v54 = vpop.eup %4227  ;;  %4229 = vrcp.f32 %v3564_v46  ;;  %v3576_v6 = vand.u32 2147483648, %v3564_v46  ;;  %v3574_v10 = vand.u32 2147483647, %v3564_v46  ;;  %vm3570_vm13 = vweird.f32 %v3564_v46 }
0x4777   :  { %v3497_v52 = vmul.f32 %v4228_v54, %v3495_v31  ;;  %vm3502_vm8 = vweird.f32 %v4228_v54 }
0x4778   :  { %vm3503_vm10 = vmor %vm3501_vm9, %vm3502_vm8  ;;  %v3577_v16 = vor.u32 1.1754944e-38, %v3576_v6  ;;  %vm3575_vm0 = vcmp.eq.f32.partialorder %v3574_v10, 8.507059e+37  ;;  %vm3690_vm9 = vcmask 1041408  }
0x4779   :  { %v3498_v42 = vsub.f32 1.0, %v3497_v52 }
0x477b   :  { %v3499_v59 = vmul.f32 %v4228_v54, %v3498_v42 }
0x477c   :  { %v4230_v60 = vpop.eup %4229 }
0x477d   :  { %v3500_v62 = vadd.f32 %v4228_v54, %v3499_v59  ;;  %v3566_v2 = vmul.f32 %v4230_v60, %v3564_v46  ;;  %vm3571_vm12 = vweird.f32 %v4230_v60 }
0x477e   :  { %vm3572_vm14 = vmor %vm3570_vm13, %vm3571_vm12  ;;  %vm3745_vm13 = vcmask 57344  }
0x477f   :  { %v3504_v3 = vsel %vm3503_vm10, %v4228_v54, %v3500_v62  ;;  %v3567_v4 = vsub.f32 1.0, %v3566_v2  ;;  %v3653_v54 = vld [vmem:[%s5014_s10] sm:$0x3]  ;;  %vm3686_vm10 = vcmask 15360   ;;  %s3752_s10 = sshll.u32 %s4271_s9, 4  ;;  %s3753_s10 = int_to_ptr.vmem [resolvable:$true] %s3752_s10 }
0x4780   :  { %v3509_v57 = vsel %vm3506_vm11, %v3508_v63, %v3504_v3  ;;  %3913 = vmatpush.msk.msra.mxu0 %vm3690_vm9, %v3653_v54 }
0x4781   :  { %v3510_v5 = vmul.f32 %v3509_v57, %v3448_v56  ;;  %v3568_v9 = vmul.f32 %v4230_v60, %v3567_v4 }
0x4783   :  { %v3580_v12 = vmul.f32 1.442695, %v3510_v5  ;;  %v3569_v15 = vadd.f32 %v4230_v60, %v3568_v9 }
0x4785   :  { %4231 = vpow2.f32 %v3580_v12  ;;  %v3573_v18 = vsel %vm3572_vm14, %v4230_v60, %v3569_v15 }
0x4786   :  { %v3578_v21 = vsel %vm3575_vm0, %v3577_v16, %v3573_v18 }
0x4787   :  { %v3579_v14 = vmul.f32 %v3578_v21, %v3518_v13 }
0x4789   :  { %v3586_v20 = vmul.f32 1.442695, %v3579_v14 }
0x478b   :  { %v4232_v22 = vpop.eup %4231  ;;  %4233 = vpow2.f32 %v3586_v20 }
0x478c   :  { %v3583_v24 = vsel %vm3582_vm1, %v4232_v22, 0.0 }
0x478d   :  { %3584 = vadd.xlane.f32.xlu1 %v3583_v24 }
0x4791   :  { %v4234_v25 = vpop.eup %4233 }
0x4792   :  { %v3588_v23 = vsel %vm3582_vm1, %v4234_v25, 0.0 }
0x4793   :  { %3589 = vadd.xlane.f32.xlu2 %v3588_v23 }
0x4800   :  { %v3585_v0 = vpop.xlane.xlu1 %3584 }
0x4806   :  { %v3590_v40 = vpop.xlane.xlu2 %3589 }
0x4807   :  { %v3591_v28 = vadd.f32 %v3590_v40, %v3585_v0 }
0x4809   :  { %4235 = vrcp.f32 %v3591_v28  ;;  %v3608_v8 = vand.u32 2147483648, %v3591_v28  ;;  %v3606_v1 = vand.u32 2147483647, %v3591_v28  ;;  %vm3602_vm3 = vweird.f32 %v3591_v28 }
0x480b   :  { %v3609_v38 = vor.u32 1.1754944e-38, %v3608_v8  ;;  %vm3607_vm8 = vcmp.eq.f32.partialorder %v3606_v1, 8.507059e+37 }
0x480f   :  { %v4236_v29 = vpop.eup %4235 }
0x4810   :  { %v3598_v43 = vmul.f32 %v4236_v29, %v3591_v28  ;;  %vm3603_vm2 = vweird.f32 %v4236_v29 }
0x4811   :  { %vm3604_vm6 = vmor %vm3602_vm3, %vm3603_vm2 }
0x4812   :  { %v3599_v30 = vsub.f32 1.0, %v3598_v43 }
0x4814   :  { %v3600_v36 = vmul.f32 %v4236_v29, %v3599_v30 }
0x4816   :  { %v3601_v31 = vadd.f32 %v4236_v29, %v3600_v36 }
0x4818   :  { %v3605_v44 = vsel %vm3604_vm6, %v4236_v29, %v3601_v31 }
0x4819   :  { %v3610_v45 = vsel %vm3607_vm8, %v3609_v38, %v3605_v44 }
0x481a   :  { %v3611_v41 = vmul.f32 %v3610_v45, %v3510_v5  ;;  %v3618_v48 = vmul.f32 %v3610_v45, %v3579_v14 }
0x481c   :  { %v3612_v33 = vperm.slane %v3611_v41, 0  ;;  %v3619_v19 = vperm.slane %v3618_v48, 0 }
0x481e   :  { %v3613_v49 = vmul.f32 %v3910_v32, %v3612_v33  ;;  %v3620_v34 = vmul.f32 %v3911_v47, %v3619_v19 }
0x4820   :  { %v3621_v46 = vadd.f32 %v3620_v34, %v3613_v49 }
0x4822   :  { %3912 = vmatmul.msk.f32.vlgmr.msrb.gmra.mxu3 %vm88_vm5, %v3621_v46 }
0x48a5   :  { %v3650_v51 = vpop.f32.mrf.mxu3 }
0x48a6   :  { %v3651_v52 = vadd.f32 %v3922_v50, %v3650_v51 }
0x48a8   :  { %3654 = vxpose.xlu0.b32.start.end [1/1] (short) (narrow) %v3651_v52, 8 }
0x494c   :  { %v3670_v11 = vpop.trf.xlu0 }
0x494d   :  { %3914 = vmatmul.msk.f32.vlgmr.msra.gmra.mxu0 %vm3686_vm10, %v3670_v11 }
0x49ca   :  { %v3711_v42 = vpop.f32.mrf.mxu0 }
0x49cb   :  { %v3714_v53 = vsel %vm409_vm4, %v3711_v42, 0.0 }
0x49cc   :  { %v3715_v58 = vrot.slane %v3714_v53, 4 }
0x49ce   :  { %v3716_v61 = vadd.f32 %v3715_v58, %v3714_v53 }
0x49d0   :  { %v3717_v59 = vrot.slane %v3716_v61, 2 }
0x49d2   :  { %v3718_v17 = vadd.f32 %v3717_v59, %v3716_v61 }
0x49d4   :  { %v3719_v60 = vrot.slane %v3718_v17, 1 }
0x49d6   :  { %v3720_v62 = vadd.f32 %v3719_v60, %v3718_v17 }
0x49d8   :  { %v3721_v63 = vsel %vm409_vm4, %v3720_v62, -inf }
0x49d9   :  { %3722 = vmax.xlane.f32.xlu2 %v3721_v63 }
0x4a4c   :  { %v3723_v55 = vpop.xlane.xlu2 %3722 }
0x4a4d   :  { %v3724_v2 = vsub.f32 %v3720_v62, %v3723_v55 }
0x4a4f   :  { %v3725_v56 = vmul.f32 1.442695, %v3724_v2 }
0x4a51   :  { %4237 = vpow2.f32 %v3725_v56 }
0x4a57   :  { %v4238_v3 = vpop.eup %4237 }
0x4a58   :  { %v3727_v57 = vsel %vm409_vm4, %v4238_v3, 0.0 }
0x4a59   :  { %3728 = vadd.xlane.f32.xlu0 %v3727_v57 }
0x4acc   :  { %v3729_v4 = vpop.xlane.xlu0 %3728 }
0x4acd   :  { %4239 = vrcp.f32 %v3729_v4  ;;  %v3741_v9 = vand.u32 2147483648, %v3729_v4  ;;  %v3739_v12 = vand.u32 2147483647, %v3729_v4  ;;  %vm3735_vm11 = vweird.f32 %v3729_v4 }
0x4acf   :  { %v3742_v16 = vor.u32 1.1754944e-38, %v3741_v9  ;;  %vm3740_vm4 = vcmp.eq.f32.partialorder %v3739_v12, 8.507059e+37 }
0x4ad3   :  { %v4240_v5 = vpop.eup %4239 }
0x4ad4   :  { %v3731_v6 = vmul.f32 %v4240_v5, %v3729_v4  ;;  %vm3736_vm5 = vweird.f32 %v4240_v5 }
0x4ad5   :  { %vm3737_vm12 = vmor %vm3735_vm11, %vm3736_vm5 }
0x4ad6   :  { %v3732_v7 = vsub.f32 1.0, %v3731_v6 }
0x4ad8   :  { %v3733_v10 = vmul.f32 %v4240_v5, %v3732_v7 }
0x4ada   :  { %v3734_v15 = vadd.f32 %v4240_v5, %v3733_v10 }
0x4adc   :  { %v3738_v13 = vsel %vm3737_vm12, %v4240_v5, %v3734_v15 }
0x4add   :  { %v3743_v18 = vsel %vm3740_vm4, %v3742_v16, %v3738_v13 }
0x4ade   :  { %v3744_v21 = vmul.f32 %v4238_v3, %v3743_v18 }
0x4ae0   :  { %3746 = vst.msk [vmem:[#allocation2] sm:$0x1] %vm3745_vm13, %v3744_v21 }
0x4ae1   :  { %3757 = dma.vmem_to_hbm [thread:$0]  %s3753_s10, 16, %s3755_s26, [#allocation3]  }
0x4ae2   :  { %4265 = dma.done.wait [#allocation3], 16  }
0x4ae3   :  { %4266 = vsyncadd [#allocation3], 4294967280 }
0x4ae4   :  { %3762 = vsyncpa [#allocation3], 1 }

</bundles_post_ra>
